<compile_context>
chip_gen: v6e
topology: v6e:2x2x1
jax: 0.10.0
libtpu: 0.0.40
codegen_flags: <defaults>
</compile_context>

<pallas_src>
import math

import jax
import jax.numpy as jnp
from jax.experimental import pallas as pl
from jax.experimental.pallas import tpu as pltpu

HIDDEN = 32          # hidden_dim == num_feat of X (required by the module reshape)
FK_DIM = 16          # fk_dim of forecast_fc
NUM_HEADS = 4        # heads of the transformer layer
OUTPUT_WINDOW = 12
GAP = 3
MAX_LEN = 64         # positional-encoding table length
GROUPS = 4           # rows packed into the 128-lane dim (4 * HIDDEN == 128)
MAX_TILE_P = 128     # packed rows per grid step (== 512 original B*N rows)


def _round_up(x, m):
    return -(-x // m) * m


def _pick_packed_tile(m_p):
    """Packed-row tile: multiple of 8, <= MAX_TILE_P, and small enough that the
    grid has >= 2 steps whenever there are enough rows (v7x megacore)."""
    tm = min(MAX_TILE_P, _round_up(m_p, 8))
    if m_p > 8 and _round_up(m_p, 8) // tm < 2:
        tm = _round_up(-(-m_p // 2), 8)
    return max(tm, 8)


def _rep_spec(shape):
    """Whole-array block, same block every grid step (weights stay resident)."""
    n = len(shape)
    return pl.BlockSpec(shape, lambda i: (0,) * n)


# ------------------------------ fused kernel ------------------------------
def _make_fused_kernel(L0, n_extra, TMp):
    H, G = HIDDEN, GROUPS
    HP = G * H                       # 128 packed lanes
    hd = H // NUM_HEADS
    scale = 1.0 / math.sqrt(hd)

    def kernel(rnn_ref, z_ref, pe_ref, peterm_ref,
               wih_ref, bih_ref, whh_ref, bhh_ref,
               wq_ref, bq_ref, wkv_ref, bkv_ref, wo_ref, bo_ref,
               segbd_ref, wfc_ref, bfc_ref,
               out_ref, kv_ref):
        # ---- tiny weights: load once per M-block ---------------------------
        pe = pe_ref[...]             # [Lh, HP]            packed PE rows
        peterm = peterm_ref[...]     # [n_extra, Lh, 2HP]  count(l,s)*pe@[wk|wv]
        wih = wih_ref[...]; bih = bih_ref[...]
        whh = whh_ref[...]; bhh = bhh_ref[...]
        wq = wq_ref[...];   bq = bq_ref[...]
        wkv = wkv_ref[...]; bkv = bkv_ref[...]
        wo = wo_ref[...];   bo = bo_ref[...]
        segbd = segbd_ref[...]       # [HP, HP] block-diag per-head/per-group sum

        rnn = rnn_ref[...]           # [L0, TMp, HP] raw encoded history

        # one-time K|V projection of the L0 base rows (raw; bias included)
        kv_ref[pl.ds(0, L0)] = (
            jnp.dot(rnn.reshape(L0 * TMp, HP), wkv,
                    preferred_element_type=jnp.float32) + bkv
        ).reshape(L0, TMp, 2 * HP)

        preds = [z_ref[...]]         # packed [TMp, HP] predictions, step-ordered
        h_raw = None                 # raw GRU output of the previous step

        # Unrolled autoregressive loop (static history length per step).
        for s in range(n_extra):
            Ln = L0 + s + 1          # history length after this step's append
            x = preds[-1]
            # RNN_H[-1] as the reference reads it: raw at s=0, otherwise the
            # previous GRU output with exactly one PE application.
            h_prev = rnn[L0 - 1] if s == 0 else h_raw + pe[L0 + s - 1][None, :]

            # ---- GRUCell: two K=HP matmuls, gate-major packed columns ------
            gi = jnp.dot(x, wih, preferred_element_type=jnp.float32) + bih
            gh = jnp.dot(h_prev, whh, preferred_element_type=jnp.float32) + bhh
            r = jax.nn.sigmoid(gi[:, 0:HP] + gh[:, 0:HP])
            zg = jax.nn.sigmoid(gi[:, HP:2 * HP] + gh[:, HP:2 * HP])
            n = jnp.tanh(gi[:, 2 * HP:3 * HP] + r * gh[:, 2 * HP:3 * HP])
            h_new = (1.0 - zg) * n + zg * h_prev          # raw (pre-PE) = query
            h_raw = h_new

            # K|V of the newly appended row (write-once cache; PE added below)
            kv_ref[L0 + s] = jnp.dot(h_new, wkv,
                                     preferred_element_type=jnp.float32) + bkv

            # ---- multi-head attention: q = h_new, K = V = PE'd history -----
            # Closed-form PE: row l<L0 has been PE'd (s+1)x, row L0+j (s-j+1)x;
            # those counts (times pe@[wk|wv]) were folded into peterm host-side.
            kv = kv_ref[pl.ds(0, Ln)] + peterm[s, 0:Ln][:, None, :]  # [Ln,TMp,2HP]
            k3 = kv[:, :, 0:HP]
            v3 = kv[:, :, HP:2 * HP]

            qp = (jnp.dot(h_new, wq, preferred_element_type=jnp.float32)
                  + bq) * scale                                      # [TMp, HP]
            prod = qp[None, :, :] * k3                               # [Ln, TMp, HP]
            scores = jnp.dot(prod.reshape(Ln * TMp, HP), segbd,
                             preferred_element_type=jnp.float32
                             ).reshape(Ln, TMp, HP)   # per-head q.k, lane-replicated
            m = jnp.max(scores, axis=0, keepdims=True)
            e = jnp.exp(scores - m)                                  # [Ln, TMp, HP]
            denom = jnp.sum(e, axis=0)                               # [TMp, HP]
            num = jnp.sum(e * v3, axis=0)                            # [TMp, HP]
            attn = num * pl.reciprocal(denom, approx=True)
            z_step = jnp.dot(attn, wo, preferred_element_type=jnp.float32) + bo
            preds.append(z_step)

        # ---- forecast_fc for all T steps at once ----------------------------
        pred_cat = jnp.concatenate(preds, axis=1)        # [TMp, T*HP] lane-dense
        out_ref[...] = jnp.dot(pred_cat, wfc_ref[...],
                               preferred_element_type=jnp.float32) + bfc_ref[...]

    return kernel


# ---------------------- packed / fused weight preprocessing ----------------------
def _build_fused_params(p, L0, n_extra, use_pe):
    H, G = HIDDEN, GROUPS
    HP = G * H
    hd = H // NUM_HEADS
    T = n_extra + 1
    FK = p['fc_w'].shape[1]
    Lh = L0 + n_extra
    eye = jnp.eye(G, dtype=jnp.float32)

    def pack_w(w):                    # [din, dout] -> block-diag [G*din, G*dout]
        return jnp.kron(eye, w.astype(jnp.float32))

    def pack_b(b):                    # [1, dout] -> [1, G*dout]
        return jnp.tile(b.astype(jnp.float32), (1, G))

    # GRUCell weights, gate-major packed columns: [ r(HP) | z(HP) | n(HP) ]
    w_ih = jnp.concatenate([pack_w(p['w_ih'][:, g * H:(g + 1) * H]) for g in range(3)], axis=1)
    w_hh = jnp.concatenate([pack_w(p['w_hh'][:, g * H:(g + 1) * H]) for g in range(3)], axis=1)
    b_ih = jnp.concatenate([pack_b(p['b_ih'][:, g * H:(g + 1) * H]) for g in range(3)], axis=1)
    b_hh = jnp.concatenate([pack_b(p['b_hh'][:, g * H:(g + 1) * H]) for g in range(3)], axis=1)

    # attention projections (K and V columns side by side, each group-packed)
    wq = pack_w(p['wq']); bq = pack_b(p['bq'])
    wo = pack_w(p['wo']); bo = pack_b(p['bo'])
    w_kv = jnp.concatenate([pack_w(p['wk']), pack_w(p['wv'])], axis=1)    # [HP, 2HP]
    b_kv = jnp.concatenate([pack_b(p['bk']), pack_b(p['bv'])], axis=1)    # [1, 2HP]

    # fused per-head lane-sum matrix (seg @ segT): 1s within each head, per group
    seg_bd = (jnp.arange(H)[:, None] // hd
              == jnp.arange(H)[None, :] // hd).astype(jnp.float32)        # [H, H]
    seg_bd = pack_w(seg_bd)                                               # [HP, HP]

    # positional encoding (packed) and its closed-form K|V contribution per step
    pe = (p['pe'][:Lh] if use_pe else jnp.zeros((Lh, H))).astype(jnp.float32)
    pe_p = jnp.tile(pe, (1, G))                                           # [Lh, HP]
    pe_kv = jnp.concatenate([jnp.tile(pe @ p['wk'], (1, G)),
                             jnp.tile(pe @ p['wv'], (1, G))], axis=1)     # [Lh, 2HP]
    # count(l, s): row l<L0 PE'd (s+1) times; row L0+j PE'd (s-j+1) times
    counts = jnp.zeros((max(n_extra, 1), Lh), jnp.float32)
    for s in range(n_extra):
        c = [float(s + 1)] * L0 + [float(s - j + 1) for j in range(s + 1)]
        c += [0.0] * (Lh - len(c))
        counts = counts.at[s].set(jnp.array(c, jnp.float32))
    pe_term = counts[:, :, None] * pe_kv[None, :, :]            # [n_extra, Lh, 2HP]

    # forecast_fc: input lanes (t, g, h) -> output lanes (g, t, fk)
    w_fc = jnp.zeros((T * HP, G * T * FK), jnp.float32)
    for t in range(T):
        for g in range(G):
            w_fc = w_fc.at[t * HP + g * H:t * HP + (g + 1) * H,
                           g * T * FK + t * FK:g * T * FK + (t + 1) * FK].set(p['fc_w'])
    b_fc = jnp.tile(p['fc_b'].astype(jnp.float32), (1, G * T))           # [1, G*T*FK]

    return dict(pe=pe_p, pe_term=pe_term, w_ih=w_ih, b_ih=b_ih, w_hh=w_hh, b_hh=b_hh,
                wq=wq, bq=bq, w_kv=w_kv, b_kv=b_kv, wo=wo, bo=bo,
                seg_bd=seg_bd, w_fc=w_fc, b_fc=b_fc)


# --------------------------- forward (wrapper) ---------------------------
def inh_forecast(X, RNN_H, Z, params,
                 output_seq_len=OUTPUT_WINDOW, gap=GAP, use_pe=True):
    B, _, N, F = X.shape
    L0, M, H = RNN_H.shape
    assert F == H, "D2STGNN InhForecast requires num_feat == hidden_dim"
    assert M == B * N, "RNN_H rows must be batch*num_nodes"
    assert GROUPS * H == 128, "lane packing assumes 4*hidden == 128"

    n_extra = int(output_seq_len / gap) - 1
    T = n_extra + 1
    FK = params['fc_w'].shape[1]
    G = GROUPS
    HP = G * H
    Lh = L0 + n_extra

    fp = _build_fused_params(params, L0, n_extra, use_pe)

    # ---- pack G=4 consecutive rows into the 128-lane dim (zero-pad rows) ----
    m_p = -(-M // G)
    TMp = _pick_packed_tile(m_p)
    n_blk = -(-m_p // TMp)
    M_pad = n_blk * TMp * G

    def pad_pack(a, lead):            # [*lead, M, H] -> [*lead, M_pad//G, HP]
        a = jnp.pad(a.astype(jnp.float32),
                    [(0, 0)] * (a.ndim - 2) + [(0, M_pad - M), (0, 0)])
        return a.reshape(lead + (M_pad // G, HP))

    rnn_p = pad_pack(RNN_H, (L0,))
    z_p = pad_pack(Z[-1], ())

    weights = (fp['pe'], fp['pe_term'], fp['w_ih'], fp['b_ih'], fp['w_hh'], fp['b_hh'],
               fp['wq'], fp['bq'], fp['w_kv'], fp['b_kv'], fp['wo'], fp['bo'],
               fp['seg_bd'], fp['w_fc'], fp['b_fc'])

    kernel = _make_fused_kernel(L0, n_extra, TMp)
    out_p = pl.pallas_call(
        kernel,
        grid=(n_blk,),
        in_specs=[pl.BlockSpec((L0, TMp, HP), lambda i: (0, i, 0)),
                  pl.BlockSpec((TMp, HP), lambda i: (i, 0))]
                 + [_rep_spec(tuple(w.shape)) for w in weights],
        out_specs=pl.BlockSpec((TMp, G * T * FK), lambda i: (i, 0)),
        out_shape=jax.ShapeDtypeStruct((M_pad // G, G * T * FK), jnp.float32),
        scratch_shapes=[pltpu.VMEM((Lh, TMp, 2 * HP), jnp.float32)],
        compiler_params=pltpu.CompilerParams(
            dimension_semantics=("parallel",),      # megacore sharding on v7x
            vmem_limit_bytes=48 * 1024 * 1024),
    )(rnn_p, z_p, *weights)

    # unpack: packed output lanes are (g, t, fk) group-major -> plain [M, T*FK]
    out_flat = out_p.reshape(M_pad, T * FK)[:M]
    # == predict.reshape(-1, B, N, F).transpose(0, 1) followed by forecast_fc
    return out_flat.reshape(B, N, T, FK).transpose(0, 2, 1, 3)


# --------------------------- pure-JAX reference ---------------------------
def _gru_ref(x, h, p):
    H = h.shape[1]
    gi = x @ p['w_ih'] + p['b_ih']
    gh = h @ p['w_hh'] + p['b_hh']
    r = jax.nn.sigmoid(gi[:, :H] + gh[:, :H])
    z = jax.nn.sigmoid(gi[:, H:2 * H] + gh[:, H:2 * H])
    n = jnp.tanh(gi[:, 2 * H:] + r * gh[:, 2 * H:])
    return (1.0 - z) * n + z * h


def _mha_ref(q, kv, p, num_heads=NUM_HEADS):
    M, H = q.shape
    L = kv.shape[0]
    hd = H // num_heads
    qp = (q @ p['wq'] + p['bq']).reshape(M, num_heads, hd)
    kp = (kv @ p['wk'] + p['bk']).reshape(L, M, num_heads, hd)
    vp = (kv @ p['wv'] + p['bv']).reshape(L, M, num_heads, hd)
    sc = jnp.einsum('mhd,lmhd->mhl', qp, kp) / math.sqrt(hd)
    a = jax.nn.softmax(sc, axis=-1)
    o = jnp.einsum('mhl,lmhd->mhd', a, vp).reshape(M, H)
    return o @ p['wo'] + p['bo']


def inh_forecast_ref(X, RNN_H, Z, p,
                     output_seq_len=OUTPUT_WINDOW, gap=GAP, use_pe=True):
    B, _, N, F = X.shape
    H = RNN_H.shape[-1]
    predict = [Z[-1][None, :, :]]
    for _ in range(int(output_seq_len / gap) - 1):
        h_new = _gru_ref(predict[-1][0], RNN_H[-1], p)
        _gru = h_new[None, :, :]
        RNN_H = jnp.concatenate([RNN_H, _gru], axis=0)
        if use_pe:
            L = RNN_H.shape[0]
            RNN_H = RNN_H + p['pe'][:L][:, None, :]
        predict.append(_mha_ref(_gru[0], RNN_H, p)[None, :, :])
    predict = jnp.concatenate(predict, axis=0)
    T = predict.shape[0]
    predict = jnp.transpose(predict.reshape(-1, B, N, F), (1, 0, 2, 3))
    return (predict.reshape(-1, H) @ p['fc_w'] + p['fc_b']).reshape(B, T, N, -1)


# --------------------------- deterministic params ---------------------------
def init_params(key):
    ks = jax.random.split(key, 14)

    def rnd(k, shape, scale=0.1):
        return (scale * jax.random.normal(k, shape)).astype(jnp.float32)

    H, FK = HIDDEN, FK_DIM
    position = jnp.arange(MAX_LEN, dtype=jnp.float32)[:, None]
    div_term = jnp.exp(jnp.arange(0, H, 2, dtype=jnp.float32)
                       * (-math.log(10000.0) / H))
    pe = jnp.zeros((MAX_LEN, H), jnp.float32)
    pe = pe.at[:, 0::2].set(jnp.sin(position * div_term))
    pe = pe.at[:, 1::2].set(jnp.cos(position * div_term))
    return dict(
        # nn.GRUCell(hidden, hidden)  (stored transposed: [in, 3*hidden])
        w_ih=rnd(ks[0], (H, 3 * H)), w_hh=rnd(ks[1], (H, 3 * H)),
        b_ih=rnd(ks[2], (1, 3 * H)), b_hh=rnd(ks[3], (1, 3 * H)),
        # nn.MultiheadAttention(hidden, num_heads)
        wq=rnd(ks[4], (H, H)), wk=rnd(ks[5], (H, H)), wv=rnd(ks[6], (H, H)),
        bq=rnd(ks[7], (1, H)), bk=rnd(ks[8], (1, H)), bv=rnd(ks[9], (1, H)),
        wo=rnd(ks[10], (H, H)), bo=rnd(ks[11], (1, H)),
        # forecast_fc = nn.Linear(hidden_dim, fk_dim)
        fc_w=rnd(ks[12], (H, FK)), fc_b=rnd(ks[13], (1, FK)),
        pe=pe,
    )


if __name__ == "__main__":
    params = init_params(jax.random.PRNGKey(42))

    def run_case(B, N, L0, seed):
        key = jax.random.PRNGKey(seed)
        kx, kh, kz = jax.random.split(key, 3)
        X = jax.random.normal(kx, (B, 4, N, HIDDEN), jnp.float32)
        RNN_H = jax.random.normal(kh, (L0, B * N, HIDDEN), jnp.float32)
        Z = jax.random.normal(kz, (L0, B * N, HIDDEN), jnp.float32)
        out = jax.block_until_ready(inh_forecast(X, RNN_H, Z, params))
        assert out.shape == (B, OUTPUT_WINDOW // GAP, N, FK_DIM), out.shape
        assert bool(jnp.all(jnp.isfinite(out)))
        ref = inh_forecast_ref(X, RNN_H, Z, params)
        max_err = float(jnp.max(jnp.abs(out - ref)))
        assert max_err < 5e-3, f"mismatch vs reference: {max_err}"

    run_case(B=2, N=8, L0=4, seed=0)     # tiny single-block case (PRNGKey(0))
    run_case(B=4, N=25, L0=4, seed=1)    # multi-block grid + row padding path
    print("KERNEL_OK")
</pallas_src>

<mosaic_0001>
module attributes {stable_mosaic.version = 11 : i64} {
  func.func @kernel(%arg0: i32, %arg1: memref<4x8x128xf32, #tpu.memory_space<vmem>>, %arg2: memref<8x128xf32, #tpu.memory_space<vmem>>, %arg3: memref<7x128xf32, #tpu.memory_space<vmem>>, %arg4: memref<3x7x256xf32, #tpu.memory_space<vmem>>, %arg5: memref<128x384xf32, #tpu.memory_space<vmem>>, %arg6: memref<1x384xf32, #tpu.memory_space<vmem>>, %arg7: memref<128x384xf32, #tpu.memory_space<vmem>>, %arg8: memref<1x384xf32, #tpu.memory_space<vmem>>, %arg9: memref<128x128xf32, #tpu.memory_space<vmem>>, %arg10: memref<1x128xf32, #tpu.memory_space<vmem>>, %arg11: memref<128x256xf32, #tpu.memory_space<vmem>>, %arg12: memref<1x256xf32, #tpu.memory_space<vmem>>, %arg13: memref<128x128xf32, #tpu.memory_space<vmem>>, %arg14: memref<1x128xf32, #tpu.memory_space<vmem>>, %arg15: memref<128x128xf32, #tpu.memory_space<vmem>>, %arg16: memref<512x256xf32, #tpu.memory_space<vmem>>, %arg17: memref<1x256xf32, #tpu.memory_space<vmem>>, %arg18: memref<8x256xf32, #tpu.memory_space<vmem>>, %arg19: memref<7x8x256xf32, #tpu.memory_space<vmem>>) attributes {dimension_semantics = [#tpu.dimension_semantics<parallel>], iteration_bounds = array<i64: 1>, scalar_prefetch = 0 : i64, scratch_operands = 1 : i64, tpu.core_type = #tpu.core_type<tc>, window_params = [{transform_indices = @transform_0, window_bounds = array<i64: 4, 8, 128>}, {transform_indices = @transform_1, window_bounds = array<i64: 8, 128>}, {pipeline_mode = #tpu.pipeline_mode<synchronous>, transform_indices = @transform_2, window_bounds = array<i64: 7, 128>}, {pipeline_mode = #tpu.pipeline_mode<synchronous>, transform_indices = @transform_3, window_bounds = array<i64: 3, 7, 256>}, {pipeline_mode = #tpu.pipeline_mode<synchronous>, transform_indices = @transform_4, window_bounds = array<i64: 128, 384>}, {pipeline_mode = #tpu.pipeline_mode<synchronous>, transform_indices = @transform_5, window_bounds = array<i64: 1, 384>}, {pipeline_mode = #tpu.pipeline_mode<synchronous>, transform_indices = @transform_6, window_bounds = array<i64: 128, 384>}, {pipeline_mode = #tpu.pipeline_mode<synchronous>, transform_indices = @transform_7, window_bounds = array<i64: 1, 384>}, {pipeline_mode = #tpu.pipeline_mode<synchronous>, transform_indices = @transform_8, window_bounds = array<i64: 128, 128>}, {pipeline_mode = #tpu.pipeline_mode<synchronous>, transform_indices = @transform_9, window_bounds = array<i64: 1, 128>}, {pipeline_mode = #tpu.pipeline_mode<synchronous>, transform_indices = @transform_10, window_bounds = array<i64: 128, 256>}, {pipeline_mode = #tpu.pipeline_mode<synchronous>, transform_indices = @transform_11, window_bounds = array<i64: 1, 256>}, {pipeline_mode = #tpu.pipeline_mode<synchronous>, transform_indices = @transform_12, window_bounds = array<i64: 128, 128>}, {pipeline_mode = #tpu.pipeline_mode<synchronous>, transform_indices = @transform_13, window_bounds = array<i64: 1, 128>}, {pipeline_mode = #tpu.pipeline_mode<synchronous>, transform_indices = @transform_14, window_bounds = array<i64: 128, 128>}, {pipeline_mode = #tpu.pipeline_mode<synchronous>, transform_indices = @transform_15, window_bounds = array<i64: 512, 256>}, {pipeline_mode = #tpu.pipeline_mode<synchronous>, transform_indices = @transform_16, window_bounds = array<i64: 1, 256>}, {transform_indices = @transform_17, window_bounds = array<i64: 8, 256>}]} {
    %c0 = arith.constant 0 : index
    %c0_0 = arith.constant 0 : index
    %0 = vector.load %arg3[%c0, %c0_0] : memref<7x128xf32, #tpu.memory_space<vmem>>, vector<7x128xf32>
    %c0_1 = arith.constant 0 : index
    %c0_2 = arith.constant 0 : index
    %c0_3 = arith.constant 0 : index
    %1 = vector.load %arg4[%c0_1, %c0_2, %c0_3] : memref<3x7x256xf32, #tpu.memory_space<vmem>>, vector<3x7x256xf32>
    %c0_4 = arith.constant 0 : index
    %c0_5 = arith.constant 0 : index
    %2 = vector.load %arg5[%c0_4, %c0_5] : memref<128x384xf32, #tpu.memory_space<vmem>>, vector<128x384xf32>
    %c0_6 = arith.constant 0 : index
    %c0_7 = arith.constant 0 : index
    %3 = vector.load %arg6[%c0_6, %c0_7] : memref<1x384xf32, #tpu.memory_space<vmem>>, vector<1x384xf32>
    %c0_8 = arith.constant 0 : index
    %c0_9 = arith.constant 0 : index
    %4 = vector.load %arg7[%c0_8, %c0_9] : memref<128x384xf32, #tpu.memory_space<vmem>>, vector<128x384xf32>
    %c0_10 = arith.constant 0 : index
    %c0_11 = arith.constant 0 : index
    %5 = vector.load %arg8[%c0_10, %c0_11] : memref<1x384xf32, #tpu.memory_space<vmem>>, vector<1x384xf32>
    %c0_12 = arith.constant 0 : index
    %c0_13 = arith.constant 0 : index
    %6 = vector.load %arg9[%c0_12, %c0_13] : memref<128x128xf32, #tpu.memory_space<vmem>>, vector<128x128xf32>
    %c0_14 = arith.constant 0 : index
    %c0_15 = arith.constant 0 : index
    %7 = vector.load %arg10[%c0_14, %c0_15] : memref<1x128xf32, #tpu.memory_space<vmem>>, vector<1x128xf32>
    %c0_16 = arith.constant 0 : index
    %c0_17 = arith.constant 0 : index
    %8 = vector.load %arg11[%c0_16, %c0_17] : memref<128x256xf32, #tpu.memory_space<vmem>>, vector<128x256xf32>
    %c0_18 = arith.constant 0 : index
    %c0_19 = arith.constant 0 : index
    %9 = vector.load %arg12[%c0_18, %c0_19] : memref<1x256xf32, #tpu.memory_space<vmem>>, vector<1x256xf32>
    %c0_20 = arith.constant 0 : index
    %c0_21 = arith.constant 0 : index
    %10 = vector.load %arg13[%c0_20, %c0_21] : memref<128x128xf32, #tpu.memory_space<vmem>>, vector<128x128xf32>
    %c0_22 = arith.constant 0 : index
    %c0_23 = arith.constant 0 : index
    %11 = vector.load %arg14[%c0_22, %c0_23] : memref<1x128xf32, #tpu.memory_space<vmem>>, vector<1x128xf32>
    %c0_24 = arith.constant 0 : index
    %c0_25 = arith.constant 0 : index
    %12 = vector.load %arg15[%c0_24, %c0_25] : memref<128x128xf32, #tpu.memory_space<vmem>>, vector<128x128xf32>
    %c0_26 = arith.constant 0 : index
    %c0_27 = arith.constant 0 : index
    %c0_28 = arith.constant 0 : index
    %13 = vector.load %arg1[%c0_26, %c0_27, %c0_28] : memref<4x8x128xf32, #tpu.memory_space<vmem>>, vector<4x8x128xf32>
    %14 = vector.shape_cast %13 : vector<4x8x128xf32> to vector<32x128xf32>
    %cst = arith.constant dense<0.000000e+00> : vector<32x256xf32>
    %15 = tpu.matmul %14, %8, %cst {dimension_numbers = #tpu.dot_dimension_numbers<[1], [0], [0], [1], [0, 0, 1, 1], [], []>} : vector<32x128xf32>, vector<128x256xf32>, vector<32x256xf32> -> vector<32x256xf32>
    %16 = vector.broadcast %9 : vector<1x256xf32> to vector<32x256xf32>
    %17 = arith.addf %15, %16 : vector<32x256xf32>
    %18 = vector.shape_cast %17 : vector<32x256xf32> to vector<4x8x256xf32>
    %c0_29 = arith.constant 0 : index
    %c0_30 = arith.constant 0 : index
    %c0_31 = arith.constant 0 : index
    %19 = vector.load %arg19[%c0_29, %c0_30, %c0_31] : memref<7x8x256xf32, #tpu.memory_space<vmem>>, vector<4x8x256xf32>
    tpu.vector_store %arg19[%c0_29, %c0_30, %c0_31], %18 {strides = array<i32>} : memref<7x8x256xf32, #tpu.memory_space<vmem>>, vector<4x8x256xf32>,
    %c0_32 = arith.constant 0 : index
    %c0_33 = arith.constant 0 : index
    %20 = vector.load %arg2[%c0_32, %c0_33] : memref<8x128xf32, #tpu.memory_space<vmem>>, vector<8x128xf32>
    %21 = vector.extract_strided_slice %13 {offsets = [3, 0, 0], sizes = [1, 8, 128], strides = [1, 1, 1]} : vector<4x8x128xf32> to vector<1x8x128xf32>
    %22 = vector.shape_cast %21 : vector<1x8x128xf32> to vector<8x128xf32>
    %cst_34 = arith.constant dense<0.000000e+00> : vector<8x384xf32>
    %23 = tpu.matmul %20, %2, %cst_34 {dimension_numbers = #tpu.dot_dimension_numbers<[1], [0], [0], [1], [0, 0, 1, 1], [], []>} : vector<8x128xf32>, vector<128x384xf32>, vector<8x384xf32> -> vector<8x384xf32>
    %24 = vector.broadcast %3 : vector<1x384xf32> to vector<8x384xf32>
    %25 = arith.addf %23, %24 : vector<8x384xf32>
    %cst_35 = arith.constant dense<0.000000e+00> : vector<8x384xf32>
    %26 = tpu.matmul %22, %4, %cst_35 {dimension_numbers = #tpu.dot_dimension_numbers<[1], [0], [0], [1], [0, 0, 1, 1], [], []>} : vector<8x128xf32>, vector<128x384xf32>, vector<8x384xf32> -> vector<8x384xf32>
    %27 = vector.broadcast %5 : vector<1x384xf32> to vector<8x384xf32>
    %28 = arith.addf %26, %27 : vector<8x384xf32>
    %29 = vector.extract_strided_slice %25 {offsets = [0, 0], sizes = [8, 128], strides = [1, 1]} : vector<8x384xf32> to vector<8x128xf32>
    %30 = vector.extract_strided_slice %28 {offsets = [0, 0], sizes = [8, 128], strides = [1, 1]} : vector<8x384xf32> to vector<8x128xf32>
    %31 = arith.addf %29, %30 : vector<8x128xf32>
    %32 = arith.negf %31 : vector<8x128xf32>
    %33 = math.exp %32 : vector<8x128xf32>
    %cst_36 = arith.constant 1.000000e+00 : f32
    %34 = vector.broadcast %cst_36 : f32 to vector<8x128xf32>
    %35 = arith.addf %34, %33 : vector<8x128xf32>
    %36 = arith.divf %34, %35 : vector<8x128xf32>
    %37 = vector.extract_strided_slice %25 {offsets = [0, 128], sizes = [8, 128], strides = [1, 1]} : vector<8x384xf32> to vector<8x128xf32>
    %38 = vector.extract_strided_slice %28 {offsets = [0, 128], sizes = [8, 128], strides = [1, 1]} : vector<8x384xf32> to vector<8x128xf32>
    %39 = arith.addf %37, %38 : vector<8x128xf32>
    %40 = arith.negf %39 : vector<8x128xf32>
    %41 = math.exp %40 : vector<8x128xf32>
    %cst_37 = arith.constant 1.000000e+00 : f32
    %42 = vector.broadcast %cst_37 : f32 to vector<8x128xf32>
    %43 = arith.addf %42, %41 : vector<8x128xf32>
    %44 = arith.divf %42, %43 : vector<8x128xf32>
    %45 = vector.extract_strided_slice %25 {offsets = [0, 256], sizes = [8, 128], strides = [1, 1]} : vector<8x384xf32> to vector<8x128xf32>
    %46 = vector.extract_strided_slice %28 {offsets = [0, 256], sizes = [8, 128], strides = [1, 1]} : vector<8x384xf32> to vector<8x128xf32>
    %47 = arith.mulf %36, %46 : vector<8x128xf32>
    %48 = arith.addf %45, %47 : vector<8x128xf32>
    %49 = math.tanh %48 : vector<8x128xf32>
    %cst_38 = arith.constant 1.000000e+00 : f32
    %50 = vector.broadcast %cst_38 : f32 to vector<8x128xf32>
    %51 = arith.subf %50, %44 : vector<8x128xf32>
    %52 = arith.mulf %51, %49 : vector<8x128xf32>
    %53 = arith.mulf %44, %22 : vector<8x128xf32>
    %54 = arith.addf %52, %53 : vector<8x128xf32>
    %cst_39 = arith.constant dense<0.000000e+00> : vector<8x256xf32>
    %55 = tpu.matmul %54, %8, %cst_39 {dimension_numbers = #tpu.dot_dimension_numbers<[1], [0], [0], [1], [0, 0, 1, 1], [], []>} : vector<8x128xf32>, vector<128x256xf32>, vector<8x256xf32> -> vector<8x256xf32>
    %56 = vector.broadcast %9 : vector<1x256xf32> to vector<8x256xf32>
    %57 = arith.addf %55, %56 : vector<8x256xf32>
    %c4 = arith.constant 4 : index
    %c0_40 = arith.constant 0 : index
    %c0_41 = arith.constant 0 : index
    %58 = vector.load %arg19[%c4, %c0_40, %c0_41] : memref<7x8x256xf32, #tpu.memory_space<vmem>>, vector<1x8x256xf32>
    %59 = vector.shape_cast %58 : vector<1x8x256xf32> to vector<8x256xf32>
    %60 = vector.shape_cast %57 : vector<8x256xf32> to vector<1x8x256xf32>
    tpu.vector_store %arg19[%c4, %c0_40, %c0_41], %60 {strides = array<i32>} : memref<7x8x256xf32, #tpu.memory_space<vmem>>, vector<1x8x256xf32>,
    %c0_42 = arith.constant 0 : index
    %c0_43 = arith.constant 0 : index
    %c0_44 = arith.constant 0 : index
    %61 = vector.load %arg19[%c0_42, %c0_43, %c0_44] : memref<7x8x256xf32, #tpu.memory_space<vmem>>, vector<5x8x256xf32>
    %62 = vector.extract_strided_slice %1 {offsets = [0, 0, 0], sizes = [1, 5, 256], strides = [1, 1, 1]} : vector<3x7x256xf32> to vector<1x5x256xf32>
    %63 = vector.shape_cast %62 : vector<1x5x256xf32> to vector<5x256xf32>
    %64 = vector.shape_cast %63 : vector<5x256xf32> to vector<5x1x256xf32>
    %65 = vector.broadcast %64 : vector<5x1x256xf32> to vector<5x8x256xf32>
    %66 = arith.addf %61, %65 : vector<5x8x256xf32>
    %67 = vector.extract_strided_slice %66 {offsets = [0, 0, 0], sizes = [5, 8, 128], strides = [1, 1, 1]} : vector<5x8x256xf32> to vector<5x8x128xf32>
    %68 = vector.extract_strided_slice %66 {offsets = [0, 0, 128], sizes = [5, 8, 128], strides = [1, 1, 1]} : vector<5x8x256xf32> to vector<5x8x128xf32>
    %cst_45 = arith.constant dense<0.000000e+00> : vector<8x128xf32>
    %69 = tpu.matmul %54, %6, %cst_45 {dimension_numbers = #tpu.dot_dimension_numbers<[1], [0], [0], [1], [0, 0, 1, 1], [], []>} : vector<8x128xf32>, vector<128x128xf32>, vector<8x128xf32> -> vector<8x128xf32>
    %70 = vector.broadcast %7 : vector<1x128xf32> to vector<8x128xf32>
    %71 = arith.addf %69, %70 : vector<8x128xf32>
    %cst_46 = arith.constant 0.353553385 : f32
    %72 = vector.broadcast %cst_46 : f32 to vector<8x128xf32>
    %73 = arith.mulf %71, %72 : vector<8x128xf32>
    %74 = vector.shape_cast %73 : vector<8x128xf32> to vector<1x8x128xf32>
    %75 = vector.broadcast %74 : vector<1x8x128xf32> to vector<5x8x128xf32>
    %76 = arith.mulf %75, %67 : vector<5x8x128xf32>
    %77 = vector.shape_cast %76 : vector<5x8x128xf32> to vector<40x128xf32>
    %cst_47 = arith.constant dense<0.000000e+00> : vector<40x128xf32>
    %78 = tpu.matmul %77, %12, %cst_47 {dimension_numbers = #tpu.dot_dimension_numbers<[1], [0], [0], [1], [0, 0, 1, 1], [], []>} : vector<40x128xf32>, vector<128x128xf32>, vector<40x128xf32> -> vector<40x128xf32>
    %79 = vector.shape_cast %78 : vector<40x128xf32> to vector<5x8x128xf32>
    %cst_48 = arith.constant dense<0xFF800000> : vector<8x128xf32>
    %80 = vector.multi_reduction <maximumf>, %79, %cst_48 [0] : vector<5x8x128xf32> to vector<8x128xf32>
    %81 = vector.shape_cast %80 : vector<8x128xf32> to vector<1x8x128xf32>
    %82 = vector.broadcast %81 : vector<1x8x128xf32> to vector<5x8x128xf32>
    %83 = arith.subf %79, %82 : vector<5x8x128xf32>
    %84 = math.exp %83 : vector<5x8x128xf32>
    %cst_49 = arith.constant dense<0.000000e+00> : vector<8x128xf32>
    %85 = vector.multi_reduction <add>, %84, %cst_49 [0] : vector<5x8x128xf32> to vector<8x128xf32>
    %86 = arith.mulf %84, %68 : vector<5x8x128xf32>
    %cst_50 = arith.constant dense<0.000000e+00> : vector<8x128xf32>
    %87 = vector.multi_reduction <add>, %86, %cst_50 [0] : vector<5x8x128xf32> to vector<8x128xf32>
    %88 = tpu.reciprocal %85 {approx = true} : vector<8x128xf32> -> vector<8x128xf32>
    %89 = arith.mulf %87, %88 : vector<8x128xf32>
    %cst_51 = arith.constant dense<0.000000e+00> : vector<8x128xf32>
    %90 = tpu.matmul %89, %10, %cst_51 {dimension_numbers = #tpu.dot_dimension_numbers<[1], [0], [0], [1], [0, 0, 1, 1], [], []>} : vector<8x128xf32>, vector<128x128xf32>, vector<8x128xf32> -> vector<8x128xf32>
    %91 = vector.broadcast %11 : vector<1x128xf32> to vector<8x128xf32>
    %92 = arith.addf %90, %91 : vector<8x128xf32>
    %93 = vector.extract_strided_slice %0 {offsets = [4, 0], sizes = [1, 128], strides = [1, 1]} : vector<7x128xf32> to vector<1x128xf32>
    %94 = vector.shape_cast %93 : vector<1x128xf32> to vector<128xf32>
    %95 = vector.shape_cast %94 : vector<128xf32> to vector<1x128xf32>
    %96 = vector.broadcast %95 : vector<1x128xf32> to vector<8x128xf32>
    %97 = arith.addf %54, %96 : vector<8x128xf32>
    %cst_52 = arith.constant dense<0.000000e+00> : vector<8x384xf32>
    %98 = tpu.matmul %92, %2, %cst_52 {dimension_numbers = #tpu.dot_dimension_numbers<[1], [0], [0], [1], [0, 0, 1, 1], [], []>} : vector<8x128xf32>, vector<128x384xf32>, vector<8x384xf32> -> vector<8x384xf32>
    %99 = vector.broadcast %3 : vector<1x384xf32> to vector<8x384xf32>
    %100 = arith.addf %98, %99 : vector<8x384xf32>
    %cst_53 = arith.constant dense<0.000000e+00> : vector<8x384xf32>
    %101 = tpu.matmul %97, %4, %cst_53 {dimension_numbers = #tpu.dot_dimension_numbers<[1], [0], [0], [1], [0, 0, 1, 1], [], []>} : vector<8x128xf32>, vector<128x384xf32>, vector<8x384xf32> -> vector<8x384xf32>
    %102 = vector.broadcast %5 : vector<1x384xf32> to vector<8x384xf32>
    %103 = arith.addf %101, %102 : vector<8x384xf32>
    %104 = vector.extract_strided_slice %100 {offsets = [0, 0], sizes = [8, 128], strides = [1, 1]} : vector<8x384xf32> to vector<8x128xf32>
    %105 = vector.extract_strided_slice %103 {offsets = [0, 0], sizes = [8, 128], strides = [1, 1]} : vector<8x384xf32> to vector<8x128xf32>
    %106 = arith.addf %104, %105 : vector<8x128xf32>
    %107 = arith.negf %106 : vector<8x128xf32>
    %108 = math.exp %107 : vector<8x128xf32>
    %cst_54 = arith.constant 1.000000e+00 : f32
    %109 = vector.broadcast %cst_54 : f32 to vector<8x128xf32>
    %110 = arith.addf %109, %108 : vector<8x128xf32>
    %111 = arith.divf %109, %110 : vector<8x128xf32>
    %112 = vector.extract_strided_slice %100 {offsets = [0, 128], sizes = [8, 128], strides = [1, 1]} : vector<8x384xf32> to vector<8x128xf32>
    %113 = vector.extract_strided_slice %103 {offsets = [0, 128], sizes = [8, 128], strides = [1, 1]} : vector<8x384xf32> to vector<8x128xf32>
    %114 = arith.addf %112, %113 : vector<8x128xf32>
    %115 = arith.negf %114 : vector<8x128xf32>
    %116 = math.exp %115 : vector<8x128xf32>
    %cst_55 = arith.constant 1.000000e+00 : f32
    %117 = vector.broadcast %cst_55 : f32 to vector<8x128xf32>
    %118 = arith.addf %117, %116 : vector<8x128xf32>
    %119 = arith.divf %117, %118 : vector<8x128xf32>
    %120 = vector.extract_strided_slice %100 {offsets = [0, 256], sizes = [8, 128], strides = [1, 1]} : vector<8x384xf32> to vector<8x128xf32>
    %121 = vector.extract_strided_slice %103 {offsets = [0, 256], sizes = [8, 128], strides = [1, 1]} : vector<8x384xf32> to vector<8x128xf32>
    %122 = arith.mulf %111, %121 : vector<8x128xf32>
    %123 = arith.addf %120, %122 : vector<8x128xf32>
    %124 = math.tanh %123 : vector<8x128xf32>
    %cst_56 = arith.constant 1.000000e+00 : f32
    %125 = vector.broadcast %cst_56 : f32 to vector<8x128xf32>
    %126 = arith.subf %125, %119 : vector<8x128xf32>
    %127 = arith.mulf %126, %124 : vector<8x128xf32>
    %128 = arith.mulf %119, %97 : vector<8x128xf32>
    %129 = arith.addf %127, %128 : vector<8x128xf32>
    %cst_57 = arith.constant dense<0.000000e+00> : vector<8x256xf32>
    %130 = tpu.matmul %129, %8, %cst_57 {dimension_numbers = #tpu.dot_dimension_numbers<[1], [0], [0], [1], [0, 0, 1, 1], [], []>} : vector<8x128xf32>, vector<128x256xf32>, vector<8x256xf32> -> vector<8x256xf32>
    %131 = vector.broadcast %9 : vector<1x256xf32> to vector<8x256xf32>
    %132 = arith.addf %130, %131 : vector<8x256xf32>
    %c5 = arith.constant 5 : index
    %c0_58 = arith.constant 0 : index
    %c0_59 = arith.constant 0 : index
    %133 = vector.load %arg19[%c5, %c0_58, %c0_59] : memref<7x8x256xf32, #tpu.memory_space<vmem>>, vector<1x8x256xf32>
    %134 = vector.shape_cast %133 : vector<1x8x256xf32> to vector<8x256xf32>
    %135 = vector.shape_cast %132 : vector<8x256xf32> to vector<1x8x256xf32>
    tpu.vector_store %arg19[%c5, %c0_58, %c0_59], %135 {strides = array<i32>} : memref<7x8x256xf32, #tpu.memory_space<vmem>>, vector<1x8x256xf32>,
    %c0_60 = arith.constant 0 : index
    %c0_61 = arith.constant 0 : index
    %c0_62 = arith.constant 0 : index
    %136 = vector.load %arg19[%c0_60, %c0_61, %c0_62] : memref<7x8x256xf32, #tpu.memory_space<vmem>>, vector<6x8x256xf32>
    %137 = vector.extract_strided_slice %1 {offsets = [1, 0, 0], sizes = [1, 6, 256], strides = [1, 1, 1]} : vector<3x7x256xf32> to vector<1x6x256xf32>
    %138 = vector.shape_cast %137 : vector<1x6x256xf32> to vector<6x256xf32>
    %139 = vector.shape_cast %138 : vector<6x256xf32> to vector<6x1x256xf32>
    %140 = vector.broadcast %139 : vector<6x1x256xf32> to vector<6x8x256xf32>
    %141 = arith.addf %136, %140 : vector<6x8x256xf32>
    %142 = vector.extract_strided_slice %141 {offsets = [0, 0, 0], sizes = [6, 8, 128], strides = [1, 1, 1]} : vector<6x8x256xf32> to vector<6x8x128xf32>
    %143 = vector.extract_strided_slice %141 {offsets = [0, 0, 128], sizes = [6, 8, 128], strides = [1, 1, 1]} : vector<6x8x256xf32> to vector<6x8x128xf32>
    %cst_63 = arith.constant dense<0.000000e+00> : vector<8x128xf32>
    %144 = tpu.matmul %129, %6, %cst_63 {dimension_numbers = #tpu.dot_dimension_numbers<[1], [0], [0], [1], [0, 0, 1, 1], [], []>} : vector<8x128xf32>, vector<128x128xf32>, vector<8x128xf32> -> vector<8x128xf32>
    %145 = vector.broadcast %7 : vector<1x128xf32> to vector<8x128xf32>
    %146 = arith.addf %144, %145 : vector<8x128xf32>
    %cst_64 = arith.constant 0.353553385 : f32
    %147 = vector.broadcast %cst_64 : f32 to vector<8x128xf32>
    %148 = arith.mulf %146, %147 : vector<8x128xf32>
    %149 = vector.shape_cast %148 : vector<8x128xf32> to vector<1x8x128xf32>
    %150 = vector.broadcast %149 : vector<1x8x128xf32> to vector<6x8x128xf32>
    %151 = arith.mulf %150, %142 : vector<6x8x128xf32>
    %152 = vector.shape_cast %151 : vector<6x8x128xf32> to vector<48x128xf32>
    %cst_65 = arith.constant dense<0.000000e+00> : vector<48x128xf32>
    %153 = tpu.matmul %152, %12, %cst_65 {dimension_numbers = #tpu.dot_dimension_numbers<[1], [0], [0], [1], [0, 0, 1, 1], [], []>} : vector<48x128xf32>, vector<128x128xf32>, vector<48x128xf32> -> vector<48x128xf32>
    %154 = vector.shape_cast %153 : vector<48x128xf32> to vector<6x8x128xf32>
    %cst_66 = arith.constant dense<0xFF800000> : vector<8x128xf32>
    %155 = vector.multi_reduction <maximumf>, %154, %cst_66 [0] : vector<6x8x128xf32> to vector<8x128xf32>
    %156 = vector.shape_cast %155 : vector<8x128xf32> to vector<1x8x128xf32>
    %157 = vector.broadcast %156 : vector<1x8x128xf32> to vector<6x8x128xf32>
    %158 = arith.subf %154, %157 : vector<6x8x128xf32>
    %159 = math.exp %158 : vector<6x8x128xf32>
    %cst_67 = arith.constant dense<0.000000e+00> : vector<8x128xf32>
    %160 = vector.multi_reduction <add>, %159, %cst_67 [0] : vector<6x8x128xf32> to vector<8x128xf32>
    %161 = arith.mulf %159, %143 : vector<6x8x128xf32>
    %cst_68 = arith.constant dense<0.000000e+00> : vector<8x128xf32>
    %162 = vector.multi_reduction <add>, %161, %cst_68 [0] : vector<6x8x128xf32> to vector<8x128xf32>
    %163 = tpu.reciprocal %160 {approx = true} : vector<8x128xf32> -> vector<8x128xf32>
    %164 = arith.mulf %162, %163 : vector<8x128xf32>
    %cst_69 = arith.constant dense<0.000000e+00> : vector<8x128xf32>
    %165 = tpu.matmul %164, %10, %cst_69 {dimension_numbers = #tpu.dot_dimension_numbers<[1], [0], [0], [1], [0, 0, 1, 1], [], []>} : vector<8x128xf32>, vector<128x128xf32>, vector<8x128xf32> -> vector<8x128xf32>
    %166 = vector.broadcast %11 : vector<1x128xf32> to vector<8x128xf32>
    %167 = arith.addf %165, %166 : vector<8x128xf32>
    %168 = vector.extract_strided_slice %0 {offsets = [5, 0], sizes = [1, 128], strides = [1, 1]} : vector<7x128xf32> to vector<1x128xf32>
    %169 = vector.shape_cast %168 : vector<1x128xf32> to vector<128xf32>
    %170 = vector.shape_cast %169 : vector<128xf32> to vector<1x128xf32>
    %171 = vector.broadcast %170 : vector<1x128xf32> to vector<8x128xf32>
    %172 = arith.addf %129, %171 : vector<8x128xf32>
    %cst_70 = arith.constant dense<0.000000e+00> : vector<8x384xf32>
    %173 = tpu.matmul %167, %2, %cst_70 {dimension_numbers = #tpu.dot_dimension_numbers<[1], [0], [0], [1], [0, 0, 1, 1], [], []>} : vector<8x128xf32>, vector<128x384xf32>, vector<8x384xf32> -> vector<8x384xf32>
    %174 = vector.broadcast %3 : vector<1x384xf32> to vector<8x384xf32>
    %175 = arith.addf %173, %174 : vector<8x384xf32>
    %cst_71 = arith.constant dense<0.000000e+00> : vector<8x384xf32>
    %176 = tpu.matmul %172, %4, %cst_71 {dimension_numbers = #tpu.dot_dimension_numbers<[1], [0], [0], [1], [0, 0, 1, 1], [], []>} : vector<8x128xf32>, vector<128x384xf32>, vector<8x384xf32> -> vector<8x384xf32>
    %177 = vector.broadcast %5 : vector<1x384xf32> to vector<8x384xf32>
    %178 = arith.addf %176, %177 : vector<8x384xf32>
    %179 = vector.extract_strided_slice %175 {offsets = [0, 0], sizes = [8, 128], strides = [1, 1]} : vector<8x384xf32> to vector<8x128xf32>
    %180 = vector.extract_strided_slice %178 {offsets = [0, 0], sizes = [8, 128], strides = [1, 1]} : vector<8x384xf32> to vector<8x128xf32>
    %181 = arith.addf %179, %180 : vector<8x128xf32>
    %182 = arith.negf %181 : vector<8x128xf32>
    %183 = math.exp %182 : vector<8x128xf32>
    %cst_72 = arith.constant 1.000000e+00 : f32
    %184 = vector.broadcast %cst_72 : f32 to vector<8x128xf32>
    %185 = arith.addf %184, %183 : vector<8x128xf32>
    %186 = arith.divf %184, %185 : vector<8x128xf32>
    %187 = vector.extract_strided_slice %175 {offsets = [0, 128], sizes = [8, 128], strides = [1, 1]} : vector<8x384xf32> to vector<8x128xf32>
    %188 = vector.extract_strided_slice %178 {offsets = [0, 128], sizes = [8, 128], strides = [1, 1]} : vector<8x384xf32> to vector<8x128xf32>
    %189 = arith.addf %187, %188 : vector<8x128xf32>
    %190 = arith.negf %189 : vector<8x128xf32>
    %191 = math.exp %190 : vector<8x128xf32>
    %cst_73 = arith.constant 1.000000e+00 : f32
    %192 = vector.broadcast %cst_73 : f32 to vector<8x128xf32>
    %193 = arith.addf %192, %191 : vector<8x128xf32>
    %194 = arith.divf %192, %193 : vector<8x128xf32>
    %195 = vector.extract_strided_slice %175 {offsets = [0, 256], sizes = [8, 128], strides = [1, 1]} : vector<8x384xf32> to vector<8x128xf32>
    %196 = vector.extract_strided_slice %178 {offsets = [0, 256], sizes = [8, 128], strides = [1, 1]} : vector<8x384xf32> to vector<8x128xf32>
    %197 = arith.mulf %186, %196 : vector<8x128xf32>
    %198 = arith.addf %195, %197 : vector<8x128xf32>
    %199 = math.tanh %198 : vector<8x128xf32>
    %cst_74 = arith.constant 1.000000e+00 : f32
    %200 = vector.broadcast %cst_74 : f32 to vector<8x128xf32>
    %201 = arith.subf %200, %194 : vector<8x128xf32>
    %202 = arith.mulf %201, %199 : vector<8x128xf32>
    %203 = arith.mulf %194, %172 : vector<8x128xf32>
    %204 = arith.addf %202, %203 : vector<8x128xf32>
    %cst_75 = arith.constant dense<0.000000e+00> : vector<8x256xf32>
    %205 = tpu.matmul %204, %8, %cst_75 {dimension_numbers = #tpu.dot_dimension_numbers<[1], [0], [0], [1], [0, 0, 1, 1], [], []>} : vector<8x128xf32>, vector<128x256xf32>, vector<8x256xf32> -> vector<8x256xf32>
    %206 = vector.broadcast %9 : vector<1x256xf32> to vector<8x256xf32>
    %207 = arith.addf %205, %206 : vector<8x256xf32>
    %c6 = arith.constant 6 : index
    %c0_76 = arith.constant 0 : index
    %c0_77 = arith.constant 0 : index
    %208 = vector.load %arg19[%c6, %c0_76, %c0_77] : memref<7x8x256xf32, #tpu.memory_space<vmem>>, vector<1x8x256xf32>
    %209 = vector.shape_cast %208 : vector<1x8x256xf32> to vector<8x256xf32>
    %210 = vector.shape_cast %207 : vector<8x256xf32> to vector<1x8x256xf32>
    tpu.vector_store %arg19[%c6, %c0_76, %c0_77], %210 {strides = array<i32>} : memref<7x8x256xf32, #tpu.memory_space<vmem>>, vector<1x8x256xf32>,
    %c0_78 = arith.constant 0 : index
    %c0_79 = arith.constant 0 : index
    %c0_80 = arith.constant 0 : index
    %211 = vector.load %arg19[%c0_78, %c0_79, %c0_80] : memref<7x8x256xf32, #tpu.memory_space<vmem>>, vector<7x8x256xf32>
    %212 = vector.extract_strided_slice %1 {offsets = [2, 0, 0], sizes = [1, 7, 256], strides = [1, 1, 1]} : vector<3x7x256xf32> to vector<1x7x256xf32>
    %213 = vector.shape_cast %212 : vector<1x7x256xf32> to vector<7x256xf32>
    %214 = vector.shape_cast %213 : vector<7x256xf32> to vector<7x1x256xf32>
    %215 = vector.broadcast %214 : vector<7x1x256xf32> to vector<7x8x256xf32>
    %216 = arith.addf %211, %215 : vector<7x8x256xf32>
    %217 = vector.extract_strided_slice %216 {offsets = [0, 0, 0], sizes = [7, 8, 128], strides = [1, 1, 1]} : vector<7x8x256xf32> to vector<7x8x128xf32>
    %218 = vector.extract_strided_slice %216 {offsets = [0, 0, 128], sizes = [7, 8, 128], strides = [1, 1, 1]} : vector<7x8x256xf32> to vector<7x8x128xf32>
    %cst_81 = arith.constant dense<0.000000e+00> : vector<8x128xf32>
    %219 = tpu.matmul %204, %6, %cst_81 {dimension_numbers = #tpu.dot_dimension_numbers<[1], [0], [0], [1], [0, 0, 1, 1], [], []>} : vector<8x128xf32>, vector<128x128xf32>, vector<8x128xf32> -> vector<8x128xf32>
    %220 = vector.broadcast %7 : vector<1x128xf32> to vector<8x128xf32>
    %221 = arith.addf %219, %220 : vector<8x128xf32>
    %cst_82 = arith.constant 0.353553385 : f32
    %222 = vector.broadcast %cst_82 : f32 to vector<8x128xf32>
    %223 = arith.mulf %221, %222 : vector<8x128xf32>
    %224 = vector.shape_cast %223 : vector<8x128xf32> to vector<1x8x128xf32>
    %225 = vector.broadcast %224 : vector<1x8x128xf32> to vector<7x8x128xf32>
    %226 = arith.mulf %225, %217 : vector<7x8x128xf32>
    %227 = vector.shape_cast %226 : vector<7x8x128xf32> to vector<56x128xf32>
    %cst_83 = arith.constant dense<0.000000e+00> : vector<56x128xf32>
    %228 = tpu.matmul %227, %12, %cst_83 {dimension_numbers = #tpu.dot_dimension_numbers<[1], [0], [0], [1], [0, 0, 1, 1], [], []>} : vector<56x128xf32>, vector<128x128xf32>, vector<56x128xf32> -> vector<56x128xf32>
    %229 = vector.shape_cast %228 : vector<56x128xf32> to vector<7x8x128xf32>
    %cst_84 = arith.constant dense<0xFF800000> : vector<8x128xf32>
    %230 = vector.multi_reduction <maximumf>, %229, %cst_84 [0] : vector<7x8x128xf32> to vector<8x128xf32>
    %231 = vector.shape_cast %230 : vector<8x128xf32> to vector<1x8x128xf32>
    %232 = vector.broadcast %231 : vector<1x8x128xf32> to vector<7x8x128xf32>
    %233 = arith.subf %229, %232 : vector<7x8x128xf32>
    %234 = math.exp %233 : vector<7x8x128xf32>
    %cst_85 = arith.constant dense<0.000000e+00> : vector<8x128xf32>
    %235 = vector.multi_reduction <add>, %234, %cst_85 [0] : vector<7x8x128xf32> to vector<8x128xf32>
    %236 = arith.mulf %234, %218 : vector<7x8x128xf32>
    %cst_86 = arith.constant dense<0.000000e+00> : vector<8x128xf32>
    %237 = vector.multi_reduction <add>, %236, %cst_86 [0] : vector<7x8x128xf32> to vector<8x128xf32>
    %238 = tpu.reciprocal %235 {approx = true} : vector<8x128xf32> -> vector<8x128xf32>
    %239 = arith.mulf %237, %238 : vector<8x128xf32>
    %cst_87 = arith.constant dense<0.000000e+00> : vector<8x128xf32>
    %240 = tpu.matmul %239, %10, %cst_87 {dimension_numbers = #tpu.dot_dimension_numbers<[1], [0], [0], [1], [0, 0, 1, 1], [], []>} : vector<8x128xf32>, vector<128x128xf32>, vector<8x128xf32> -> vector<8x128xf32>
    %241 = vector.broadcast %11 : vector<1x128xf32> to vector<8x128xf32>
    %242 = arith.addf %240, %241 : vector<8x128xf32>
    %243 = tpu.concatenate %20, %92, %167, %242 in 1 : vector<8x128xf32>, vector<8x128xf32>, vector<8x128xf32>, vector<8x128xf32> -> vector<8x512xf32>
    %c0_88 = arith.constant 0 : index
    %c0_89 = arith.constant 0 : index
    %244 = vector.load %arg16[%c0_88, %c0_89] : memref<512x256xf32, #tpu.memory_space<vmem>>, vector<512x256xf32>
    %cst_90 = arith.constant dense<0.000000e+00> : vector<8x256xf32>
    %245 = tpu.matmul %243, %244, %cst_90 {dimension_numbers = #tpu.dot_dimension_numbers<[1], [0], [0], [1], [0, 0, 1, 1], [], []>} : vector<8x512xf32>, vector<512x256xf32>, vector<8x256xf32> -> vector<8x256xf32>
    %c0_91 = arith.constant 0 : index
    %c0_92 = arith.constant 0 : index
    %246 = vector.load %arg17[%c0_91, %c0_92] : memref<1x256xf32, #tpu.memory_space<vmem>>, vector<1x256xf32>
    %247 = vector.broadcast %246 : vector<1x256xf32> to vector<8x256xf32>
    %248 = arith.addf %245, %247 : vector<8x256xf32>
    %c0_93 = arith.constant 0 : index
    %c0_94 = arith.constant 0 : index
    %249 = vector.load %arg18[%c0_93, %c0_94] : memref<8x256xf32, #tpu.memory_space<vmem>>, vector<8x256xf32>
    tpu.vector_store %arg18[%c0_93, %c0_94], %248 {strides = array<i32>} : memref<8x256xf32, #tpu.memory_space<vmem>>, vector<8x256xf32>,
    return
  }
  func.func @transform_0(%arg0: i32) -> (i32, i32, i32) {
    %c0_i32 = arith.constant 0 : i32
    %c0_i32_0 = arith.constant 0 : i32
    %c0_i32_1 = arith.constant 0 : i32
    return %c0_i32, %arg0, %c0_i32_0 : i32, i32, i32
  }
  func.func @transform_1(%arg0: i32) -> (i32, i32) {
    %c0_i32 = arith.constant 0 : i32
    %c0_i32_0 = arith.constant 0 : i32
    return %arg0, %c0_i32 : i32, i32
  }
  func.func @transform_2(%arg0: i32) -> (i32, i32) {
    %c0_i32 = arith.constant 0 : i32
    %c0_i32_0 = arith.constant 0 : i32
    %c0_i32_1 = arith.constant 0 : i32
    return %c0_i32, %c0_i32_0 : i32, i32
  }
  func.func @transform_3(%arg0: i32) -> (i32, i32, i32) {
    %c0_i32 = arith.constant 0 : i32
    %c0_i32_0 = arith.constant 0 : i32
    %c0_i32_1 = arith.constant 0 : i32
    %c0_i32_2 = arith.constant 0 : i32
    return %c0_i32, %c0_i32_0, %c0_i32_1 : i32, i32, i32
  }
  func.func @transform_4(%arg0: i32) -> (i32, i32) {
    %c0_i32 = arith.constant 0 : i32
    %c0_i32_0 = arith.constant 0 : i32
    %c0_i32_1 = arith.constant 0 : i32
    return %c0_i32, %c0_i32_0 : i32, i32
  }
  func.func @transform_5(%arg0: i32) -> (i32, i32) {
    %c0_i32 = arith.constant 0 : i32
    %c0_i32_0 = arith.constant 0 : i32
    %c0_i32_1 = arith.constant 0 : i32
    return %c0_i32, %c0_i32_0 : i32, i32
  }
  func.func @transform_6(%arg0: i32) -> (i32, i32) {
    %c0_i32 = arith.constant 0 : i32
    %c0_i32_0 = arith.constant 0 : i32
    %c0_i32_1 = arith.constant 0 : i32
    return %c0_i32, %c0_i32_0 : i32, i32
  }
  func.func @transform_7(%arg0: i32) -> (i32, i32) {
    %c0_i32 = arith.constant 0 : i32
    %c0_i32_0 = arith.constant 0 : i32
    %c0_i32_1 = arith.constant 0 : i32
    return %c0_i32, %c0_i32_0 : i32, i32
  }
  func.func @transform_8(%arg0: i32) -> (i32, i32) {
    %c0_i32 = arith.constant 0 : i32
    %c0_i32_0 = arith.constant 0 : i32
    %c0_i32_1 = arith.constant 0 : i32
    return %c0_i32, %c0_i32_0 : i32, i32
  }
  func.func @transform_9(%arg0: i32) -> (i32, i32) {
    %c0_i32 = arith.constant 0 : i32
    %c0_i32_0 = arith.constant 0 : i32
    %c0_i32_1 = arith.constant 0 : i32
    return %c0_i32, %c0_i32_0 : i32, i32
  }
  func.func @transform_10(%arg0: i32) -> (i32, i32) {
    %c0_i32 = arith.constant 0 : i32
    %c0_i32_0 = arith.constant 0 : i32
    %c0_i32_1 = arith.constant 0 : i32
    return %c0_i32, %c0_i32_0 : i32, i32
  }
  func.func @transform_11(%arg0: i32) -> (i32, i32) {
    %c0_i32 = arith.constant 0 : i32
    %c0_i32_0 = arith.constant 0 : i32
    %c0_i32_1 = arith.constant 0 : i32
    return %c0_i32, %c0_i32_0 : i32, i32
  }
  func.func @transform_12(%arg0: i32) -> (i32, i32) {
    %c0_i32 = arith.constant 0 : i32
    %c0_i32_0 = arith.constant 0 : i32
    %c0_i32_1 = arith.constant 0 : i32
    return %c0_i32, %c0_i32_0 : i32, i32
  }
  func.func @transform_13(%arg0: i32) -> (i32, i32) {
    %c0_i32 = arith.constant 0 : i32
    %c0_i32_0 = arith.constant 0 : i32
    %c0_i32_1 = arith.constant 0 : i32
    return %c0_i32, %c0_i32_0 : i32, i32
  }
  func.func @transform_14(%arg0: i32) -> (i32, i32) {
    %c0_i32 = arith.constant 0 : i32
    %c0_i32_0 = arith.constant 0 : i32
    %c0_i32_1 = arith.constant 0 : i32
    return %c0_i32, %c0_i32_0 : i32, i32
  }
  func.func @transform_15(%arg0: i32) -> (i32, i32) {
    %c0_i32 = arith.constant 0 : i32
    %c0_i32_0 = arith.constant 0 : i32
    %c0_i32_1 = arith.constant 0 : i32
    return %c0_i32, %c0_i32_0 : i32, i32
  }
  func.func @transform_16(%arg0: i32) -> (i32, i32) {
    %c0_i32 = arith.constant 0 : i32
    %c0_i32_0 = arith.constant 0 : i32
    %c0_i32_1 = arith.constant 0 : i32
    return %c0_i32, %c0_i32_0 : i32, i32
  }
  func.func @transform_17(%arg0: i32) -> (i32, i32) {
    %c0_i32 = arith.constant 0 : i32
    %c0_i32_0 = arith.constant 0 : i32
    return %arg0, %c0_i32 : i32, i32
  }
}

</mosaic_0001>

<bundles_post_ra>
// kernel: tpu_custom_call.1
= control target key start
LH: loop header
LB: loop body
LE: loop exit
PB: predicated region body
PF: predicated region fallthrough
CT: control target
= control target key end

     0   :  { %s6311_s0 = inlined_call_operand.hbm [shape: f32[4,8,128], index: 0, kind: input, shape index: {}]   ;;  %s6312_s1 = inlined_call_operand.hbm [shape: f32[8,128], index: 1, kind: input, shape index: {}]   ;;  %s6313_s2 = inlined_call_operand.hbm [shape: f32[7,128], index: 2, kind: input, shape index: {}]   ;;  %s6314_s3 = inlined_call_operand.hbm [shape: f32[3,7,256], index: 3, kind: input, shape index: {}]   ;;  %s6315_s4 = inlined_call_operand.hbm [shape: f32[128,384], index: 4, kind: input, shape index: {}]   ;;  %s6316_s5 = inlined_call_operand.vmem [shape: f32[1,384], index: 5, kind: input, shape index: {}]   ;;  %s6317_s6 = inlined_call_operand.hbm [shape: f32[128,384], index: 6, kind: input, shape index: {}]   ;;  %s6318_s7 = inlined_call_operand.vmem [shape: f32[1,384], index: 7, kind: input, shape index: {}]   ;;  %s6319_s8 = inlined_call_operand.hbm [shape: f32[128,128], index: 8, kind: input, shape index: {}]   ;;  %s6320_s9 = inlined_call_operand.vmem [shape: f32[1,128], index: 9, kind: input, shape index: {}]   ;;  %s6321_s10 = inlined_call_operand.hbm [shape: f32[128,256], index: 10, kind: input, shape index: {}]   ;;  %s6322_s11 = inlined_call_operand.vmem [shape: f32[1,256], index: 11, kind: input, shape index: {}]   ;;  %s6323_s12 = inlined_call_operand.hbm [shape: f32[128,128], index: 12, kind: input, shape index: {}]   ;;  %s6324_s13 = inlined_call_operand.vmem [shape: f32[1,128], index: 13, kind: input, shape index: {}]   ;;  %s6325_s14 = inlined_call_operand.hbm [shape: f32[128,128], index: 14, kind: input, shape index: {}]   ;;  %s6326_s15 = inlined_call_operand.hbm [shape: f32[512,256], index: 15, kind: input, shape index: {}]   ;;  %s6327_s16 = inlined_call_operand.vmem [shape: f32[1,256], index: 16, kind: input, shape index: {}]   ;;  %s6328_s17 = inlined_call_operand.hbm [shape: f32[8,256], index: 17, kind: output, shape index: {}]  }
   0x1   :  { %6503 = sst [smem:[#allocation190_spill]] %s6311_s0 }
   0x2   :  { %6504 = sst [smem:[#allocation191_spill]] %s6312_s1 }
   0x3   :  { %22 = vsyncpa [#allocation4], 0 }
   0x4   :  { %23 = vsyncpa [#allocation7], 0 }
   0x5   :  { %24 = vsyncpa [#allocation10], 0 }
   0x6   :  { %25 = vsyncpa [#allocation13], 0 }
   0x7   :  { %26 = vsyncpa [#allocation16], 0 }
   0x8   :  { %27 = vsyncpa [#allocation19], 0 }
   0x9   :  { %28 = vsyncpa [#allocation5], 0  ;;  %s4610_s24 = smov [#allocation6]   ;;  %s4611_s26 = smov [#allocation9]  }
   0xa   :  { %s47_s25 = sshll.u32 %s4610_s24, 4  ;;  %s66_s27 = sshll.u32 %s4611_s26, 4  ;;  %s48_s25 = int_to_ptr.vmem [resolvable:$true] %s47_s25  ;;  %s67_s27 = int_to_ptr.vmem [resolvable:$true] %s66_s27 }
   0xb   :  { %s4364_s28 = scalar_lea.vmem %s48_s25, 128  ;;  %p4369_p1 = scmp.lt.s32.totalorder %s48_s25, %s48_s25 }
   0xc   :  { %p4365_p0 = scmp.ne.s32.totalorder %s48_s25, %s4364_s28  ;;  %p4370_p2 = scmp.lt.s32.totalorder %s4364_s28, %s4364_s28 }
   0xe   :  { %p4371_p3 = por %p4370_p2, %p4369_p1 }
  0x10   :  { %p4372_p4 = pnand %p4371_p3, %p4365_p0 }
  0x12   :  { %4375 = shalt.err (!%p4372_p4)
}
  0x13   :  { %s6505_s30 = sld [smem:[#allocation191_spill]]  ;;  %s4384_s18 = scalar_lea.vmem %s67_s27, 768 }
  0x14   :  { %p4385_p5 = scmp.ne.s32.totalorder %s67_s27, %s4384_s18  ;;  %p4389_p6 = scmp.lt.s32.totalorder %s67_s27, %s67_s27 }
  0x15   :  { %p4390_p7 = scmp.lt.s32.totalorder %s4384_s18, %s4384_s18 }
  0x17   :  { %p4391_p8 = por %p4390_p7, %p4389_p6 }
  0x19   :  { %50 = dma.hbm_to_vmem [thread:$0]  %s6505_s30, 128, %s48_s25, [#allocation7]  }
  0x1a   :  { %p4392_p9 = pnand %p4391_p8, %p4385_p5 }
  0x1c   :  { %4395 = shalt.err (!%p4392_p9)
}
  0x1d   :  { %s4612_s19 = smov 256   ;;  %s4613_s1 = smov 16  }
  0x1e   :  { %72 = dma.hbm_to_vmem [thread:$0]  %s6314_s3, 768, %s67_s27, [#allocation10], %s4612_s19, %s4612_s19, %s4613_s1  }
  0x1f   :  { %s4614_s22 = smov [#allocation12]   ;;  %s4615_s24 = smov [#allocation15]  }
  0x20   :  { %s92_s23 = sshll.u32 %s4614_s22, 4  ;;  %s120_s25 = sshll.u32 %s4615_s24, 4  ;;  %s93_s23 = int_to_ptr.vmem [resolvable:$true] %s92_s23  ;;  %s121_s25 = int_to_ptr.vmem [resolvable:$true] %s120_s25 }
  0x21   :  { %s4404_s26 = scalar_lea.vmem %s93_s23, 6144  ;;  %p4409_p11 = scmp.lt.s32.totalorder %s93_s23, %s93_s23 }
  0x22   :  { %p4405_p10 = scmp.ne.s32.totalorder %s93_s23, %s4404_s26  ;;  %p4410_p12 = scmp.lt.s32.totalorder %s4404_s26, %s4404_s26 }
  0x24   :  { %p4411_p13 = por %p4410_p12, %p4409_p11 }
  0x26   :  { %p4412_p0 = pnand %p4411_p13, %p4405_p10 }
  0x28   :  { %4415 = shalt.err (!%p4412_p0)
}
  0x29   :  { %s4616_s28 = smov 384   ;;  %s4617_s29 = smov 24  }
  0x2a   :  { %98 = dma.hbm_to_vmem [thread:$0]  %s6317_s6, 6144, %s93_s23, [#allocation13], %s4616_s28, %s4616_s28, %s4617_s29  }
  0x2b   :  { %s4424_s27 = scalar_lea.vmem %s121_s25, 4096  ;;  %p4429_p2 = scmp.lt.s32.totalorder %s121_s25, %s121_s25 }
  0x2c   :  { %p4425_p1 = scmp.ne.s32.totalorder %s121_s25, %s4424_s27  ;;  %p4430_p3 = scmp.lt.s32.totalorder %s4424_s27, %s4424_s27 }
  0x2e   :  { %p4431_p4 = por %p4430_p3, %p4429_p2 }
  0x30   :  { %p4432_p5 = pnand %p4431_p4, %p4425_p1 }
  0x32   :  { %4435 = shalt.err (!%p4432_p5)
}
  0x33   :  { %126 = dma.hbm_to_vmem [thread:$0]  %s6321_s10, 4096, %s121_s25, [#allocation16], %s4612_s19, %s4612_s19, %s4613_s1  }
  0x34   :  { %s4618_s20 = smov [#allocation18]   ;;  %s4619_s22 = smov [#allocation3]  }
  0x35   :  { %s148_s21 = sshll.u32 %s4618_s20, 4  ;;  %s34_s24 = sshll.u32 %s4619_s22, 4  ;;  %s149_s21 = int_to_ptr.vmem [resolvable:$true] %s148_s21  ;;  %s35_s24 = int_to_ptr.vmem [resolvable:$true] %s34_s24 }
  0x36   :  { %s4444_s6 = scalar_lea.vmem %s149_s21, 2048  ;;  %p4449_p7 = scmp.lt.s32.totalorder %s149_s21, %s149_s21 }
  0x37   :  { %p4445_p6 = scmp.ne.s32.totalorder %s149_s21, %s4444_s6  ;;  %p4450_p8 = scmp.lt.s32.totalorder %s4444_s6, %s4444_s6 }
  0x39   :  { %p4451_p9 = por %p4450_p8, %p4449_p7 }
  0x3b   :  { %p4452_p10 = pnand %p4451_p9, %p4445_p6 }
  0x3d   :  { %4455 = shalt.err (!%p4452_p10)
}
  0x3e   :  { %s4620_s23 = smov 128   ;;  %s4621_s26 = smov 8  }
  0x3f   :  { %154 = dma.hbm_to_vmem [thread:$0]  %s6325_s14, 2048, %s149_s21, [#allocation19], %s4620_s23, %s4620_s23, %s4621_s26  }
  0x40   :  { %s4464_s25 = scalar_lea.vmem %s35_s24, 512  ;;  %p4469_p12 = scmp.lt.s32.totalorder %s35_s24, %s35_s24 }
  0x41   :  { %p4465_p11 = scmp.ne.s32.totalorder %s35_s24, %s4464_s25  ;;  %p4470_p13 = scmp.lt.s32.totalorder %s4464_s25, %s4464_s25 }
  0x43   :  { %p4471_p0 = por %p4470_p13, %p4469_p12 }
  0x45   :  { %p4472_p1 = pnand %p4471_p0, %p4465_p11 }
  0x47   :  { %4475 = shalt.err (!%p4472_p1)
}
  0x48   :  { %s6506_s30 = sld [smem:[#allocation190_spill]]  ;;  %s4622_s18 = smov [#allocation8]  }
  0x49   :  { %s57_s20 = sshll.u32 %s4622_s18, 4  ;;  %s4623_s22 = smov [#allocation11]   ;;  %s58_s20 = int_to_ptr.vmem [resolvable:$true] %s57_s20 }
  0x4a   :  { %s78_s6 = sshll.u32 %s4623_s22, 4  ;;  %s4484_s14 = scalar_lea.vmem %s58_s20, 128  ;;  %s79_s6 = int_to_ptr.vmem [resolvable:$true] %s78_s6 }
  0x4b   :  { %p4485_p2 = scmp.ne.s32.totalorder %s58_s20, %s4484_s14  ;;  %p4489_p3 = scmp.lt.s32.totalorder %s58_s20, %s58_s20 }
  0x4c   :  { %p4490_p4 = scmp.lt.s32.totalorder %s4484_s14, %s4484_s14 }
  0x4e   :  { %40 = dma.hbm_to_vmem [thread:$0]  %s6506_s30, 512, %s35_s24, [#allocation4], %s4620_s23, %s4620_s23, %s4621_s26  }
  0x4f   :  { %p4491_p5 = por %p4490_p4, %p4489_p3 }
  0x51   :  { %p4492_p6 = pnand %p4491_p5, %p4485_p2 }
  0x53   :  { %4495 = shalt.err (!%p4492_p6)
}
  0x54   :  { %60 = dma.hbm_to_vmem [thread:$0]  %s6313_s2, 128, %s58_s20, [#allocation7]  }
  0x55   :  { %s4504_s10 = scalar_lea.vmem %s79_s6, 6144  ;;  %p4509_p8 = scmp.lt.s32.totalorder %s79_s6, %s79_s6 }
  0x56   :  { %p4505_p7 = scmp.ne.s32.totalorder %s79_s6, %s4504_s10  ;;  %p4510_p9 = scmp.lt.s32.totalorder %s4504_s10, %s4504_s10 }
  0x58   :  { %p4511_p10 = por %p4510_p9, %p4509_p8 }
  0x5a   :  { %p4512_p11 = pnand %p4511_p10, %p4505_p7 }
  0x5c   :  { %4515 = shalt.err (!%p4512_p11)
}
  0x5d   :  { %84 = dma.hbm_to_vmem [thread:$0]  %s6315_s4, 6144, %s79_s6, [#allocation10], %s4616_s28, %s4616_s28, %s4617_s29  }
  0x5e   :  { %s4624_s3 = smov [#allocation14]   ;;  %s4625_s30 = smov [#allocation17]  }
  0x5f   :  { %s106_s27 = sshll.u32 %s4624_s3, 4  ;;  %s134_s18 = sshll.u32 %s4625_s30, 4  ;;  %s107_s27 = int_to_ptr.vmem [resolvable:$true] %s106_s27  ;;  %s135_s18 = int_to_ptr.vmem [resolvable:$true] %s134_s18 }
  0x60   :  { %s4524_s2 = scalar_lea.vmem %s107_s27, 2048  ;;  %p4529_p13 = scmp.lt.s32.totalorder %s107_s27, %s107_s27 }
  0x61   :  { %p4525_p12 = scmp.ne.s32.totalorder %s107_s27, %s4524_s2  ;;  %p4530_p0 = scmp.lt.s32.totalorder %s4524_s2, %s4524_s2 }
  0x63   :  { %p4531_p1 = por %p4530_p0, %p4529_p13 }
  0x65   :  { %p4532_p2 = pnand %p4531_p1, %p4525_p12 }
  0x67   :  { %4535 = shalt.err (!%p4532_p2)
}
  0x68   :  { %112 = dma.hbm_to_vmem [thread:$0]  %s6319_s8, 2048, %s107_s27, [#allocation13], %s4620_s23, %s4620_s23, %s4621_s26  }
  0x69   :  { %s4544_s4 = scalar_lea.vmem %s135_s18, 2048  ;;  %p4549_p4 = scmp.lt.s32.totalorder %s135_s18, %s135_s18 }
  0x6a   :  { %p4545_p3 = scmp.ne.s32.totalorder %s135_s18, %s4544_s4  ;;  %p4550_p5 = scmp.lt.s32.totalorder %s4544_s4, %s4544_s4 }
  0x6c   :  { %p4551_p6 = por %p4550_p5, %p4549_p4 }
  0x6e   :  { %p4552_p7 = pnand %p4551_p6, %p4545_p3 }
  0x70   :  { %4555 = shalt.err (!%p4552_p7)
}
  0x71   :  { %140 = dma.hbm_to_vmem [thread:$0]  %s6323_s12, 2048, %s135_s18, [#allocation16], %s4620_s23, %s4620_s23, %s4621_s26  }
  0x72   :  { %s4626_s6 = smov [#allocation20]  }
  0x73   :  { %s160_s14 = sshll.u32 %s4626_s6, 4  ;;  %s161_s14 = int_to_ptr.vmem [resolvable:$true] %s160_s14 }
  0x74   :  { %s4564_s21 = scalar_lea.vmem %s161_s14, 16384  ;;  %p4569_p9 = scmp.lt.s32.totalorder %s161_s14, %s161_s14 }
  0x75   :  { %p4565_p8 = scmp.ne.s32.totalorder %s161_s14, %s4564_s21  ;;  %p4570_p10 = scmp.lt.s32.totalorder %s4564_s21, %s4564_s21 }
  0x77   :  { %p4571_p11 = por %p4570_p10, %p4569_p9 }
  0x79   :  { %p4572_p12 = pnand %p4571_p11, %p4565_p8 }
  0x7b   :  { %4575 = shalt.err (!%p4572_p12)
}
  0x7c   :  { %166 = dma.hbm_to_vmem [thread:$0]  %s6326_s15, 16384, %s161_s14, [#allocation19], %s4612_s19, %s4612_s19, %s4613_s1  }
  0x7d   :  { %4596 = dma.done.wait [#allocation4], 512  }
  0x7e   :  { %4597 = vsyncadd [#allocation4], 4294966784 }
  0x7f   :  { %4598 = dma.done.wait [#allocation7], 256  }
  0x80   :  { %4599 = vsyncadd [#allocation7], 4294967040 }
  0x81   :  { %4600 = dma.done.wait [#allocation10], 6912  }
  0x82   :  { %4601 = vsyncadd [#allocation10], 4294960384 }
  0x83   :  { %4602 = dma.done.wait [#allocation13], 8192  }
  0x84   :  { %4603 = vsyncadd [#allocation13], 4294959104 }
  0x85   :  { %4604 = dma.done.wait [#allocation16], 6144  }
  0x86   :  { %4605 = vsyncadd [#allocation16], 4294961152 }
  0x87   :  { %4606 = dma.done.wait [#allocation19], 18432  }
  0x88   :  { %4607 = vsyncadd [#allocation19], 4294948864  ;;  %v6329_v0 = vmov 0.0   ;;  %v4783_v1 = vld [vmem:[#allocation15 + $0xf8] sm:$0xff]  ;;  %v255_v2 = vld [vmem:[#allocation11 + $0x170] sm:$0xff]  ;;  %vm4628_vm0 = vmmov 0  }
  0x89   :  { %583 = vmatprep.mubr.f32.mxu1 %v6329_v0  ;;  %469 = vmatprep.mubr.f32.mxu0 %v6329_v0  ;;  %v4785_v3 = vld [vmem:[#allocation15 + $0xf0] sm:$0xff]  ;;  %v254_v4 = vld [vmem:[#allocation11 + $0x168] sm:$0xff]  ;;  %v252_v6 = vld [vmem:[#allocation11 + $0x158] sm:$0xff]  ;;  %s4630_s18 = smov [#allocation21]  }
  0x8a   :  { %405 = vmatprep.subr.mxu0 %v4783_v1  ;;  %519 = vmatprep.subr.mxu1 %v255_v2  ;;  %v4788_v5 = vld [vmem:[#allocation15 + $0xe8] sm:$0xff]  ;;  %v4791_v7 = vld [vmem:[#allocation15 + $0xe0] sm:$0xff]  ;;  %v251_v8 = vld [vmem:[#allocation11 + $0x150] sm:$0xff]  ;;  %s3222_s2 = sshll.u32 %s4630_s18, 4  ;;  %s3223_s2 = int_to_ptr.vmem [resolvable:$true] %s3222_s2 }
  0x8b   :  { %406 = vmatpush1.msra.mxu0 %v4785_v3  ;;  %520 = vmatpush1.msra.mxu1 %v254_v4  ;;  %v4793_v9 = vld [vmem:[#allocation15 + $0xd8] sm:$0xff]  ;;  %v249_v10 = vld [vmem:[#allocation11 + $0x140] sm:$0xff]  ;;  %v4796_v11 = vld [vmem:[#allocation15 + $0xd0] sm:$0xff]  ;;  %p4581_p0 = scmp.lt.s32.totalorder %s3223_s2, %s3223_s2 }
  0x8c   :  { %407 = vmatprep.subr.mxu0 %v4788_v5  ;;  %521 = vmatprep.subr.mxu1 %v252_v6  ;;  %v248_v12 = vld [vmem:[#allocation11 + $0x138] sm:$0xff]  ;;  %v4799_v13 = vld [vmem:[#allocation15 + $0xc8] sm:$0xff]  ;;  %v4802_v15 = vld [vmem:[#allocation15 + $0xc0] sm:$0xff] }
  0x8d   :  { %408 = vmatpush1.msra.mxu0 %v4791_v7  ;;  %522 = vmatpush1.msra.mxu1 %v251_v8  ;;  %v246_v14 = vld [vmem:[#allocation11 + $0x128] sm:$0xff]  ;;  %v245_v16 = vld [vmem:[#allocation11 + $0x120] sm:$0xff]  ;;  %v4805_v17 = vld [vmem:[#allocation15 + $0xb8] sm:$0xff] }
  0x8e   :  { %409 = vmatprep.subr.mxu0 %v4793_v9  ;;  %523 = vmatprep.subr.mxu1 %v249_v10  ;;  %v243_v18 = vld [vmem:[#allocation11 + $0x110] sm:$0xff]  ;;  %v242_v20 = vld [vmem:[#allocation11 + $0x108] sm:$0xff]  ;;  %v240_v22 = vld [vmem:[#allocation11 + $0xf8] sm:$0xff] }
  0x8f   :  { %410 = vmatpush1.msra.mxu0 %v4796_v11  ;;  %524 = vmatpush1.msra.mxu1 %v248_v12  ;;  %v4808_v19 = vld [vmem:[#allocation15 + $0xb0] sm:$0xff]  ;;  %v4811_v21 = vld [vmem:[#allocation15 + $0xa8] sm:$0xff]  ;;  %v4814_v23 = vld [vmem:[#allocation15 + $0xa0] sm:$0xff] }
  0x90   :  { %411 = vmatprep.subr.mxu0 %v4799_v13  ;;  %525 = vmatprep.subr.mxu1 %v246_v14  ;;  %v239_v24 = vld [vmem:[#allocation11 + $0xf0] sm:$0xff]  ;;  %v4817_v25 = vld [vmem:[#allocation15 + $0x98] sm:$0xff]  ;;  %v237_v26 = vld [vmem:[#allocation11 + $0xe0] sm:$0xff] }
  0x91   :  { %412 = vmatpush1.msra.mxu0 %v4802_v15  ;;  %526 = vmatpush1.msra.mxu1 %v245_v16  ;;  %v4820_v27 = vld [vmem:[#allocation15 + $0x90] sm:$0xff]  ;;  %v236_v28 = vld [vmem:[#allocation11 + $0xd8] sm:$0xff]  ;;  %v4823_v29 = vld [vmem:[#allocation15 + $0x88] sm:$0xff] }
  0x92   :  { %413 = vmatprep.subr.mxu0 %v4805_v17  ;;  %527 = vmatprep.subr.mxu1 %v243_v18  ;;  %v234_v30 = vld [vmem:[#allocation11 + $0xc8] sm:$0xff]  ;;  %v4826_v31 = vld [vmem:[#allocation15 + $0x80] sm:$0xff]  ;;  %v4829_v33 = vld [vmem:[#allocation15 + $0x78] sm:$0xff] }
  0x93   :  { %414 = vmatpush1.msra.mxu0 %v4808_v19  ;;  %528 = vmatpush1.msra.mxu1 %v242_v20  ;;  %v233_v32 = vld [vmem:[#allocation11 + $0xc0] sm:$0xff]  ;;  %v231_v34 = vld [vmem:[#allocation11 + $0xb0] sm:$0xff]  ;;  %v230_v36 = vld [vmem:[#allocation11 + $0xa8] sm:$0xff] }
  0x94   :  { %415 = vmatprep.subr.mxu0 %v4811_v21  ;;  %529 = vmatprep.subr.mxu1 %v240_v22  ;;  %v4832_v35 = vld [vmem:[#allocation15 + $0x70] sm:$0xff]  ;;  %v4835_v37 = vld [vmem:[#allocation15 + $0x68] sm:$0xff]  ;;  %v228_v38 = vld [vmem:[#allocation11 + $0x98] sm:$0xff] }
  0x95   :  { %416 = vmatpush1.msra.mxu0 %v4814_v23  ;;  %530 = vmatpush1.msra.mxu1 %v239_v24  ;;  %v4838_v39 = vld [vmem:[#allocation15 + $0x60] sm:$0xff]  ;;  %v227_v40 = vld [vmem:[#allocation11 + $0x90] sm:$0xff]  ;;  %v4841_v41 = vld [vmem:[#allocation15 + $0x58] sm:$0xff] }
  0x96   :  { %417 = vmatprep.subr.mxu0 %v4817_v25  ;;  %531 = vmatprep.subr.mxu1 %v237_v26  ;;  %v225_v42 = vld [vmem:[#allocation11 + $0x80] sm:$0xff]  ;;  %v4844_v43 = vld [vmem:[#allocation15 + $0x50] sm:$0xff]  ;;  %v224_v44 = vld [vmem:[#allocation11 + $0x78] sm:$0xff] }
  0x97   :  { %418 = vmatpush1.msra.mxu0 %v4820_v27  ;;  %532 = vmatpush1.msra.mxu1 %v236_v28  ;;  %v4847_v45 = vld [vmem:[#allocation15 + $0x48] sm:$0xff]  ;;  %v4850_v47 = vld [vmem:[#allocation15 + $0x40] sm:$0xff]  ;;  %v4853_v49 = vld [vmem:[#allocation15 + $0x38] sm:$0xff] }
  0x98   :  { %419 = vmatprep.subr.mxu0 %v4823_v29  ;;  %533 = vmatprep.subr.mxu1 %v234_v30  ;;  %v222_v46 = vld [vmem:[#allocation11 + $0x68] sm:$0xff]  ;;  %v221_v48 = vld [vmem:[#allocation11 + $0x60] sm:$0xff]  ;;  %v219_v50 = vld [vmem:[#allocation11 + $0x50] sm:$0xff] }
  0x99   :  { %420 = vmatpush1.msra.mxu0 %v4826_v31  ;;  %534 = vmatpush1.msra.mxu1 %v233_v32  ;;  %v4856_v51 = vld [vmem:[#allocation15 + $0x30] sm:$0xff]  ;;  %v218_v52 = vld [vmem:[#allocation11 + $0x48] sm:$0xff]  ;;  %v216_v54 = vld [vmem:[#allocation11 + $0x38] sm:$0xff] }
  0x9a   :  { %421 = vmatprep.subr.mxu0 %v4829_v33  ;;  %535 = vmatprep.subr.mxu1 %v231_v34  ;;  %v4859_v53 = vld [vmem:[#allocation15 + $0x28] sm:$0xff]  ;;  %v4862_v55 = vld [vmem:[#allocation15 + $0x20] sm:$0xff]  ;;  %v215_v56 = vld [vmem:[#allocation11 + $0x30] sm:$0xff] }
  0x9b   :  { %422 = vmatpush1.msra.mxu0 %v4832_v35  ;;  %536 = vmatpush1.msra.mxu1 %v230_v36  ;;  %v4865_v57 = vld [vmem:[#allocation15 + $0x18] sm:$0xff]  ;;  %v213_v58 = vld [vmem:[#allocation11 + $0x20] sm:$0xff]  ;;  %v4868_v59 = vld [vmem:[#allocation15 + $0x10] sm:$0xff] }
  0x9c   :  { %423 = vmatprep.subr.mxu0 %v4835_v37  ;;  %537 = vmatprep.subr.mxu1 %v228_v38  ;;  %v212_v60 = vld [vmem:[#allocation11 + $0x18] sm:$0xff]  ;;  %v4871_v61 = vld [vmem:[#allocation15 + $0x8] sm:$0xff]  ;;  %v4874_v63 = vld [vmem:[#allocation15] sm:$0xff] }
  0x9d   :  { %424 = vmatpush1.msra.mxu0 %v4838_v39  ;;  %538 = vmatpush1.msra.mxu1 %v227_v40  ;;  %v210_v62 = vld [vmem:[#allocation11 + $0x8] sm:$0xff]  ;;  %v209_v2 = vld [vmem:[#allocation11] sm:$0xff]  ;;  %v304_v6 = vld [vmem:[#allocation12 + $0x170] sm:$0xff] }
  0x9e   :  { %425 = vmatprep.subr.mxu0 %v4841_v41  ;;  %539 = vmatprep.subr.mxu1 %v225_v42  ;;  %v4877_v4 = vld [vmem:[#allocation6] sm:$0xff]  ;;  %v256_v10 = vld [vmem:[#allocation11 + $0x178] sm:$0xff]  ;;  %v303_v12 = vld [vmem:[#allocation12 + $0x168] sm:$0xff] }
  0x9f   :  { %426 = vmatpush1.msra.mxu0 %v4844_v43  ;;  %540 = vmatpush1.msra.mxu1 %v224_v44  ;;  %v390_v8 = vld [vmem:[#allocation3] sm:$0xff]  ;;  %v301_v14 = vld [vmem:[#allocation12 + $0x158] sm:$0xff]  ;;  %v300_v18 = vld [vmem:[#allocation12 + $0x150] sm:$0xff] }
  0xa0   :  { %427 = vmatprep.subr.mxu0 %v4847_v45  ;;  %541 = vmatprep.subr.mxu1 %v222_v46  ;;  %v253_v16 = vld [vmem:[#allocation11 + $0x160] sm:$0xff]  ;;  %v250_v22 = vld [vmem:[#allocation11 + $0x148] sm:$0xff]  ;;  %v297_v24 = vld [vmem:[#allocation12 + $0x138] sm:$0xff] }
  0xa1   :  { %428 = vmatpush1.msra.mxu0 %v4850_v47  ;;  %542 = vmatpush1.msra.mxu1 %v221_v48  ;;  %v298_v20 = vld [vmem:[#allocation12 + $0x140] sm:$0xff]  ;;  %v295_v26 = vld [vmem:[#allocation12 + $0x128] sm:$0xff]  ;;  %v247_v28 = vld [vmem:[#allocation11 + $0x130] sm:$0xff] }
  0xa2   :  { %429 = vmatprep.subr.mxu0 %v4853_v49  ;;  %543 = vmatprep.subr.mxu1 %v219_v50  ;;  %v294_v30 = vld [vmem:[#allocation12 + $0x120] sm:$0xff]  ;;  %v292_v32 = vld [vmem:[#allocation12 + $0x110] sm:$0xff]  ;;  %v244_v34 = vld [vmem:[#allocation11 + $0x118] sm:$0xff] }
  0xa3   :  { %430 = vmatpush1.msra.mxu0 %v4856_v51  ;;  %544 = vmatpush1.msra.mxu1 %v218_v52  ;;  %v291_v36 = vld [vmem:[#allocation12 + $0x108] sm:$0xff]  ;;  %v289_v38 = vld [vmem:[#allocation12 + $0xf8] sm:$0xff]  ;;  %v241_v40 = vld [vmem:[#allocation11 + $0x100] sm:$0xff] }
  0xa4   :  { %431 = vmatprep.subr.mxu0 %v4859_v53  ;;  %545 = vmatprep.subr.mxu1 %v216_v54  ;;  %v288_v42 = vld [vmem:[#allocation12 + $0xf0] sm:$0xff]  ;;  %v286_v44 = vld [vmem:[#allocation12 + $0xe0] sm:$0xff]  ;;  %v238_v46 = vld [vmem:[#allocation11 + $0xe8] sm:$0xff] }
  0xa5   :  { %432 = vmatpush1.msra.mxu0 %v4862_v55  ;;  %546 = vmatpush1.msra.mxu1 %v215_v56  ;;  %v285_v48 = vld [vmem:[#allocation12 + $0xd8] sm:$0xff]  ;;  %v283_v50 = vld [vmem:[#allocation12 + $0xc8] sm:$0xff]  ;;  %v235_v52 = vld [vmem:[#allocation11 + $0xd0] sm:$0xff] }
  0xa6   :  { %433 = vmatprep.subr.mxu0 %v4865_v57  ;;  %547 = vmatprep.subr.mxu1 %v213_v58  ;;  %v282_v54 = vld [vmem:[#allocation12 + $0xc0] sm:$0xff]  ;;  %v280_v56 = vld [vmem:[#allocation12 + $0xb0] sm:$0xff]  ;;  %v232_v58 = vld [vmem:[#allocation11 + $0xb8] sm:$0xff] }
  0xa7   :  { %434 = vmatpush1.msra.mxu0 %v4868_v59  ;;  %548 = vmatpush1.msra.mxu1 %v212_v60  ;;  %v279_v60 = vld [vmem:[#allocation12 + $0xa8] sm:$0xff] }
  0xa8   :  { %435 = vmatprep.subr.mxu0 %v4871_v61  ;;  %549 = vmatprep.subr.mxu1 %v210_v62  ;;  %v277_v62 = vld [vmem:[#allocation12 + $0x98] sm:$0xff] }
  0xa9   :  { %436 = vmatpush1.msra.mxu0 %v4874_v63  ;;  %550 = vmatpush1.msra.mxu1 %v209_v2  ;;  %v229_v2 = vld [vmem:[#allocation11 + $0xa0] sm:$0xff] }
  0xaa   :  { %584 = vmatmul.mubr.f32.vlgmr.msra.gmra.mxu1 %v4877_v4  ;;  %3514 = vmatprep.subr.mxu0 %v6329_v0 }
  0xab   :  { %676 = vmatprep.subr.mxu1 %v304_v6  ;;  %470 = vmatmul.mubr.f32.vlgmr.msra.gmra.mxu0 %v390_v8  ;;  %v276_v6 = vld [vmem:[#allocation12 + $0x90] sm:$0xff]  ;;  %v274_v8 = vld [vmem:[#allocation12 + $0x80] sm:$0xff] }
  0xac   :  { %3515 = vmatpush3.msra.mxu0 %v256_v10  ;;  %677 = vmatpush1.msra.mxu1 %v303_v12  ;;  %v391_v10 = vld [vmem:[#allocation3 + $0x8] sm:$0xff] }
  0xad   :  { %3516 = vmatprep.subr.mxu0 %v6329_v0  ;;  %678 = vmatprep.subr.mxu1 %v301_v14  ;;  %v226_v12 = vld [vmem:[#allocation11 + $0x88] sm:$0xff]  ;;  %v273_v14 = vld [vmem:[#allocation12 + $0x78] sm:$0xff] }
  0xae   :  { %3517 = vmatpush3.msra.mxu0 %v253_v16  ;;  %679 = vmatpush1.msra.mxu1 %v300_v18  ;;  %v271_v16 = vld [vmem:[#allocation12 + $0x68] sm:$0xff]  ;;  %v223_v18 = vld [vmem:[#allocation11 + $0x70] sm:$0xff] }
  0xaf   :  { %3518 = vmatprep.subr.mxu0 %v6329_v0  ;;  %680 = vmatprep.subr.mxu1 %v298_v20  ;;  %v270_v20 = vld [vmem:[#allocation12 + $0x60] sm:$0xff] }
  0xb0   :  { %3519 = vmatpush3.msra.mxu0 %v250_v22  ;;  %681 = vmatpush1.msra.mxu1 %v297_v24  ;;  %v268_v22 = vld [vmem:[#allocation12 + $0x50] sm:$0xff] }
  0xb1   :  { %3520 = vmatprep.subr.mxu0 %v6329_v0  ;;  %682 = vmatprep.subr.mxu1 %v295_v26  ;;  %v392_v24 = vld [vmem:[#allocation3 + $0x10] sm:$0xff]  ;;  %v220_v26 = vld [vmem:[#allocation11 + $0x58] sm:$0xff] }
  0xb2   :  { %3521 = vmatpush3.msra.mxu0 %v247_v28  ;;  %683 = vmatpush1.msra.mxu1 %v294_v30  ;;  %v267_v28 = vld [vmem:[#allocation12 + $0x48] sm:$0xff]  ;;  %v265_v30 = vld [vmem:[#allocation12 + $0x38] sm:$0xff] }
  0xb3   :  { %3522 = vmatprep.subr.mxu0 %v6329_v0  ;;  %684 = vmatprep.subr.mxu1 %v292_v32  ;;  %v217_v32 = vld [vmem:[#allocation11 + $0x40] sm:$0xff] }
  0xb4   :  { %3523 = vmatpush3.msra.mxu0 %v244_v34  ;;  %685 = vmatpush1.msra.mxu1 %v291_v36  ;;  %v264_v34 = vld [vmem:[#allocation12 + $0x30] sm:$0xff]  ;;  %v262_v36 = vld [vmem:[#allocation12 + $0x20] sm:$0xff] }
  0xb5   :  { %3524 = vmatprep.subr.mxu0 %v6329_v0  ;;  %686 = vmatprep.subr.mxu1 %v289_v38  ;;  %v4898_v38 = vld [vmem:[#allocation3 + $0x18] sm:$0xff] }
  0xb6   :  { %3525 = vmatpush3.msra.mxu0 %v241_v40  ;;  %687 = vmatpush1.msra.mxu1 %v288_v42  ;;  %v214_v40 = vld [vmem:[#allocation11 + $0x28] sm:$0xff]  ;;  %v261_v42 = vld [vmem:[#allocation12 + $0x18] sm:$0xff] }
  0xb7   :  { %3526 = vmatprep.subr.mxu0 %v6329_v0  ;;  %688 = vmatprep.subr.mxu1 %v286_v44  ;;  %v259_v44 = vld [vmem:[#allocation12 + $0x8] sm:$0xff] }
  0xb8   :  { %3527 = vmatpush3.msra.mxu0 %v238_v46  ;;  %689 = vmatpush1.msra.mxu1 %v285_v48  ;;  %v211_v46 = vld [vmem:[#allocation11 + $0x10] sm:$0xff]  ;;  %v258_v48 = vld [vmem:[#allocation12] sm:$0xff] }
  0xb9   :  { %3528 = vmatprep.subr.mxu0 %v6329_v0  ;;  %690 = vmatprep.subr.mxu1 %v283_v50  ;;  %v305_v50 = vld [vmem:[#allocation12 + $0x178] sm:$0xff] }
  0xba   :  { %3529 = vmatpush3.msra.mxu0 %v235_v52  ;;  %691 = vmatpush1.msra.mxu1 %v282_v54  ;;  %v302_v52 = vld [vmem:[#allocation12 + $0x160] sm:$0xff]  ;;  %v299_v54 = vld [vmem:[#allocation12 + $0x148] sm:$0xff] }
  0xbb   :  { %3530 = vmatprep.subr.mxu0 %v6329_v0  ;;  %692 = vmatprep.subr.mxu1 %v280_v56  ;;  %v296_v56 = vld [vmem:[#allocation12 + $0x130] sm:$0xff] }
  0xbc   :  { %3531 = vmatpush3.msra.mxu0 %v232_v58  ;;  %693 = vmatpush1.msra.mxu1 %v279_v60  ;;  %v4096_v58 = vld [vmem:[#allocation9] ss:$8 sps:$4 sm:$0xff]  }
  0xbd   :  { %3532 = vmatprep.subr.mxu0 %v6329_v0  ;;  %694 = vmatprep.subr.mxu1 %v277_v62  ;;  %v4098_v62 = vld [vmem:[#allocation9 + $0x10] ss:$8 sps:$4 sm:$0xff]  }
  0xbe   :  { %3533 = vmatpush3.msra.mxu0 %v229_v2  ;;  %695 = vmatpush1.msra.mxu1 %v276_v6  ;;  %v4100_v2 = vld [vmem:[#allocation9 + $0x20] ss:$8 sps:$4 sm:$0xff]  }
  0xbf   :  { %475 = vmatprep.mubr.f32.mxu0 %v6329_v0  ;;  %3534 = vmatprep.subr.mxu0 %v6329_v0 }
  0xc0   :  { %696 = vmatprep.subr.mxu1 %v274_v8  ;;  %476 = vmatmul.mubr.f32.gmra.mxu0 %v391_v10 }
  0xc1   :  { %3535 = vmatpush3.msra.mxu0 %v226_v12  ;;  %697 = vmatpush1.msra.mxu1 %v273_v14  ;;  %v5034_v14 = vld [vmem:[%s6322_s11] sm:$0x3] }
  0xc2   :  { %3536 = vmatprep.subr.mxu0 %v6329_v0  ;;  %698 = vmatprep.subr.mxu1 %v271_v16 }
  0xc3   :  { %3537 = vmatpush3.msra.mxu0 %v223_v18  ;;  %699 = vmatpush1.msra.mxu1 %v270_v20 }
  0xc4   :  { %481 = vmatprep.mubr.f32.mxu0 %v6329_v0  ;;  %3538 = vmatprep.subr.mxu0 %v6329_v0 }
  0xc5   :  { %700 = vmatprep.subr.mxu1 %v268_v22  ;;  %482 = vmatmul.mubr.f32.gmra.mxu0 %v392_v24 }
  0xc6   :  { %3539 = vmatpush3.msra.mxu0 %v220_v26  ;;  %701 = vmatpush1.msra.mxu1 %v267_v28 }
  0xc7   :  { %3540 = vmatprep.subr.mxu0 %v6329_v0  ;;  %702 = vmatprep.subr.mxu1 %v265_v30 }
  0xc8   :  { %3541 = vmatpush3.msra.mxu0 %v217_v32  ;;  %703 = vmatpush1.msra.mxu1 %v264_v34 }
  0xc9   :  { %487 = vmatprep.mubr.f32.mxu0 %v6329_v0  ;;  %3542 = vmatprep.subr.mxu0 %v6329_v0 }
  0xca   :  { %704 = vmatprep.subr.mxu1 %v262_v36  ;;  %488 = vmatmul.mubr.f32.gmra.mxu0 %v4898_v38 }
  0xcb   :  { %3543 = vmatpush3.msra.mxu0 %v214_v40  ;;  %705 = vmatpush1.msra.mxu1 %v261_v42 }
  0xcc   :  { %3544 = vmatprep.subr.mxu0 %v6329_v0  ;;  %706 = vmatprep.subr.mxu1 %v259_v44 }
  0xcd   :  { %3545 = vmatpush3.msra.mxu0 %v211_v46  ;;  %707 = vmatpush1.msra.mxu1 %v258_v48 }
  0xce   :  { %740 = vmatprep.mubr.f32.mxu1 %v6329_v0  ;;  %3546 = vmatprep.mubr.msk.f32.mxu0 %vm4628_vm0, %v6329_v0 }
  0xcf   :  { %741 = vmatmul.mubr.f32.vlgmr.msra.gmra.mxu1 %v4898_v38  ;;  %3549 = vmatprep.subr.mxu0 %v6329_v0 }
  0xd0   :  { %3547 = vmatmul.mubr.f32.vlgmr.msra.gmra.mxu0 %v4877_v4  ;;  %838 = vmatprep.subr.mxu1 %v4783_v1  ;;  %v293_v1 = vld [vmem:[#allocation12 + $0x118] sm:$0xff] }
  0xd1   :  { %3550 = vmatpush3.msra.mxu0 %v305_v50  ;;  %3581 = vmatprep.mubr.msk.f32.mxu0 %vm4628_vm0, %v6329_v0 }
  0xd2   :  { %3551 = vmatprep.subr.mxu0 %v6329_v0  ;;  %839 = vmatpush1.msra.mxu1 %v4785_v3  ;;  %v290_v3 = vld [vmem:[#allocation12 + $0x100] sm:$0xff] }
  0xd3   :  { %3552 = vmatpush3.msra.mxu0 %v302_v52  ;;  %840 = vmatprep.subr.mxu1 %v4788_v5  ;;  %v287_v5 = vld [vmem:[#allocation12 + $0xe8] sm:$0xff] }
  0xd4   :  { %3553 = vmatprep.subr.mxu0 %v6329_v0  ;;  %841 = vmatpush1.msra.mxu1 %v4791_v7  ;;  %v284_v7 = vld [vmem:[#allocation12 + $0xd0] sm:$0xff] }
  0xd5   :  { %3554 = vmatpush3.msra.mxu0 %v299_v54  ;;  %842 = vmatprep.subr.mxu1 %v4793_v9  ;;  %v281_v9 = vld [vmem:[#allocation12 + $0xb8] sm:$0xff] }
  0xd6   :  { %3555 = vmatprep.subr.mxu0 %v6329_v0  ;;  %843 = vmatpush1.msra.mxu1 %v4796_v11  ;;  %v278_v11 = vld [vmem:[#allocation12 + $0xa0] sm:$0xff] }
  0xd7   :  { %3556 = vmatpush3.msra.mxu0 %v296_v56  ;;  %844 = vmatprep.subr.mxu1 %v4799_v13  ;;  %v4938_v13 = vld [vmem:[#allocation12 + $0x88] sm:$0xff] }
  0xd8   :  { %3557 = vmatprep.subr.mxu0 %v6329_v0  ;;  %845 = vmatpush1.msra.mxu1 %v4802_v15  ;;  %v4943_v15 = vld [vmem:[#allocation12 + $0x70] sm:$0xff] }
  0xd9   :  { %3558 = vmatpush3.msra.mxu0 %v293_v1  ;;  %846 = vmatprep.subr.mxu1 %v4805_v17  ;;  %v4949_v17 = vld [vmem:[#allocation12 + $0x58] sm:$0xff] }
  0xda   :  { %3559 = vmatprep.subr.mxu0 %v6329_v0  ;;  %847 = vmatpush1.msra.mxu1 %v4808_v19  ;;  %v4955_v19 = vld [vmem:[#allocation12 + $0x40] sm:$0xff] }
  0xdb   :  { %3560 = vmatpush3.msra.mxu0 %v290_v3  ;;  %848 = vmatprep.subr.mxu1 %v4811_v21  ;;  %v4961_v21 = vld [vmem:[#allocation12 + $0x28] sm:$0xff] }
  0xdc   :  { %3561 = vmatprep.subr.mxu0 %v6329_v0  ;;  %849 = vmatpush1.msra.mxu1 %v4814_v23  ;;  %v4967_v23 = vld [vmem:[#allocation12 + $0x10] sm:$0xff] }
  0xdd   :  { %3562 = vmatpush3.msra.mxu0 %v287_v5  ;;  %850 = vmatprep.subr.mxu1 %v4817_v25  ;;  %v4983_v25 = vld [vmem:[#allocation14 + $0x78] sm:$0xff] }
  0xde   :  { %3563 = vmatprep.subr.mxu0 %v6329_v0  ;;  %851 = vmatpush1.msra.mxu1 %v4820_v27  ;;  %v4985_v27 = vld [vmem:[#allocation14 + $0x70] sm:$0xff] }
  0xdf   :  { %3564 = vmatpush3.msra.mxu0 %v284_v7  ;;  %852 = vmatprep.subr.mxu1 %v4823_v29  ;;  %v4991_v29 = vld [vmem:[#allocation14 + $0x68] sm:$0xff] }
  0xe0   :  { %3565 = vmatprep.subr.mxu0 %v6329_v0  ;;  %853 = vmatpush1.msra.mxu1 %v4826_v31  ;;  %v4995_v31 = vld [vmem:[#allocation14 + $0x60] sm:$0xff] }
  0xe1   :  { %3566 = vmatpush3.msra.mxu0 %v281_v9  ;;  %854 = vmatprep.subr.mxu1 %v4829_v33  ;;  %v4999_v33 = vld [vmem:[#allocation14 + $0x58] sm:$0xff] }
  0xe2   :  { %3567 = vmatprep.subr.mxu0 %v6329_v0  ;;  %855 = vmatpush1.msra.mxu1 %v4832_v35  ;;  %v5003_v35 = vld [vmem:[#allocation14 + $0x50] sm:$0xff] }
  0xe3   :  { %3568 = vmatpush3.msra.mxu0 %v278_v11  ;;  %856 = vmatprep.subr.mxu1 %v4835_v37  ;;  %v5007_v37 = vld [vmem:[#allocation14 + $0x48] sm:$0xff] }
  0xe4   :  { %3569 = vmatprep.subr.mxu0 %v6329_v0  ;;  %857 = vmatpush1.msra.mxu1 %v4838_v39  ;;  %v315_v39 = vld [vmem:[#allocation14 + $0x40] sm:$0xff] }
  0xe5   :  { %3570 = vmatpush3.msra.mxu0 %v4938_v13  ;;  %858 = vmatprep.subr.mxu1 %v4841_v41  ;;  %v314_v41 = vld [vmem:[#allocation14 + $0x38] sm:$0xff] }
  0xe6   :  { %3571 = vmatprep.subr.mxu0 %v6329_v0  ;;  %859 = vmatpush1.msra.mxu1 %v4844_v43  ;;  %v313_v43 = vld [vmem:[#allocation14 + $0x30] sm:$0xff] }
  0xe7   :  { %3572 = vmatpush3.msra.mxu0 %v4943_v15  ;;  %860 = vmatprep.subr.mxu1 %v4847_v45  ;;  %v312_v45 = vld [vmem:[#allocation14 + $0x28] sm:$0xff] }
  0xe8   :  { %3573 = vmatprep.subr.mxu0 %v6329_v0  ;;  %861 = vmatpush1.msra.mxu1 %v4850_v47  ;;  %v311_v47 = vld [vmem:[#allocation14 + $0x20] sm:$0xff] }
  0xe9   :  { %3574 = vmatpush3.msra.mxu0 %v4949_v17  ;;  %862 = vmatprep.subr.mxu1 %v4853_v49  ;;  %v310_v49 = vld [vmem:[#allocation14 + $0x18] sm:$0xff] }
  0xea   :  { %3575 = vmatprep.subr.mxu0 %v6329_v0  ;;  %863 = vmatpush1.msra.mxu1 %v4856_v51  ;;  %v309_v51 = vld [vmem:[#allocation14 + $0x10] sm:$0xff] }
  0xeb   :  { %3576 = vmatpush3.msra.mxu0 %v4955_v19  ;;  %864 = vmatprep.subr.mxu1 %v4859_v53  ;;  %v308_v53 = vld [vmem:[#allocation14 + $0x8] sm:$0xff] }
  0xec   :  { %3577 = vmatprep.subr.mxu0 %v6329_v0  ;;  %865 = vmatpush1.msra.mxu1 %v4862_v55  ;;  %v307_v55 = vld [vmem:[#allocation14] sm:$0xff] }
  0xed   :  { %3578 = vmatpush3.msra.mxu0 %v4961_v21  ;;  %866 = vmatprep.subr.mxu1 %v4865_v57  ;;  %v395_v57 = vlaneseq }
  0xee   :  { %3579 = vmatprep.subr.mxu0 %v6329_v0  ;;  %867 = vmatpush1.msra.mxu1 %v4868_v59  ;;  %v4629_v59 = vmov 1966171168  }
  0xef   :  { %3580 = vmatpush3.msra.mxu0 %v4967_v23  ;;  %868 = vmatprep.subr.mxu1 %v4871_v61  ;;  %v927_v61 = vunpack.c.l.s4 %v4629_v59 }
  0xf0   :  { %3582 = vmatmul.mubr.f32.vlgmr.msra.gmra.mxu0 %v4898_v38  ;;  %3584 = vmatprep.subr.mxu0 %v6329_v0 }
  0xf1   :  { %869 = vmatpush1.msra.mxu1 %v4874_v63  ;;  %902 = vmatprep.mubr.f32.mxu1 %v6329_v0  ;;  %v5020_v63 = vshrl.u32 %v395_v57, 7  ;;  %v928_v4 = vunpack.c.0.s8 %v927_v61 }
  0xf2   :  { %3616 = vmatprep.mubr.msk.f32.mxu0 %vm4628_vm0, %v6329_v0  ;;  %3619 = vmatprep.subr.mxu1 %v6329_v0 }
  0xf3   :  { %3585 = vmatpush3.msra.mxu0 %v4983_v25  ;;  %6507 = vst [vmem:[#allocation29_spill] sm:$0xff] %v5020_v63  ;;  %v5023_v60 = vsub.s32 %v928_v4, %v5020_v63  ;;  %v5029_v12 = vsub.s32 1, %v5020_v63 }
  0xf4   :  { %3586 = vmatprep.subr.mxu0 %v6329_v0 }
  0xf5   :  { %3587 = vmatpush3.msra.mxu0 %v4985_v27  ;;  %6508 = vst [vmem:[#allocation30_spill] sm:$0xff] %v5023_v60  ;;  %v932_v6 = vrot.slane %v4096_v58, %v5023_v60  ;;  %v1710_v8 = vrot.slane %v4098_v62, %v5023_v60  ;;  %v2511_v10 = vrot.slane %v4100_v2, %v5023_v60  ;;  %v5121_v58 = vsub.s32 0, %v5020_v63  ;;  %v257_v2 = vld [vmem:[%s6316_s5] sm:$0x7] }
  0xf6   :  { %3588 = vmatprep.subr.mxu0 %v6329_v0  ;;  %v5047_v22 = vrot.slane %v5034_v14, %v5029_v12 }
  0xf7   :  { %3589 = vmatpush3.msra.mxu0 %v4991_v29  ;;  %v5037_v16 = vrot.slane %v932_v6, %v5023_v60  ;;  %v5040_v18 = vrot.slane %v1710_v8, %v5023_v60  ;;  %v5043_v20 = vrot.slane %v2511_v10, %v5023_v60  ;;  %v940_v44 = vcombine.high %v932_v6, %v932_v6 }
  0xf8   :  { %3590 = vmatprep.subr.mxu0 %v6329_v0  ;;  %6511 = vst [vmem:[#allocation33_spill] sm:$0xff] %v5047_v22  ;;  %v1718_v46 = vcombine.high %v1710_v8, %v1710_v8  ;;  %v2519_v48 = vcombine.high %v2511_v10, %v2511_v10  ;;  %6522 = vst [vmem:[#allocation44_spill] sm:$0xff] %v5121_v58  ;;  %v306_v8 = vld [vmem:[%s6318_s7] sm:$0x7] }
  0xf9   :  { %3591 = vmatpush3.msra.mxu0 %v4995_v31  ;;  %6509 = vst [vmem:[#allocation31_spill] sm:$0xff] %v5040_v18  ;;  %6510 = vst [vmem:[#allocation32_spill] sm:$0xff] %v5043_v20  ;;  %v971_v26 = vrot.slane %v5037_v16, %v5029_v12  ;;  %v1757_v28 = vrot.slane %v5040_v18, %v5029_v12  ;;  %v2559_v30 = vrot.slane %v5043_v20, %v5029_v12 }
  0xfa   :  { %3592 = vmatprep.subr.mxu0 %v6329_v0  ;;  %v5065_v50 = vrot.slane %v940_v44, %v5023_v60  ;;  %v5068_v52 = vrot.slane %v1718_v46, %v5023_v60  ;;  %v5071_v54 = vrot.slane %v2519_v48, %v5023_v60  ;;  %v5083_v9 = vcombine.high %v5037_v16, %v5037_v16 }
  0xfb   :  { %3593 = vmatpush3.msra.mxu0 %v4999_v33  ;;  %v5087_v11 = vcombine.high %v5040_v18, %v5040_v18  ;;  %v5145_v46 = vrot.slane %v257_v2, %v5121_v58 }
  0xfc   :  { %3594 = vmatprep.subr.mxu0 %v6329_v0  ;;  %6514 = vst [vmem:[#allocation36_spill] sm:$0xff] %v5068_v52  ;;  %6515 = vst [vmem:[#allocation37_spill] sm:$0xff] %v5071_v54  ;;  %v979_v1 = vrot.slane %v5065_v50, %v5029_v12  ;;  %v1765_v3 = vrot.slane %v5068_v52, %v5029_v12  ;;  %v2567_v5 = vrot.slane %v5071_v54, %v5029_v12 }
  0xfd   :  { %3595 = vmatpush3.msra.mxu0 %v5003_v35  ;;  %6516 = vst [vmem:[#allocation38_spill] sm:$0xff] %v5087_v11  ;;  %v5110_v59 = vcombine.high %v5065_v50, %v5065_v50  ;;  %v5114_v61 = vcombine.high %v5068_v52, %v5068_v52  ;;  %v5118_v4 = vcombine.high %v5071_v54, %v5071_v54 }
  0xfe   :  { %3596 = vmatprep.subr.mxu0 %v6329_v0 }
  0xff   :  { %3597 = vmatpush3.msra.mxu0 %v5007_v37  ;;  %6520 = vst [vmem:[#allocation42_spill] sm:$0xff] %v5114_v61  ;;  %6521 = vst [vmem:[#allocation43_spill] sm:$0xff] %v5118_v4  ;;  %v2583_v44 = vrot.slane %v5118_v4, %v5029_v12  ;;  %v514_v4 = vsub.s32 2, %v5020_v63 }
 0x100   :  { %3598 = vmatprep.subr.mxu0 %v6329_v0 }
 0x101   :  { %3599 = vmatpush3.msra.mxu0 %v315_v39  ;;  %v5091_v39 = vcombine.high %v5043_v20, %v5043_v20  ;;  %v5168_v54 = vrot.slane %v306_v8, %v514_v4  ;;  %v5170_v20 = vrot.slane %v257_v2, %v514_v4 }
 0x102   :  { %3600 = vmatprep.subr.mxu0 %v6329_v0 }
 0x103   :  { %3601 = vmatpush3.msra.mxu0 %v314_v41  ;;  %6517 = vst [vmem:[#allocation39_spill] sm:$0xff] %v5091_v39 }
 0x104   :  { %3602 = vmatprep.subr.mxu0 %v6329_v0 }
 0x105   :  { %3603 = vmatpush3.msra.mxu0 %v313_v43 }
 0x106   :  { %3604 = vmatprep.subr.mxu0 %v6329_v0 }
 0x107   :  { %3605 = vmatpush3.msra.mxu0 %v312_v45 }
 0x108   :  { %3606 = vmatprep.subr.mxu0 %v6329_v0 }
 0x109   :  { %3607 = vmatpush3.msra.mxu0 %v311_v47 }
 0x10a   :  { %3608 = vmatprep.subr.mxu0 %v6329_v0 }
 0x10b   :  { %3609 = vmatpush3.msra.mxu0 %v310_v49 }
 0x10c   :  { %3610 = vmatprep.subr.mxu0 %v6329_v0 }
 0x10d   :  { %3611 = vmatpush3.msra.mxu0 %v309_v51  ;;  %v987_v51 = vrot.slane %v5083_v9, %v5029_v12 }
 0x10e   :  { %3612 = vmatprep.subr.mxu0 %v6329_v0 }
 0x10f   :  { %3613 = vmatpush3.msra.mxu0 %v308_v53  ;;  %v1773_v53 = vrot.slane %v5087_v11, %v5029_v12  ;;  %v967_v11 = vrot.slane %v5037_v16, %v5121_v58  ;;  %v975_v16 = vrot.slane %v5065_v50, %v5121_v58  ;;  %v5297_v50 = vld [vmem:[#allocation11 + $0x168] sm:$0xff] }
 0x110   :  { %3614 = vmatprep.subr.mxu0 %v6329_v0  ;;  %6547 = vst [vmem:[#allocation68_spill] sm:$0xff] %v5297_v50 }
 0x111   :  { %3615 = vmatpush3.msra.mxu0 %v307_v55  ;;  %v2575_v55 = vrot.slane %v5091_v39, %v5029_v12 }
 0x112   :  { %3666 = vmatprep.subr.mxu0 %v6329_v0  ;;  %v5160_v0 = vrot.slane %v306_v8, %v5029_v12 }
 0x16a   :  { %v585_v6 = vpop.f32.mrf.mxu1 }
 0x16b   :  { %v5049_v24 = vpop.f32.mrf.mxu0 }
 0x16d   :  { %v473_v32 = vpop.f32.mrf.mxu0 }
 0x16e   :  { %v474_v34 = vadd.f32 %v473_v32, %v5047_v22  ;;  %v995_v32 = vrot.slane %v5110_v59, %v5029_v12 }
 0x170   :  { %v5058_v36 = vadd.f32 %v971_v26, %v474_v34  ;;  %v5060_v40 = vadd.f32 %v1757_v28, %v474_v34  ;;  %v5062_v42 = vadd.f32 %v2559_v30, %v474_v34  ;;  %v1781_v34 = vrot.slane %v5114_v61, %v5029_v12 }
 0x172   :  { %6512 = vst [vmem:[#allocation34_spill] sm:$0xff] %v5060_v40  ;;  %6513 = vst [vmem:[#allocation35_spill] sm:$0xff] %v5062_v42  ;;  %v5259_v40 = vld [vmem:[%s6320_s9] ss:$0 sm:$0xff] }
 0x173   :  { %6540 = vst [vmem:[#allocation61_spill] sm:$0xff] %v5259_v40 }
 0x180   :  { %v5073_v56 = vpop.f32.mrf.mxu0 }
 0x182   :  { %v479_v7 = vpop.f32.mrf.mxu0 }
 0x183   :  { %v480_v41 = vadd.f32 %v479_v7, %v5047_v22 }
 0x185   :  { %v5094_v43 = vadd.f32 %v979_v1, %v480_v41  ;;  %v5096_v45 = vadd.f32 %v1765_v3, %v480_v41  ;;  %v5098_v47 = vadd.f32 %v2567_v5, %v480_v41  ;;  %v5100_v49 = vpop.f32.mrf.mxu0  ;;  %v5148_v1 = vrot.slane %v306_v8, %v5121_v58  ;;  %v587_v3 = vpop.f32.mrf.mxu1 }
 0x187   :  { %6518 = vst [vmem:[#allocation40_spill] sm:$0xff] %v5096_v45  ;;  %6519 = vst [vmem:[#allocation41_spill] sm:$0xff] %v5098_v47  ;;  %v485_v57 = vpop.f32.mrf.mxu0  ;;  %v5163_v47 = vrot.slane %v257_v2, %v5029_v12  ;;  %v5181_v2 = vld [vmem:[#allocation18 + $0x70] sm:$0xff] }
 0x188   :  { %v486_v62 = vadd.f32 %v485_v57, %v5047_v22 }
 0x18a   :  { %v5130_v10 = vadd.f32 %v987_v51, %v486_v62  ;;  %v5132_v26 = vadd.f32 %v1773_v53, %v486_v62  ;;  %v5134_v28 = vadd.f32 %v2575_v55, %v486_v62  ;;  %v5136_v30 = vpop.f32.mrf.mxu0  ;;  %v586_v55 = vadd.f32 %v585_v6, %v5145_v46 }
 0x18c   :  { %6523 = vst [vmem:[#allocation45_spill] sm:$0xff] %v5132_v26  ;;  %6524 = vst [vmem:[#allocation46_spill] sm:$0xff] %v5134_v28  ;;  %v491_v48 = vpop.f32.mrf.mxu0  ;;  %v5251_v26 = vrot.slane %v5034_v14, %v5121_v58 }
 0x18d   :  { %v492_v5 = vadd.f32 %v491_v48, %v5047_v22 }
 0x18e   :  { %6538 = vst [vmem:[#allocation59_spill] sm:$0xff] %v5251_v26  ;;  %v5263_v61 = vadd.f32 %v5049_v24, %v5251_v26 }
 0x18f   :  { %v5151_v7 = vadd.f32 %v995_v32, %v492_v5  ;;  %v5153_v41 = vadd.f32 %v1781_v34, %v492_v5  ;;  %v5155_v51 = vadd.f32 %v2583_v44, %v492_v5  ;;  %v742_v53 = vpop.f32.mrf.mxu1  ;;  %v588_v44 = vadd.f32 %v587_v3, %v5163_v47 }
 0x190   :  { %v743_v57 = vadd.f32 %v742_v53, %v5148_v1  ;;  %v656_v62 = vpop.f32.mrf.mxu0  ;;  %6541 = vst [vmem:[#allocation62_spill] sm:$0xff] %v5263_v61  ;;  %v1014_v24 = vadd.f32 %v967_v11, %v5263_v61  ;;  %v5291_v11 = vadd.f32 %v5100_v49, %v5251_v26  ;;  %v5306_v49 = vld [vmem:[#allocation11 + $0x150] sm:$0xff] }
 0x191   :  { %6525 = vst [vmem:[#allocation47_spill] sm:$0xff] %v5153_v41  ;;  %6526 = vst [vmem:[#allocation48_spill] sm:$0xff] %v5155_v51  ;;  %v744_v28 = vpop.f32.mrf.mxu1  ;;  %v4103_v41 = vld [vmem:[#allocation9 + $0x14] ss:$8 sps:$4 sm:$0x77]  }
 0x192   :  { %v817_v48 = vadd.f32 %v743_v57, %v586_v55  ;;  %v3548_v32 = vpop.f32.mrf.mxu0  ;;  %v745_v34 = vadd.f32 %v744_v28, %v5160_v0  ;;  %v5254_v45 = vrot.slane %v4103_v41, %v5023_v60  ;;  %v4102_v41 = vld [vmem:[#allocation9 + $0x4] ss:$8 sps:$4 sm:$0x77]   ;;  %6546 = vst [vmem:[#allocation67_spill] sm:$0xff] %v5291_v11  ;;  %6549 = vst [vmem:[#allocation70_spill] sm:$0xff] %v5306_v49 }
 0x194   :  { %v3236_v42 = vmul.f32 -1.442695, %v817_v48  ;;  %v824_v5 = vadd.f32 %v745_v34, %v588_v44  ;;  %6539 = vst [vmem:[#allocation60_spill] sm:$0xff] %v5254_v45  ;;  %v5269_v14 = vrot.slane %v5254_v45, %v5023_v60 }
 0x196   :  { %4105 = vpow2.f32 %v3236_v42  ;;  %v3237_v6 = vmul.f32 -1.442695, %v824_v5  ;;  %v657_v42 = vadd.f32 %v656_v62, %v5170_v20  ;;  %v6527_v62 = vmov 0.0   ;;  %6542 = vst [vmem:[#allocation63_spill] sm:$0xff] %v5269_v14 }
 0x198   :  { %4107 = vpow2.f32 %v3237_v6 }
 0x1a3   :  { %v4106_v53 = vpop.eup %4105 }
 0x1a4   :  { %v821_v51 = vadd.f32 1.0, %v4106_v53  ;;  %v5187_v53 = vld [vmem:[#allocation18 + $0x68] sm:$0xff] }
 0x1a5   :  { %v4108_v39 = vpop.eup %4107 }
 0x1a6   :  { %4109 = vrcp.f32 %v821_v51  ;;  %v828_v55 = vadd.f32 1.0, %v4108_v39  ;;  %v5177_v39 = vld [vmem:[#allocation18 + $0x78] sm:$0xff] }
 0x1a8   :  { %4111 = vrcp.f32 %v828_v55  ;;  %v5197_v55 = vld [vmem:[#allocation18 + $0x58] sm:$0xff] }
 0x1b0   :  { %v813_v57 = vpop.f32.mrf.mxu0 }
 0x1b1   :  { %v814_v28 = vadd.f32 %v813_v57, %v5168_v54  ;;  %v5201_v57 = vld [vmem:[#allocation18 + $0x50] sm:$0xff] }
 0x1b2   :  { %v3583_v48 = vpop.f32.mrf.mxu0 }
 0x1b3   :  { %v4110_v3 = vpop.eup %4109  ;;  %v5209_v48 = vld [vmem:[#allocation18 + $0x40] sm:$0xff] }
 0x1b4   :  { %v831_v32 = vmul.f32 %v4110_v3, %v814_v28  ;;  %v5205_v28 = vld [vmem:[#allocation18 + $0x48] sm:$0xff]  ;;  %6528 = vst [vmem:[#allocation49_spill] sm:$0xff] %v5209_v48  ;;  %v5213_v3 = vld [vmem:[#allocation18 + $0x38] sm:$0xff] }
 0x1b5   :  { %v4112_v51 = vpop.eup %4111  ;;  %6529 = vst [vmem:[#allocation50_spill] sm:$0xff] %v5213_v3 }
 0x1b6   :  { %v832_v34 = vadd.f32 %v831_v32, %v657_v42  ;;  %v834_v44 = vsub.f32 1.0, %v4112_v51  ;;  %v836_v8 = vmul.f32 %v4112_v51, %v4898_v38  ;;  %v5193_v38 = vld [vmem:[#allocation18 + $0x60] sm:$0xff]  ;;  %v5217_v42 = vld [vmem:[#allocation18 + $0x30] sm:$0xff]  ;;  %v5221_v32 = vld [vmem:[#allocation18 + $0x28] sm:$0xff] }
 0x1b7   :  { %6530 = vst [vmem:[#allocation51_spill] sm:$0xff] %v5217_v42  ;;  %6531 = vst [vmem:[#allocation52_spill] sm:$0xff] %v5221_v32  ;;  %v5231_v51 = vld [vmem:[#allocation18 + $0x18] sm:$0xff] }
 0x1b8   :  { %4113 = vtanh.f32 %v832_v34  ;;  %v5225_v34 = vld [vmem:[#allocation18 + $0x20] sm:$0xff]  ;;  %6533 = vst [vmem:[#allocation54_spill] sm:$0xff] %v5231_v51 }
 0x1b9   :  { %6532 = vst [vmem:[#allocation53_spill] sm:$0xff] %v5225_v34 }
 0x1c5   :  { %v4114_v5 = vpop.eup %4113 }
 0x1c6   :  { %v835_v6 = vmul.f32 %v4114_v5, %v834_v44  ;;  %v5235_v44 = vld [vmem:[#allocation18 + $0x10] sm:$0xff]  ;;  %v5239_v5 = vld [vmem:[#allocation18 + $0x8] sm:$0xff] }
 0x1c7   :  { %6534 = vst [vmem:[#allocation55_spill] sm:$0xff] %v5235_v44  ;;  %6535 = vst [vmem:[#allocation56_spill] sm:$0xff] %v5239_v5 }
 0x1c8   :  { %v5175_v4 = vadd.f32 %v836_v8, %v835_v6  ;;  %v5243_v6 = vld [vmem:[#allocation18] sm:$0xff]  ;;  %v5246_v8 = vld [vmem:[#allocation11 + $0x170] sm:$0xff] }
 0x1c9   :  { %6536 = vst [vmem:[#allocation57_spill] sm:$0xff] %v5243_v6  ;;  %6537 = vst [vmem:[#allocation58_spill] sm:$0xff] %v5246_v8 }
 0x1ca   :  { %903 = vmatmul.mubr.f32.vlgmr.msra.gmra.mxu1 %v5175_v4  ;;  %3617 = vmatmul.mubr.f32.vlgmr.msra.gmra.mxu0 %v5175_v4 }
 0x1cb   :  { %3620 = vmatpush3.msra.mxu1 %v5177_v39  ;;  %3651 = vmatprep.mubr.msk.f32.mxu1 %vm4628_vm0, %v6527_v62 }
 0x1cc   :  { %3621 = vmatprep.subr.mxu1 %v6527_v62  ;;  %3698 = vmatprep.mubr.msk.f32.mxu0 %vm4628_vm0, %v6527_v62 }
 0x1cd   :  { %3622 = vmatpush3.msra.mxu1 %v5181_v2 }
 0x1ce   :  { %3623 = vmatprep.subr.mxu1 %v6527_v62 }
 0x1cf   :  { %3624 = vmatpush3.msra.mxu1 %v5187_v53 }
 0x1d0   :  { %3625 = vmatprep.subr.mxu1 %v6527_v62 }
 0x1d1   :  { %3626 = vmatpush3.msra.mxu1 %v5193_v38 }
 0x1d2   :  { %3627 = vmatprep.subr.mxu1 %v6527_v62 }
 0x1d3   :  { %3628 = vmatpush3.msra.mxu1 %v5197_v55 }
 0x1d4   :  { %3629 = vmatprep.subr.mxu1 %v6527_v62 }
 0x1d5   :  { %3630 = vmatpush3.msra.mxu1 %v5201_v57 }
 0x1d6   :  { %3631 = vmatprep.subr.mxu1 %v6527_v62 }
 0x1d7   :  { %3632 = vmatpush3.msra.mxu1 %v5205_v28 }
 0x1d8   :  { %3633 = vmatprep.subr.mxu1 %v6527_v62 }
 0x1d9   :  { %3634 = vmatpush3.msra.mxu1 %v5209_v48 }
 0x1da   :  { %3635 = vmatprep.subr.mxu1 %v6527_v62 }
 0x1db   :  { %3636 = vmatpush3.msra.mxu1 %v5213_v3 }
 0x1dc   :  { %3637 = vmatprep.subr.mxu1 %v6527_v62 }
 0x1dd   :  { %3638 = vmatpush3.msra.mxu1 %v5217_v42 }
 0x1de   :  { %3639 = vmatprep.subr.mxu1 %v6527_v62 }
 0x1df   :  { %3640 = vmatpush3.msra.mxu1 %v5221_v32 }
 0x1e0   :  { %3641 = vmatprep.subr.mxu1 %v6527_v62 }
 0x1e1   :  { %3642 = vmatpush3.msra.mxu1 %v5225_v34 }
 0x1e2   :  { %3643 = vmatprep.subr.mxu1 %v6527_v62 }
 0x1e3   :  { %3644 = vmatpush3.msra.mxu1 %v5231_v51  ;;  %v5277_v51 = vadd.f32 %v5073_v56, %v5251_v26  ;;  %v983_v56 = vrot.slane %v5083_v9, %v5121_v58  ;;  %v5312_v9 = vadd.f32 %v5136_v30, %v5251_v26 }
 0x1e4   :  { %3645 = vmatprep.subr.mxu1 %v6527_v62 }
 0x1e5   :  { %3646 = vmatpush3.msra.mxu1 %v5235_v44  ;;  %6543 = vst [vmem:[#allocation64_spill] sm:$0xff] %v5277_v51  ;;  %6550 = vst [vmem:[#allocation71_spill] sm:$0xff] %v5312_v9 }
 0x1e6   :  { %3647 = vmatprep.subr.mxu1 %v6527_v62 }
 0x1e7   :  { %3648 = vmatpush3.msra.mxu1 %v5239_v5  ;;  %v1789_v5 = vrot.slane %v5269_v14, %v5029_v12 }
 0x1e8   :  { %3649 = vmatprep.subr.mxu1 %v6527_v62 }
 0x1e9   :  { %3650 = vmatpush3.msra.mxu1 %v5243_v6 }
 0x1ea   :  { %1311 = vmatprep.subr.mxu1 %v5246_v8 }
 0x28a   :  { %v904_v52 = vpop.f32.mrf.mxu1  ;;  %v1096_v18 = vpop.f32.mrf.mxu0 }
 0x28b   :  { %v1097_v8 = vadd.f32 %v5259_v40, %v1096_v18  ;;  %v939_v18 = vrot.slane %v4102_v41, %v5023_v60  ;;  %v991_v41 = vrot.slane %v5110_v59, %v5121_v58  ;;  %v5329_v59 = vld [vmem:[#allocation11 + $0x128] sm:$0xff] }
 0x28c   :  { %v906_v6 = vpop.f32.mrf.mxu1  ;;  %v3618_v44 = vpop.f32.mrf.mxu0  ;;  %6554 = vst [vmem:[#allocation75_spill] sm:$0xff] %v5329_v59 }
 0x28d   :  { %v1100_v45 = vmul.f32 0.35355338, %v1097_v8  ;;  %v5282_v34 = vadd.f32 %v906_v6, %v5047_v22  ;;  %v1016_v44 = vadd.f32 %v975_v16, %v5277_v51  ;;  %v5303_v8 = vld [vmem:[#allocation11 + $0x158] sm:$0xff] }
 0x28e   :  { %6548 = vst [vmem:[#allocation69_spill] sm:$0xff] %v5303_v8  ;;  %v5321_v16 = vld [vmem:[#allocation11 + $0x138] sm:$0xff] }
 0x28f   :  { %6544 = vst [vmem:[#allocation65_spill] sm:$0xff] %v5282_v34  ;;  %v1101_v40 = vmul.f32 %v1100_v45, %v1014_v24  ;;  %v5286_v32 = vadd.f32 %v1789_v5, %v5282_v34  ;;  %v5301_v5 = vrot.slane %v939_v18, %v5023_v60  ;;  %v1102_v6 = vmul.f32 %v1100_v45, %v1016_v44  ;;  %v5316_v24 = vld [vmem:[#allocation11 + $0x140] sm:$0xff] }
 0x290   :  { %6551 = vst [vmem:[#allocation72_spill] sm:$0xff] %v5316_v24  ;;  %6552 = vst [vmem:[#allocation73_spill] sm:$0xff] %v5321_v16  ;;  %v5325_v18 = vadd.f32 %v904_v52, %v5251_v26  ;;  %v5341_v52 = vld [vmem:[#allocation11 + $0x108] sm:$0xff] }
 0x291   :  { %6545 = vst [vmem:[#allocation66_spill] sm:$0xff] %v5286_v32  ;;  %3652 = vmatmul.mubr.f32.vlgmr.msra.gmra.mxu1 %v1101_v40  ;;  %v1018_v40 = vadd.f32 %v983_v56, %v5291_v11  ;;  %v999_v30 = vrot.slane %v5301_v5, %v5121_v58  ;;  %v5332_v56 = vld [vmem:[#allocation11 + $0x120] sm:$0xff]  ;;  %v5336_v32 = vld [vmem:[#allocation11 + $0x110] sm:$0xff]  ;;  %6557 = vst [vmem:[#allocation78_spill] sm:$0xff] %v5341_v52 }
 0x292   :  { %3654 = vmatprep.mubr.msk.f32.mxu1 %vm4628_vm0, %v6527_v62  ;;  %1312 = vmatpush1.msra.mxu1 %v5297_v50  ;;  %6553 = vst [vmem:[#allocation74_spill] sm:$0xff] %v5325_v18  ;;  %6555 = vst [vmem:[#allocation76_spill] sm:$0xff] %v5332_v56  ;;  %v5471_v50 = vld [vmem:[#allocation17 + $0x8] sm:$0xff] }
 0x293   :  { %1313 = vmatprep.subr.mxu1 %v5303_v8  ;;  %v1103_v44 = vmul.f32 %v1100_v45, %v1018_v40  ;;  %6556 = vst [vmem:[#allocation77_spill] sm:$0xff] %v5336_v32  ;;  %v1022_v40 = vadd.f32 %v999_v30, %v5325_v18  ;;  %v5467_v8 = vld [vmem:[#allocation17 + $0x10] sm:$0xff]  ;;  %6589 = vst [vmem:[#allocation110_spill] sm:$0xff] %v5471_v50  ;;  %v5475_v18 = vld [vmem:[#allocation17] sm:$0xff] }
 0x294   :  { %1314 = vmatpush1.msra.mxu1 %v5306_v49  ;;  %v5463_v49 = vld [vmem:[#allocation17 + $0x18] sm:$0xff]  ;;  %6588 = vst [vmem:[#allocation109_spill] sm:$0xff] %v5467_v8  ;;  %6590 = vst [vmem:[#allocation111_spill] sm:$0xff] %v5475_v18 }
 0x295   :  { %3655 = vmatmul.mubr.f32.gmra.mxu1 %v1102_v6  ;;  %1315 = vmatprep.subr.mxu1 %v5316_v24  ;;  %v1020_v6 = vadd.f32 %v991_v41, %v5312_v9  ;;  %v5348_v41 = vld [vmem:[#allocation11 + $0xf0] sm:$0xff]  ;;  %v1105_v30 = vmul.f32 %v1100_v45, %v1022_v40  ;;  %v5459_v24 = vld [vmem:[#allocation17 + $0x20] sm:$0xff]  ;;  %6587 = vst [vmem:[#allocation108_spill] sm:$0xff] %v5463_v49 }
 0x296   :  { %3657 = vmatprep.mubr.msk.f32.mxu1 %vm4628_vm0, %v6527_v62  ;;  %1316 = vmatpush1.msra.mxu1 %v5321_v16  ;;  %v5345_v16 = vld [vmem:[#allocation11 + $0xf8] sm:$0xff]  ;;  %6559 = vst [vmem:[#allocation80_spill] sm:$0xff] %v5348_v41  ;;  %v5375_v40 = vld [vmem:[#allocation11 + $0x90] sm:$0xff]  ;;  %6586 = vst [vmem:[#allocation107_spill] sm:$0xff] %v5459_v24 }
 0x297   :  { %1317 = vmatprep.subr.mxu1 %v5329_v59  ;;  %v1104_v59 = vmul.f32 %v1100_v45, %v1020_v6  ;;  %6558 = vst [vmem:[#allocation79_spill] sm:$0xff] %v5345_v16  ;;  %v5359_v6 = vld [vmem:[#allocation11 + $0xc8] sm:$0xff]  ;;  %v5372_v45 = vld [vmem:[#allocation11 + $0x98] sm:$0xff]  ;;  %6567 = vst [vmem:[#allocation88_spill] sm:$0xff] %v5375_v40 }
 0x298   :  { %1318 = vmatpush1.msra.mxu1 %v5332_v56  ;;  %6562 = vst [vmem:[#allocation83_spill] sm:$0xff] %v5359_v6  ;;  %6566 = vst [vmem:[#allocation87_spill] sm:$0xff] %v5372_v45  ;;  %v5455_v56 = vld [vmem:[#allocation17 + $0x28] sm:$0xff] }
 0x299   :  { %3658 = vmatmul.mubr.f32.gmra.mxu1 %v1103_v44  ;;  %1319 = vmatprep.subr.mxu1 %v5336_v32  ;;  %v5351_v44 = vld [vmem:[#allocation11 + $0xe0] sm:$0xff]  ;;  %v5451_v32 = vld [vmem:[#allocation17 + $0x30] sm:$0xff]  ;;  %6585 = vst [vmem:[#allocation106_spill] sm:$0xff] %v5455_v56 }
 0x29a   :  { %3660 = vmatprep.mubr.msk.f32.mxu1 %vm4628_vm0, %v6527_v62  ;;  %1320 = vmatpush1.msra.mxu1 %v5341_v52  ;;  %6560 = vst [vmem:[#allocation81_spill] sm:$0xff] %v5351_v44  ;;  %v5356_v52 = vld [vmem:[#allocation11 + $0xd8] sm:$0xff]  ;;  %6584 = vst [vmem:[#allocation105_spill] sm:$0xff] %v5451_v32 }
 0x29b   :  { %1321 = vmatprep.subr.mxu1 %v5345_v16  ;;  %6561 = vst [vmem:[#allocation82_spill] sm:$0xff] %v5356_v52  ;;  %v5362_v16 = vld [vmem:[#allocation11 + $0xc0] sm:$0xff] }
 0x29c   :  { %1322 = vmatpush1.msra.mxu1 %v5348_v41  ;;  %6563 = vst [vmem:[#allocation84_spill] sm:$0xff] %v5362_v16  ;;  %v5447_v41 = vld [vmem:[#allocation17 + $0x38] sm:$0xff] }
 0x29d   :  { %3661 = vmatmul.mubr.f32.gmra.mxu1 %v1104_v59  ;;  %1323 = vmatprep.subr.mxu1 %v5351_v44  ;;  %v5365_v59 = vld [vmem:[#allocation11 + $0xb0] sm:$0xff]  ;;  %v5368_v44 = vld [vmem:[#allocation11 + $0xa8] sm:$0xff]  ;;  %6583 = vst [vmem:[#allocation104_spill] sm:$0xff] %v5447_v41 }
 0x29e   :  { %3663 = vmatprep.mubr.msk.f32.mxu1 %vm4628_vm0, %v6527_v62  ;;  %1324 = vmatpush1.msra.mxu1 %v5356_v52  ;;  %6564 = vst [vmem:[#allocation85_spill] sm:$0xff] %v5365_v59  ;;  %6565 = vst [vmem:[#allocation86_spill] sm:$0xff] %v5368_v44  ;;  %v5444_v52 = vld [vmem:[#allocation17 + $0x40] sm:$0xff] }
 0x29f   :  { %1325 = vmatprep.subr.mxu1 %v5359_v6  ;;  %v5441_v6 = vld [vmem:[#allocation17 + $0x48] sm:$0xff]  ;;  %6582 = vst [vmem:[#allocation103_spill] sm:$0xff] %v5444_v52 }
 0x2a0   :  { %1326 = vmatpush1.msra.mxu1 %v5362_v16  ;;  %v5378_v16 = vld [vmem:[#allocation11 + $0x80] sm:$0xff]  ;;  %6581 = vst [vmem:[#allocation102_spill] sm:$0xff] %v5441_v6 }
 0x2a1   :  { %3664 = vmatmul.mubr.f32.gmra.mxu1 %v1105_v30  ;;  %1327 = vmatprep.subr.mxu1 %v5365_v59  ;;  %6568 = vst [vmem:[#allocation89_spill] sm:$0xff] %v5378_v16  ;;  %v5381_v30 = vld [vmem:[#allocation11 + $0x78] sm:$0xff]  ;;  %v5384_v59 = vld [vmem:[#allocation11 + $0x68] sm:$0xff] }
 0x2a2   :  { %1328 = vmatpush1.msra.mxu1 %v5368_v44  ;;  %1375 = vmatprep.mubr.f32.mxu1 %v6527_v62  ;;  %6569 = vst [vmem:[#allocation90_spill] sm:$0xff] %v5381_v30  ;;  %6570 = vst [vmem:[#allocation91_spill] sm:$0xff] %v5384_v59  ;;  %v5387_v44 = vld [vmem:[#allocation11 + $0x60] sm:$0xff] }
 0x2a3   :  { %1329 = vmatprep.subr.mxu1 %v5372_v45  ;;  %6571 = vst [vmem:[#allocation92_spill] sm:$0xff] %v5387_v44  ;;  %v5390_v45 = vld [vmem:[#allocation11 + $0x50] sm:$0xff] }
 0x2a4   :  { %1330 = vmatpush1.msra.mxu1 %v5375_v40  ;;  %6572 = vst [vmem:[#allocation93_spill] sm:$0xff] %v5390_v45  ;;  %v5393_v40 = vld [vmem:[#allocation11 + $0x48] sm:$0xff] }
 0x2a5   :  { %1331 = vmatprep.subr.mxu1 %v5378_v16  ;;  %6573 = vst [vmem:[#allocation94_spill] sm:$0xff] %v5393_v40  ;;  %v5396_v16 = vld [vmem:[#allocation11 + $0x38] sm:$0xff] }
 0x2a6   :  { %1332 = vmatpush1.msra.mxu1 %v5381_v30  ;;  %6574 = vst [vmem:[#allocation95_spill] sm:$0xff] %v5396_v16  ;;  %v5399_v30 = vld [vmem:[#allocation11 + $0x30] sm:$0xff] }
 0x2a7   :  { %1333 = vmatprep.subr.mxu1 %v5384_v59  ;;  %6575 = vst [vmem:[#allocation96_spill] sm:$0xff] %v5399_v30  ;;  %v5402_v59 = vld [vmem:[#allocation11 + $0x20] sm:$0xff] }
 0x2a8   :  { %1334 = vmatpush1.msra.mxu1 %v5387_v44  ;;  %6576 = vst [vmem:[#allocation97_spill] sm:$0xff] %v5402_v59  ;;  %v5405_v44 = vld [vmem:[#allocation11 + $0x18] sm:$0xff] }
 0x2a9   :  { %1335 = vmatprep.subr.mxu1 %v5390_v45  ;;  %6577 = vst [vmem:[#allocation98_spill] sm:$0xff] %v5405_v44  ;;  %v5408_v45 = vld [vmem:[#allocation11 + $0x8] sm:$0xff] }
 0x2aa   :  { %1336 = vmatpush1.msra.mxu1 %v5393_v40  ;;  %6578 = vst [vmem:[#allocation99_spill] sm:$0xff] %v5408_v45  ;;  %v5411_v40 = vld [vmem:[#allocation11] sm:$0xff] }
 0x2ab   :  { %1337 = vmatprep.subr.mxu1 %v5396_v16  ;;  %6579 = vst [vmem:[#allocation100_spill] sm:$0xff] %v5411_v40  ;;  %v5414_v16 = vld [vmem:[#allocation12 + $0x170] sm:$0xff] }
 0x2ac   :  { %1338 = vmatpush1.msra.mxu1 %v5399_v30  ;;  %6580 = vst [vmem:[#allocation101_spill] sm:$0xff] %v5414_v16  ;;  %v5417_v30 = vld [vmem:[#allocation17 + $0x78] sm:$0xff] }
 0x2ad   :  { %1339 = vmatprep.subr.mxu1 %v5402_v59  ;;  %3667 = vmatpush3.msra.mxu0 %v5417_v30  ;;  %v5421_v59 = vld [vmem:[#allocation17 + $0x70] sm:$0xff] }
 0x2ae   :  { %1340 = vmatpush1.msra.mxu1 %v5405_v44  ;;  %3668 = vmatprep.subr.mxu0 %v6527_v62  ;;  %v5437_v44 = vld [vmem:[#allocation17 + $0x50] sm:$0xff] }
 0x2af   :  { %1341 = vmatprep.subr.mxu1 %v5408_v45  ;;  %3669 = vmatpush3.msra.mxu0 %v5421_v59  ;;  %v5425_v45 = vld [vmem:[#allocation17 + $0x68] sm:$0xff] }
 0x2b0   :  { %1342 = vmatpush1.msra.mxu1 %v5411_v40  ;;  %3670 = vmatprep.subr.mxu0 %v6527_v62  ;;  %v5429_v40 = vld [vmem:[#allocation17 + $0x60] sm:$0xff] }
 0x2b1   :  { %1452 = vmatprep.subr.mxu1 %v5414_v16  ;;  %3671 = vmatpush3.msra.mxu0 %v5425_v45  ;;  %v5433_v16 = vld [vmem:[#allocation17 + $0x58] sm:$0xff] }
 0x2b2   :  { %3672 = vmatprep.subr.mxu0 %v6527_v62 }
 0x2b3   :  { %3673 = vmatpush3.msra.mxu0 %v5429_v40 }
 0x2b4   :  { %3674 = vmatprep.subr.mxu0 %v6527_v62 }
 0x2b5   :  { %3675 = vmatpush3.msra.mxu0 %v5433_v16 }
 0x2b6   :  { %3676 = vmatprep.subr.mxu0 %v6527_v62 }
 0x2b7   :  { %3677 = vmatpush3.msra.mxu0 %v5437_v44 }
 0x2b8   :  { %3678 = vmatprep.subr.mxu0 %v6527_v62 }
 0x2b9   :  { %3679 = vmatpush3.msra.mxu0 %v5441_v6 }
 0x2ba   :  { %3680 = vmatprep.subr.mxu0 %v6527_v62 }
 0x2bb   :  { %3681 = vmatpush3.msra.mxu0 %v5444_v52 }
 0x2bc   :  { %3682 = vmatprep.subr.mxu0 %v6527_v62 }
 0x2bd   :  { %3683 = vmatpush3.msra.mxu0 %v5447_v41 }
 0x2be   :  { %3684 = vmatprep.subr.mxu0 %v6527_v62 }
 0x2bf   :  { %3685 = vmatpush3.msra.mxu0 %v5451_v32 }
 0x2c0   :  { %3686 = vmatprep.subr.mxu0 %v6527_v62 }
 0x2c1   :  { %3687 = vmatpush3.msra.mxu0 %v5455_v56 }
 0x2c2   :  { %3688 = vmatprep.subr.mxu0 %v6527_v62 }
 0x2c3   :  { %3689 = vmatpush3.msra.mxu0 %v5459_v24 }
 0x2c4   :  { %3690 = vmatprep.subr.mxu0 %v6527_v62 }
 0x2c5   :  { %3691 = vmatpush3.msra.mxu0 %v5463_v49 }
 0x2c6   :  { %3692 = vmatprep.subr.mxu0 %v6527_v62 }
 0x2c7   :  { %3693 = vmatpush3.msra.mxu0 %v5467_v8 }
 0x2c8   :  { %3694 = vmatprep.subr.mxu0 %v6527_v62 }
 0x2c9   :  { %3695 = vmatpush3.msra.mxu0 %v5471_v50 }
 0x2ca   :  { %3696 = vmatprep.subr.mxu0 %v6527_v62 }
 0x2cb   :  { %3697 = vmatpush3.msra.mxu0 %v5475_v18 }
 0x2cc   :  { %3701 = vmatprep.subr.mxu0 %v6527_v62 }
 0x351   :  { %v1172_v9 = vpop.f32.mrf.mxu1 }
 0x353   :  { %v3653_v26 = vpop.f32.mrf.mxu1 }
 0x355   :  { %v1177_v14 = vpop.f32.mrf.mxu1 }
 0x357   :  { %v3656_v11 = vpop.f32.mrf.mxu1 }
 0x359   :  { %v1182_v22 = vpop.f32.mrf.mxu1 }
 0x35b   :  { %v3659_v51 = vpop.f32.mrf.mxu1 }
 0x35d   :  { %v1187_v61 = vpop.f32.mrf.mxu1 }
 0x35e   :  { %v1198_v24 = vmax.f32 %v1182_v22, %v1187_v61 }
 0x35f   :  { %v3662_v58 = vpop.f32.mrf.mxu1 }
 0x361   :  { %v1192_v60 = vpop.f32.mrf.mxu1 }
 0x362   :  { %v1196_v8 = vmax.f32 %v1172_v9, %v1192_v60 }
 0x363   :  { %v3665_v49 = vpop.f32.mrf.mxu1 }
 0x364   :  { %v1197_v56 = vmax.f32 %v1196_v8, %v1177_v14 }
 0x366   :  { %v1199_v50 = vmax.f32 %v1197_v56, %v1198_v24 }
 0x368   :  { %v1200_v32 = vsub.f32 %v1172_v9, %v1199_v50  ;;  %v1201_v42 = vsub.f32 %v1177_v14, %v1199_v50  ;;  %v1202_v41 = vsub.f32 %v1182_v22, %v1199_v50  ;;  %v1203_v18 = vsub.f32 %v1187_v61, %v1199_v50 }
 0x369   :  { %v1204_v3 = vsub.f32 %v1192_v60, %v1199_v50  ;;  %v1003_v22 = vrot.slane %v5301_v5, %v5029_v12 }
 0x36a   :  { %v1205_v52 = vmul.f32 1.442695, %v1200_v32  ;;  %v1207_v48 = vmul.f32 1.442695, %v1201_v42  ;;  %v1209_v26 = vmul.f32 1.442695, %v1202_v41 }
 0x36b   :  { %v1211_v6 = vmul.f32 1.442695, %v1203_v18  ;;  %v1213_v51 = vmul.f32 1.442695, %v1204_v3  ;;  %v1023_v50 = vadd.f32 %v1003_v22, %v5282_v34  ;;  %v5526_v22 = vld [vmem:[#allocation11 + $0xa0] sm:$0xff] }
 0x36c   :  { %4115 = vpow2.f32 %v1205_v52  ;;  %v5594_v34 = vld [vmem:[#allocation12 + $0x120] sm:$0xff] }
 0x36d   :  { %4117 = vpow2.f32 %v1207_v48  ;;  %6596 = vst [vmem:[#allocation117_spill] sm:$0xff] %v5594_v34 }
 0x36e   :  { %4119 = vpow2.f32 %v1209_v26  ;;  %v5502_v26 = vld [vmem:[#allocation11 + $0x130] sm:$0xff] }
 0x36f   :  { %4121 = vpow2.f32 %v1211_v6 }
 0x370   :  { %4123 = vpow2.f32 %v1213_v51  ;;  %v5506_v51 = vld [vmem:[#allocation11 + $0x118] sm:$0xff] }
 0x379   :  { %v4116_v58 = vpop.eup %4115 }
 0x37a   :  { %v4118_v11 = vpop.eup %4117  ;;  %v1219_v8 = vmul.f32 %v4116_v58, %v5058_v36 }
 0x37b   :  { %v4120_v49 = vpop.eup %4119  ;;  %v1215_v61 = vadd.f32 %v4118_v11, %v4116_v58  ;;  %v1220_v60 = vmul.f32 %v4118_v11, %v5094_v43  ;;  %v5488_v43 = vld [vmem:[#allocation11 + $0x178] sm:$0xff]  ;;  %v5510_v58 = vld [vmem:[#allocation11 + $0x100] sm:$0xff]  ;;  %v5514_v11 = vld [vmem:[#allocation11 + $0xe8] sm:$0xff] }
 0x37c   :  { %v4122_v42 = vpop.eup %4121  ;;  %v1221_v14 = vmul.f32 %v4120_v49, %v5130_v10  ;;  %v5494_v10 = vld [vmem:[#allocation11 + $0x160] sm:$0xff] }
 0x37d   :  { %v1216_v32 = vadd.f32 %v4120_v49, %v1215_v61  ;;  %v1224_v48 = vadd.f32 %v1220_v60, %v1219_v8  ;;  %v4124_v3 = vpop.eup %4123  ;;  %v1222_v24 = vmul.f32 %v4122_v42, %v5151_v7  ;;  %v5498_v7 = vld [vmem:[#allocation11 + $0x148] sm:$0xff]  ;;  %v5518_v8 = vld [vmem:[#allocation11 + $0xd0] sm:$0xff]  ;;  %v5522_v49 = vld [vmem:[#allocation11 + $0xb8] sm:$0xff] }
 0x37e   :  { %v1223_v56 = vmul.f32 %v4124_v3, %v1023_v50  ;;  %v5530_v61 = vld [vmem:[#allocation11 + $0x88] sm:$0xff]  ;;  %v5534_v60 = vld [vmem:[#allocation11 + $0x70] sm:$0xff] }
 0x37f   :  { %v1217_v9 = vadd.f32 %v4122_v42, %v1216_v32  ;;  %v1225_v18 = vadd.f32 %v1224_v48, %v1221_v14  ;;  %v5538_v42 = vld [vmem:[#allocation11 + $0x58] sm:$0xff]  ;;  %v5542_v32 = vld [vmem:[#allocation11 + $0x40] sm:$0xff]  ;;  %v5546_v14 = vld [vmem:[#allocation11 + $0x28] sm:$0xff] }
 0x380   :  { %v5550_v48 = vld [vmem:[#allocation11 + $0x10] sm:$0xff] }
 0x381   :  { %v1218_v36 = vadd.f32 %v4124_v3, %v1217_v9  ;;  %v1226_v52 = vadd.f32 %v1225_v18, %v1222_v24  ;;  %v5557_v3 = vld [vmem:[%s6324_s13] ss:$0 sm:$0xff]  ;;  %v5564_v18 = vld [vmem:[#allocation12 + $0x168] sm:$0xff] }
 0x383   :  { %4125 = vrcp.f32 %v1218_v36  ;;  %v1227_v5 = vadd.f32 %v1226_v52, %v1223_v56  ;;  %v5567_v36 = vld [vmem:[#allocation12 + $0x178] sm:$0xff]  ;;  %v5574_v52 = vld [vmem:[#allocation12 + $0x150] sm:$0xff] }
 0x384   :  { %v5570_v56 = vld [vmem:[#allocation12 + $0x158] sm:$0xff] }
 0x390   :  { %v4126_v41 = vpop.eup %4125 }
 0x391   :  { %v1229_v6 = vmul.f32 %v4126_v41, %v1227_v5  ;;  %v5577_v5 = vld [vmem:[#allocation12 + $0x160] sm:$0xff] }
 0x392   :  { %v5580_v41 = vld [vmem:[#allocation12 + $0x140] sm:$0xff] }
 0x393   :  { %3699 = vmatmul.mubr.f32.vlgmr.msra.gmra.mxu0 %v1229_v6  ;;  %6592 = vst [vmem:[#allocation113_spill] sm:$0xff] %v5580_v41  ;;  %v5584_v6 = vld [vmem:[#allocation12 + $0x138] sm:$0xff] }
 0x394   :  { %3702 = vmatpush3.msra.mxu0 %v5488_v43  ;;  %3733 = vmatprep.mubr.msk.f32.mxu0 %vm4628_vm0, %v6527_v62  ;;  %6593 = vst [vmem:[#allocation114_spill] sm:$0xff] %v5584_v6 }
 0x395   :  { %3703 = vmatprep.subr.mxu0 %v6527_v62 }
 0x396   :  { %3704 = vmatpush3.msra.mxu0 %v5494_v10 }
 0x397   :  { %3705 = vmatprep.subr.mxu0 %v6527_v62 }
 0x398   :  { %3706 = vmatpush3.msra.mxu0 %v5498_v7 }
 0x399   :  { %3707 = vmatprep.subr.mxu0 %v6527_v62 }
 0x39a   :  { %3708 = vmatpush3.msra.mxu0 %v5502_v26 }
 0x39b   :  { %3709 = vmatprep.subr.mxu0 %v6527_v62 }
 0x39c   :  { %3710 = vmatpush3.msra.mxu0 %v5506_v51 }
 0x39d   :  { %3711 = vmatprep.subr.mxu0 %v6527_v62 }
 0x39e   :  { %3712 = vmatpush3.msra.mxu0 %v5510_v58 }
 0x39f   :  { %3713 = vmatprep.subr.mxu0 %v6527_v62 }
 0x3a0   :  { %3714 = vmatpush3.msra.mxu0 %v5514_v11 }
 0x3a1   :  { %3715 = vmatprep.subr.mxu0 %v6527_v62 }
 0x3a2   :  { %3716 = vmatpush3.msra.mxu0 %v5518_v8 }
 0x3a3   :  { %3717 = vmatprep.subr.mxu0 %v6527_v62 }
 0x3a4   :  { %3718 = vmatpush3.msra.mxu0 %v5522_v49 }
 0x3a5   :  { %3719 = vmatprep.subr.mxu0 %v6527_v62 }
 0x3a6   :  { %3720 = vmatpush3.msra.mxu0 %v5526_v22 }
 0x3a7   :  { %3721 = vmatprep.subr.mxu0 %v6527_v62 }
 0x3a8   :  { %3722 = vmatpush3.msra.mxu0 %v5530_v61 }
 0x3a9   :  { %3723 = vmatprep.subr.mxu0 %v6527_v62 }
 0x3aa   :  { %3724 = vmatpush3.msra.mxu0 %v5534_v60 }
 0x3ab   :  { %3725 = vmatprep.subr.mxu0 %v6527_v62 }
 0x3ac   :  { %3726 = vmatpush3.msra.mxu0 %v5538_v42 }
 0x3ad   :  { %3727 = vmatprep.subr.mxu0 %v6527_v62 }
 0x3ae   :  { %3728 = vmatpush3.msra.mxu0 %v5542_v32 }
 0x3af   :  { %3729 = vmatprep.subr.mxu0 %v6527_v62 }
 0x3b0   :  { %3730 = vmatpush3.msra.mxu0 %v5546_v14 }
 0x3b1   :  { %3731 = vmatprep.subr.mxu0 %v6527_v62 }
 0x3b2   :  { %3732 = vmatpush3.msra.mxu0 %v5550_v48 }
 0x3b3   :  { %3736 = vmatprep.subr.mxu0 %v6527_v62 }
 0x453   :  { %v1302_v50 = vpop.f32.mrf.mxu0 }
 0x454   :  { %v5560_v9 = vadd.f32 %v5557_v3, %v1302_v50  ;;  %v5587_v50 = vld [vmem:[#allocation12 + $0x148] sm:$0xff] }
 0x455   :  { %v3700_v24 = vpop.f32.mrf.mxu0  ;;  %6594 = vst [vmem:[#allocation115_spill] sm:$0xff] %v5587_v50 }
 0x456   :  { %6591 = vst [vmem:[#allocation112_spill] sm:$0xff] %v5560_v9  ;;  %1376 = vmatmul.mubr.f32.vlgmr.msra.gmra.mxu1 %v5560_v9  ;;  %3734 = vmatmul.mubr.f32.vlgmr.msra.gmra.mxu0 %v5560_v9  ;;  %v5590_v24 = vld [vmem:[#allocation12 + $0x128] sm:$0xff]  ;;  %v5597_v9 = vld [vmem:[#allocation12 + $0x130] sm:$0xff] }
 0x457   :  { %1453 = vmatpush1.msra.mxu1 %v5564_v18  ;;  %3737 = vmatpush3.msra.mxu0 %v5567_v36  ;;  %6595 = vst [vmem:[#allocation116_spill] sm:$0xff] %v5590_v24  ;;  %6597 = vst [vmem:[#allocation118_spill] sm:$0xff] %v5597_v9 }
 0x458   :  { %1454 = vmatprep.subr.mxu1 %v5570_v56  ;;  %3738 = vmatprep.subr.mxu0 %v6527_v62 }
 0x459   :  { %1455 = vmatpush1.msra.mxu1 %v5574_v52  ;;  %3739 = vmatpush3.msra.mxu0 %v5577_v5 }
 0x45a   :  { %1456 = vmatprep.subr.mxu1 %v5580_v41  ;;  %3740 = vmatprep.subr.mxu0 %v6527_v62  ;;  %v5600_v41 = vld [vmem:[#allocation12 + $0x110] sm:$0xff] }
 0x45b   :  { %1457 = vmatpush1.msra.mxu1 %v5584_v6  ;;  %3741 = vmatpush3.msra.mxu0 %v5587_v50  ;;  %6598 = vst [vmem:[#allocation119_spill] sm:$0xff] %v5600_v41  ;;  %v5604_v50 = vld [vmem:[#allocation12 + $0x108] sm:$0xff]  ;;  %v5610_v6 = vld [vmem:[#allocation12 + $0xf8] sm:$0xff] }
 0x45c   :  { %1458 = vmatprep.subr.mxu1 %v5590_v24  ;;  %3742 = vmatprep.subr.mxu0 %v6527_v62  ;;  %6599 = vst [vmem:[#allocation120_spill] sm:$0xff] %v5604_v50  ;;  %v5607_v24 = vld [vmem:[#allocation12 + $0x118] sm:$0xff]  ;;  %6601 = vst [vmem:[#allocation122_spill] sm:$0xff] %v5610_v6 }
 0x45d   :  { %1459 = vmatpush1.msra.mxu1 %v5594_v34  ;;  %3743 = vmatpush3.msra.mxu0 %v5597_v9  ;;  %6600 = vst [vmem:[#allocation121_spill] sm:$0xff] %v5607_v24  ;;  %v5614_v9 = vld [vmem:[#allocation12 + $0xf0] sm:$0xff]  ;;  %v5620_v34 = vld [vmem:[#allocation12 + $0xe0] sm:$0xff] }
 0x45e   :  { %1460 = vmatprep.subr.mxu1 %v5600_v41  ;;  %3744 = vmatprep.subr.mxu0 %v6527_v62  ;;  %6602 = vst [vmem:[#allocation123_spill] sm:$0xff] %v5614_v9  ;;  %v5617_v41 = vld [vmem:[#allocation12 + $0x100] sm:$0xff]  ;;  %6604 = vst [vmem:[#allocation125_spill] sm:$0xff] %v5620_v34 }
 0x45f   :  { %1461 = vmatpush1.msra.mxu1 %v5604_v50  ;;  %3745 = vmatpush3.msra.mxu0 %v5607_v24  ;;  %6603 = vst [vmem:[#allocation124_spill] sm:$0xff] %v5617_v41  ;;  %v5624_v24 = vld [vmem:[#allocation12 + $0xd8] sm:$0xff]  ;;  %v5630_v50 = vld [vmem:[#allocation12 + $0xc8] sm:$0xff] }
 0x460   :  { %1462 = vmatprep.subr.mxu1 %v5610_v6  ;;  %3746 = vmatprep.subr.mxu0 %v6527_v62  ;;  %6605 = vst [vmem:[#allocation126_spill] sm:$0xff] %v5624_v24  ;;  %v5627_v6 = vld [vmem:[#allocation12 + $0xe8] sm:$0xff]  ;;  %6607 = vst [vmem:[#allocation128_spill] sm:$0xff] %v5630_v50 }
 0x461   :  { %1463 = vmatpush1.msra.mxu1 %v5614_v9  ;;  %3747 = vmatpush3.msra.mxu0 %v5617_v41  ;;  %6606 = vst [vmem:[#allocation127_spill] sm:$0xff] %v5627_v6  ;;  %v5634_v41 = vld [vmem:[#allocation12 + $0xc0] sm:$0xff]  ;;  %v5640_v9 = vld [vmem:[#allocation12 + $0xb0] sm:$0xff] }
 0x462   :  { %1464 = vmatprep.subr.mxu1 %v5620_v34  ;;  %3748 = vmatprep.subr.mxu0 %v6527_v62  ;;  %6608 = vst [vmem:[#allocation129_spill] sm:$0xff] %v5634_v41  ;;  %v5637_v34 = vld [vmem:[#allocation12 + $0xd0] sm:$0xff]  ;;  %6610 = vst [vmem:[#allocation131_spill] sm:$0xff] %v5640_v9 }
 0x463   :  { %1465 = vmatpush1.msra.mxu1 %v5624_v24  ;;  %3749 = vmatpush3.msra.mxu0 %v5627_v6  ;;  %6609 = vst [vmem:[#allocation130_spill] sm:$0xff] %v5637_v34  ;;  %v5644_v6 = vld [vmem:[#allocation12 + $0xa8] sm:$0xff]  ;;  %v5650_v24 = vld [vmem:[#allocation12 + $0x98] sm:$0xff] }
 0x464   :  { %1466 = vmatprep.subr.mxu1 %v5630_v50  ;;  %3750 = vmatprep.subr.mxu0 %v6527_v62  ;;  %v5647_v50 = vld [vmem:[#allocation12 + $0xb8] sm:$0xff]  ;;  %6612 = vst [vmem:[#allocation133_spill] sm:$0xff] %v5650_v24 }
 0x465   :  { %1467 = vmatpush1.msra.mxu1 %v5634_v41  ;;  %3751 = vmatpush3.msra.mxu0 %v5637_v34  ;;  %6611 = vst [vmem:[#allocation132_spill] sm:$0xff] %v5647_v50  ;;  %v5654_v34 = vld [vmem:[#allocation12 + $0x90] sm:$0xff]  ;;  %v5660_v41 = vld [vmem:[#allocation12 + $0x80] sm:$0xff] }
 0x466   :  { %1468 = vmatprep.subr.mxu1 %v5640_v9  ;;  %3752 = vmatprep.subr.mxu0 %v6527_v62  ;;  %6613 = vst [vmem:[#allocation134_spill] sm:$0xff] %v5654_v34  ;;  %v5657_v9 = vld [vmem:[#allocation12 + $0xa0] sm:$0xff]  ;;  %6615 = vst [vmem:[#allocation136_spill] sm:$0xff] %v5660_v41 }
 0x467   :  { %1469 = vmatpush1.msra.mxu1 %v5644_v6  ;;  %3753 = vmatpush3.msra.mxu0 %v5647_v50  ;;  %6614 = vst [vmem:[#allocation135_spill] sm:$0xff] %v5657_v9  ;;  %v5664_v50 = vld [vmem:[#allocation12 + $0x78] sm:$0xff] }
 0x468   :  { %1470 = vmatprep.subr.mxu1 %v5650_v24  ;;  %3754 = vmatprep.subr.mxu0 %v6527_v62  ;;  %6616 = vst [vmem:[#allocation137_spill] sm:$0xff] %v5664_v50  ;;  %v5668_v24 = vld [vmem:[#allocation12 + $0x68] sm:$0xff] }
 0x469   :  { %1471 = vmatpush1.msra.mxu1 %v5654_v34  ;;  %3755 = vmatpush3.msra.mxu0 %v5657_v9  ;;  %6617 = vst [vmem:[#allocation138_spill] sm:$0xff] %v5668_v24  ;;  %v5672_v34 = vld [vmem:[#allocation12 + $0x60] sm:$0xff]  ;;  %v5677_v9 = vld [vmem:[#allocation12 + $0x50] sm:$0xff] }
 0x46a   :  { %1472 = vmatprep.subr.mxu1 %v5660_v41  ;;  %3756 = vmatprep.subr.mxu0 %v6527_v62  ;;  %6618 = vst [vmem:[#allocation139_spill] sm:$0xff] %v5672_v34  ;;  %v1308_v41 = vsub.s32 4, %v5020_v63  ;;  %6619 = vst [vmem:[#allocation140_spill] sm:$0xff] %v5677_v9  ;;  %v5696_v63 = vld [vmem:[#allocation12 + $0x20] sm:$0xff] }
 0x46b   :  { %1473 = vmatpush1.msra.mxu1 %v5664_v50  ;;  %3757 = vmatpush3.msra.mxu0 %v4938_v13  ;;  %v5681_v13 = vld [vmem:[#allocation8] sm:$0x7f]  ;;  %6624 = vst [vmem:[#allocation145_spill] sm:$0xff] %v5696_v63 }
 0x46c   :  { %1474 = vmatprep.subr.mxu1 %v5668_v24  ;;  %3758 = vmatprep.subr.mxu0 %v6527_v62  ;;  %6620 = vst [vmem:[#allocation141_spill] sm:$0xff] %v5681_v13  ;;  %v5683_v50 = vld [vmem:[#allocation12 + $0x48] sm:$0xff]  ;;  %v5687_v24 = vld [vmem:[#allocation12 + $0x38] sm:$0xff] }
 0x46d   :  { %1475 = vmatpush1.msra.mxu1 %v5672_v34  ;;  %3759 = vmatpush3.msra.mxu0 %v4943_v15  ;;  %6621 = vst [vmem:[#allocation142_spill] sm:$0xff] %v5683_v50  ;;  %6622 = vst [vmem:[#allocation143_spill] sm:$0xff] %v5687_v24  ;;  %v5691_v15 = vld [vmem:[#allocation12 + $0x30] sm:$0xff] }
 0x46e   :  { %1476 = vmatprep.subr.mxu1 %v5677_v9  ;;  %3760 = vmatprep.subr.mxu0 %v6527_v62  ;;  %6623 = vst [vmem:[#allocation144_spill] sm:$0xff] %v5691_v15  ;;  %v1309_v9 = vrot.slane %v5681_v13, %v1308_v41 }
 0x46f   :  { %1477 = vmatpush1.msra.mxu1 %v5683_v50  ;;  %3761 = vmatpush3.msra.mxu0 %v4949_v17  ;;  %v5700_v17 = vld [vmem:[#allocation12 + $0x18] sm:$0xff] }
 0x470   :  { %1478 = vmatprep.subr.mxu1 %v5687_v24  ;;  %3762 = vmatprep.subr.mxu0 %v6527_v62  ;;  %6625 = vst [vmem:[#allocation146_spill] sm:$0xff] %v5700_v17  ;;  %v5704_v24 = vld [vmem:[#allocation12 + $0x8] sm:$0xff]  ;;  %v5713_v41 = vadd.f32 %v1309_v9, %v5175_v4  ;;  %v5732_v4 = vld [vmem:[#allocation15 + $0xe0] sm:$0xff]  ;;  %v5736_v9 = vld [vmem:[#allocation15 + $0xd8] sm:$0xff] }
 0x471   :  { %1479 = vmatpush1.msra.mxu1 %v5691_v15  ;;  %3763 = vmatpush3.msra.mxu0 %v4955_v19  ;;  %6626 = vst [vmem:[#allocation147_spill] sm:$0xff] %v5704_v24  ;;  %v5708_v19 = vld [vmem:[#allocation12] sm:$0xff]  ;;  %6631 = vst [vmem:[#allocation152_spill] sm:$0xff] %v5732_v4 }
 0x472   :  { %1480 = vmatprep.subr.mxu1 %v5696_v63  ;;  %3764 = vmatprep.subr.mxu0 %v6527_v62  ;;  %6627 = vst [vmem:[#allocation148_spill] sm:$0xff] %v5708_v19  ;;  %6632 = vst [vmem:[#allocation153_spill] sm:$0xff] %v5736_v9 }
 0x473   :  { %1481 = vmatpush1.msra.mxu1 %v5700_v17  ;;  %3765 = vmatpush3.msra.mxu0 %v4961_v21  ;;  %v5720_v21 = vld [vmem:[#allocation15 + $0xf8] sm:$0xff] }
 0x474   :  { %1482 = vmatprep.subr.mxu1 %v5704_v24  ;;  %3766 = vmatprep.subr.mxu0 %v6527_v62  ;;  %6628 = vst [vmem:[#allocation149_spill] sm:$0xff] %v5720_v21 }
 0x475   :  { %1483 = vmatpush1.msra.mxu1 %v5708_v19  ;;  %1516 = vmatprep.mubr.f32.mxu1 %v6527_v62  ;;  %v5724_v19 = vld [vmem:[#allocation15 + $0xf0] sm:$0xff] }
 0x476   :  { %3767 = vmatpush3.msra.mxu0 %v4967_v23  ;;  %3768 = vmatprep.mubr.msk.f32.mxu0 %vm4628_vm0, %v6527_v62  ;;  %6629 = vst [vmem:[#allocation150_spill] sm:$0xff] %v5724_v19  ;;  %v5728_v23 = vld [vmem:[#allocation15 + $0xe8] sm:$0xff] }
 0x477   :  { %1517 = vmatmul.mubr.f32.vlgmr.msra.gmra.mxu1 %v5713_v41  ;;  %3769 = vmatmul.mubr.f32.vlgmr.msra.gmra.mxu0 %v5713_v41  ;;  %6630 = vst [vmem:[#allocation151_spill] sm:$0xff] %v5728_v23 }
 0x478   :  { %1614 = vmatprep.subr.mxu1 %v5720_v21  ;;  %3771 = vmatprep.subr.mxu0 %v6527_v62 }
 0x479   :  { %1615 = vmatpush1.msra.mxu1 %v5724_v19  ;;  %3772 = vmatpush3.msra.mxu0 %v4983_v25  ;;  %v5740_v19 = vld [vmem:[#allocation15 + $0xd0] sm:$0xff]  ;;  %v5744_v25 = vld [vmem:[#allocation15 + $0xc8] sm:$0xff] }
 0x47a   :  { %1616 = vmatprep.subr.mxu1 %v5728_v23  ;;  %3773 = vmatprep.subr.mxu0 %v6527_v62  ;;  %6633 = vst [vmem:[#allocation154_spill] sm:$0xff] %v5740_v19  ;;  %6634 = vst [vmem:[#allocation155_spill] sm:$0xff] %v5744_v25 }
 0x47b   :  { %1617 = vmatpush1.msra.mxu1 %v5732_v4  ;;  %3774 = vmatpush3.msra.mxu0 %v4985_v27  ;;  %v5748_v4 = vld [vmem:[#allocation15 + $0xc0] sm:$0xff]  ;;  %v5752_v27 = vld [vmem:[#allocation15 + $0xb8] sm:$0xff] }
 0x47c   :  { %1618 = vmatprep.subr.mxu1 %v5736_v9  ;;  %3775 = vmatprep.subr.mxu0 %v6527_v62  ;;  %6635 = vst [vmem:[#allocation156_spill] sm:$0xff] %v5748_v4  ;;  %6636 = vst [vmem:[#allocation157_spill] sm:$0xff] %v5752_v27 }
 0x47d   :  { %1619 = vmatpush1.msra.mxu1 %v5740_v19  ;;  %3776 = vmatpush3.msra.mxu0 %v4991_v29  ;;  %v5756_v19 = vld [vmem:[#allocation15 + $0xb0] sm:$0xff]  ;;  %v5760_v29 = vld [vmem:[#allocation15 + $0xa8] sm:$0xff] }
 0x47e   :  { %1620 = vmatprep.subr.mxu1 %v5744_v25  ;;  %3777 = vmatprep.subr.mxu0 %v6527_v62  ;;  %6637 = vst [vmem:[#allocation158_spill] sm:$0xff] %v5756_v19  ;;  %6638 = vst [vmem:[#allocation159_spill] sm:$0xff] %v5760_v29 }
 0x47f   :  { %1621 = vmatpush1.msra.mxu1 %v5748_v4  ;;  %3778 = vmatpush3.msra.mxu0 %v4995_v31  ;;  %v5764_v4 = vld [vmem:[#allocation15 + $0xa0] sm:$0xff]  ;;  %v5768_v31 = vld [vmem:[#allocation15 + $0x98] sm:$0xff] }
 0x480   :  { %1622 = vmatprep.subr.mxu1 %v5752_v27  ;;  %3779 = vmatprep.subr.mxu0 %v6527_v62  ;;  %6639 = vst [vmem:[#allocation160_spill] sm:$0xff] %v5764_v4  ;;  %6640 = vst [vmem:[#allocation161_spill] sm:$0xff] %v5768_v31 }
 0x481   :  { %1623 = vmatpush1.msra.mxu1 %v5756_v19  ;;  %3780 = vmatpush3.msra.mxu0 %v4999_v33  ;;  %v5772_v19 = vld [vmem:[#allocation15 + $0x90] sm:$0xff]  ;;  %v5776_v33 = vld [vmem:[#allocation15 + $0x88] sm:$0xff] }
 0x482   :  { %1624 = vmatprep.subr.mxu1 %v5760_v29  ;;  %3781 = vmatprep.subr.mxu0 %v6527_v62  ;;  %6641 = vst [vmem:[#allocation162_spill] sm:$0xff] %v5772_v19  ;;  %6642 = vst [vmem:[#allocation163_spill] sm:$0xff] %v5776_v33 }
 0x483   :  { %1625 = vmatpush1.msra.mxu1 %v5764_v4  ;;  %3782 = vmatpush3.msra.mxu0 %v5003_v35  ;;  %v5780_v4 = vld [vmem:[#allocation15 + $0x80] sm:$0xff] }
 0x484   :  { %1626 = vmatprep.subr.mxu1 %v5768_v31  ;;  %3783 = vmatprep.subr.mxu0 %v6527_v62  ;;  %6643 = vst [vmem:[#allocation164_spill] sm:$0xff] %v5780_v4  ;;  %v5783_v35 = vld [vmem:[#allocation14 + $0x40] sm:$0xff]  ;;  %v5786_v31 = vld [vmem:[#allocation15 + $0x78] sm:$0xff] }
 0x485   :  { %1627 = vmatpush1.msra.mxu1 %v5772_v19  ;;  %3784 = vmatpush3.msra.mxu0 %v5007_v37  ;;  %6644 = vst [vmem:[#allocation165_spill] sm:$0xff] %v5783_v35  ;;  %6645 = vst [vmem:[#allocation166_spill] sm:$0xff] %v5786_v31  ;;  %v5790_v37 = vld [vmem:[#allocation15 + $0x70] sm:$0xff]  ;;  %v5796_v19 = vld [vmem:[#allocation15 + $0x68] sm:$0xff] }
 0x486   :  { %1628 = vmatprep.subr.mxu1 %v5776_v33  ;;  %3785 = vmatprep.subr.mxu0 %v6527_v62  ;;  %6646 = vst [vmem:[#allocation167_spill] sm:$0xff] %v5790_v37  ;;  %v5793_v33 = vld [vmem:[#allocation14 + $0x38] sm:$0xff]  ;;  %6648 = vst [vmem:[#allocation169_spill] sm:$0xff] %v5796_v19 }
 0x487   :  { %1629 = vmatpush1.msra.mxu1 %v5780_v4  ;;  %3786 = vmatpush3.msra.mxu0 %v5783_v35  ;;  %6647 = vst [vmem:[#allocation168_spill] sm:$0xff] %v5793_v33  ;;  %v5800_v35 = vld [vmem:[#allocation15 + $0x60] sm:$0xff]  ;;  %v5806_v4 = vld [vmem:[#allocation15 + $0x58] sm:$0xff] }
 0x488   :  { %1630 = vmatprep.subr.mxu1 %v5786_v31  ;;  %3787 = vmatprep.subr.mxu0 %v6527_v62  ;;  %6649 = vst [vmem:[#allocation170_spill] sm:$0xff] %v5800_v35  ;;  %v5803_v31 = vld [vmem:[#allocation14 + $0x30] sm:$0xff]  ;;  %6651 = vst [vmem:[#allocation172_spill] sm:$0xff] %v5806_v4 }
 0x489   :  { %1631 = vmatpush1.msra.mxu1 %v5790_v37  ;;  %3788 = vmatpush3.msra.mxu0 %v5793_v33  ;;  %6650 = vst [vmem:[#allocation171_spill] sm:$0xff] %v5803_v31  ;;  %v5810_v33 = vld [vmem:[#allocation15 + $0x50] sm:$0xff]  ;;  %v5816_v37 = vld [vmem:[#allocation15 + $0x48] sm:$0xff] }
 0x48a   :  { %1632 = vmatprep.subr.mxu1 %v5796_v19  ;;  %3789 = vmatprep.subr.mxu0 %v6527_v62  ;;  %6652 = vst [vmem:[#allocation173_spill] sm:$0xff] %v5810_v33  ;;  %v5813_v19 = vld [vmem:[#allocation14 + $0x28] sm:$0xff]  ;;  %6654 = vst [vmem:[#allocation175_spill] sm:$0xff] %v5816_v37 }
 0x48b   :  { %1633 = vmatpush1.msra.mxu1 %v5800_v35  ;;  %3790 = vmatpush3.msra.mxu0 %v5803_v31  ;;  %6653 = vst [vmem:[#allocation174_spill] sm:$0xff] %v5813_v19  ;;  %v5820_v31 = vld [vmem:[#allocation15 + $0x40] sm:$0xff]  ;;  %v5826_v35 = vld [vmem:[#allocation15 + $0x38] sm:$0xff] }
 0x48c   :  { %1634 = vmatprep.subr.mxu1 %v5806_v4  ;;  %3791 = vmatprep.subr.mxu0 %v6527_v62  ;;  %6655 = vst [vmem:[#allocation176_spill] sm:$0xff] %v5820_v31  ;;  %v5823_v4 = vld [vmem:[#allocation14 + $0x20] sm:$0xff]  ;;  %6657 = vst [vmem:[#allocation178_spill] sm:$0xff] %v5826_v35 }
 0x48d   :  { %1635 = vmatpush1.msra.mxu1 %v5810_v33  ;;  %3792 = vmatpush3.msra.mxu0 %v5813_v19  ;;  %6656 = vst [vmem:[#allocation177_spill] sm:$0xff] %v5823_v4  ;;  %v5830_v19 = vld [vmem:[#allocation15 + $0x30] sm:$0xff]  ;;  %v5836_v33 = vld [vmem:[#allocation15 + $0x28] sm:$0xff] }
 0x48e   :  { %1636 = vmatprep.subr.mxu1 %v5816_v37  ;;  %3793 = vmatprep.subr.mxu0 %v6527_v62  ;;  %6658 = vst [vmem:[#allocation179_spill] sm:$0xff] %v5830_v19  ;;  %v5833_v37 = vld [vmem:[#allocation14 + $0x18] sm:$0xff]  ;;  %6660 = vst [vmem:[#allocation181_spill] sm:$0xff] %v5836_v33 }
 0x48f   :  { %1637 = vmatpush1.msra.mxu1 %v5820_v31  ;;  %3794 = vmatpush3.msra.mxu0 %v5823_v4  ;;  %6659 = vst [vmem:[#allocation180_spill] sm:$0xff] %v5833_v37  ;;  %v5840_v4 = vld [vmem:[#allocation15 + $0x20] sm:$0xff]  ;;  %v5846_v31 = vld [vmem:[#allocation15 + $0x18] sm:$0xff] }
 0x490   :  { %1638 = vmatprep.subr.mxu1 %v5826_v35  ;;  %3795 = vmatprep.subr.mxu0 %v6527_v62  ;;  %6661 = vst [vmem:[#allocation182_spill] sm:$0xff] %v5840_v4  ;;  %v5843_v35 = vld [vmem:[#allocation14 + $0x10] sm:$0xff]  ;;  %6663 = vst [vmem:[#allocation184_spill] sm:$0xff] %v5846_v31 }
 0x491   :  { %1639 = vmatpush1.msra.mxu1 %v5830_v19  ;;  %3796 = vmatpush3.msra.mxu0 %v5833_v37  ;;  %6662 = vst [vmem:[#allocation183_spill] sm:$0xff] %v5843_v35  ;;  %v5850_v37 = vld [vmem:[#allocation15 + $0x10] sm:$0xff]  ;;  %v5856_v19 = vld [vmem:[#allocation15 + $0x8] sm:$0xff] }
 0x492   :  { %1640 = vmatprep.subr.mxu1 %v5836_v33  ;;  %3797 = vmatprep.subr.mxu0 %v6527_v62  ;;  %6664 = vst [vmem:[#allocation185_spill] sm:$0xff] %v5850_v37  ;;  %v5853_v33 = vld [vmem:[#allocation14 + $0x8] sm:$0xff]  ;;  %6666 = vst [vmem:[#allocation187_spill] sm:$0xff] %v5856_v19 }
 0x493   :  { %1641 = vmatpush1.msra.mxu1 %v5840_v4  ;;  %3798 = vmatpush3.msra.mxu0 %v5843_v35  ;;  %6665 = vst [vmem:[#allocation186_spill] sm:$0xff] %v5853_v33  ;;  %v5860_v35 = vld [vmem:[#allocation15] sm:$0xff] }
 0x494   :  { %1642 = vmatprep.subr.mxu1 %v5846_v31  ;;  %3799 = vmatprep.subr.mxu0 %v6527_v62  ;;  %6667 = vst [vmem:[#allocation188_spill] sm:$0xff] %v5860_v35  ;;  %v5864_v31 = vld [vmem:[#allocation14] sm:$0xff] }
 0x495   :  { %1643 = vmatpush1.msra.mxu1 %v5850_v37  ;;  %3800 = vmatpush3.msra.mxu0 %v5853_v33  ;;  %6668 = vst [vmem:[#allocation189_spill] sm:$0xff] %v5864_v31 }
 0x496   :  { %1644 = vmatprep.subr.mxu1 %v5856_v19  ;;  %3801 = vmatprep.subr.mxu0 %v6527_v62 }
 0x497   :  { %1645 = vmatpush1.msra.mxu1 %v5860_v35  ;;  %1678 = vmatprep.mubr.f32.mxu1 %v6527_v62 }
 0x498   :  { %3802 = vmatpush3.msra.mxu0 %v5864_v31  ;;  %3803 = vmatprep.mubr.msk.f32.mxu0 %vm4628_vm0, %v6527_v62 }
 0x499   :  { %3806 = vmatprep.subr.mxu1 %v5177_v39  ;;  %3847 = vmatprep.subr.mxu0 %v6527_v62 }
 0x516   :  { %v1448_v19 = vpop.f32.mrf.mxu0  ;;  %v1377_v37 = vpop.f32.mrf.mxu1 }
 0x517   :  { %v1378_v35 = vadd.f32 %v1377_v37, %v5145_v46 }
 0x518   :  { %v3735_v33 = vpop.f32.mrf.mxu0  ;;  %v1379_v4 = vpop.f32.mrf.mxu1 }
 0x519   :  { %v1380_v17 = vadd.f32 %v1379_v4, %v5163_v47 }
 0x537   :  { %v1518_v29 = vpop.f32.mrf.mxu1  ;;  %v1589_v27 = vpop.f32.mrf.mxu0 }
 0x538   :  { %v1519_v25 = vadd.f32 %v1518_v29, %v5148_v1  ;;  %v1590_v37 = vadd.f32 %v1589_v27, %v5168_v54  ;;  %v6688_v27 = vld [vmem:[#allocation58_spill] sm:$0xff] }
 0x539   :  { %v1520_v9 = vpop.f32.mrf.mxu1  ;;  %v3770_v23 = vpop.f32.mrf.mxu0 }
 0x53a   :  { %v1593_v31 = vadd.f32 %v1519_v25, %v1378_v35  ;;  %v1521_v24 = vadd.f32 %v1520_v9, %v5160_v0  ;;  %v1449_v23 = vadd.f32 %v1448_v19, %v5170_v20  ;;  %v6686_v19 = vld [vmem:[#allocation57_spill] sm:$0xff] }
 0x53b   :  { %v4104_v35 = vld [vmem:[#allocation9 + $0x24] ss:$8 sps:$4 sm:$0x77]  }
 0x53c   :  { %v3240_v21 = vmul.f32 -1.442695, %v1593_v31  ;;  %v1600_v63 = vadd.f32 %v1521_v24, %v1380_v17  ;;  %v6685_v17 = vld [vmem:[#allocation110_spill] sm:$0xff] }
 0x53e   :  { %4127 = vpow2.f32 %v3240_v21  ;;  %v3241_v13 = vmul.f32 -1.442695, %v1600_v63 }
 0x540   :  { %4129 = vpow2.f32 %v3241_v13 }
 0x54b   :  { %v4128_v33 = vpop.eup %4127 }
 0x54c   :  { %v1597_v15 = vadd.f32 1.0, %v4128_v33  ;;  %v6689_v33 = vld [vmem:[#allocation30_spill] sm:$0xff] }
 0x54d   :  { %v4130_v50 = vpop.eup %4129 }
 0x54e   :  { %4131 = vrcp.f32 %v1597_v15  ;;  %v1604_v34 = vadd.f32 1.0, %v4130_v50  ;;  %v6683_v50 = vld [vmem:[#allocation109_spill] sm:$0xff]  ;;  %v6684_v15 = vld [vmem:[#allocation56_spill] sm:$0xff] }
 0x550   :  { %4133 = vrcp.f32 %v1604_v34  ;;  %v6676_v34 = vld [vmem:[#allocation52_spill] sm:$0xff] }
 0x55b   :  { %v4132_v29 = vpop.eup %4131 }
 0x55c   :  { %v1607_v25 = vmul.f32 %v4132_v29, %v1590_v37  ;;  %v5949_v37 = vrot.slane %v4104_v35, %v6689_v33 }
 0x55d   :  { %v4134_v9 = vpop.eup %4133 }
 0x55e   :  { %v1608_v31 = vadd.f32 %v1607_v25, %v1449_v23  ;;  %v1610_v4 = vsub.f32 1.0, %v4134_v9  ;;  %v1612_v63 = vmul.f32 %v4134_v9, %v5713_v41  ;;  %v6687_v41 = vld [vmem:[#allocation111_spill] sm:$0xff]  ;;  %v2520_v29 = vcombine.high %v5949_v37, %v5949_v37  ;;  %v6690_v23 = vld [vmem:[#allocation60_spill] sm:$0xff] }
 0x55f   :  { %v1719_v25 = vcombine.high %v6690_v23, %v6690_v23  ;;  %v6692_v9 = vld [vmem:[#allocation31_spill] sm:$0xff] }
 0x560   :  { %4135 = vtanh.f32 %v1608_v31  ;;  %v6691_v31 = vld [vmem:[#allocation44_spill] sm:$0xff] }
 0x56d   :  { %v4136_v21 = vpop.eup %4135 }
 0x56e   :  { %v1611_v24 = vmul.f32 %v4136_v21, %v1610_v4  ;;  %v1753_v4 = vrot.slane %v6692_v9, %v6691_v31  ;;  %v6693_v21 = vld [vmem:[#allocation36_spill] sm:$0xff] }
 0x570   :  { %v5878_v13 = vadd.f32 %v1612_v63, %v1611_v24  ;;  %v1761_v24 = vrot.slane %v6693_v21, %v6691_v31  ;;  %v5960_v63 = vrot.slane %v2520_v29, %v6689_v33  ;;  %v6702_v29 = vld [vmem:[#allocation63_spill] sm:$0xff] }
 0x571   :  { %v1785_v23 = vrot.slane %v6702_v29, %v6691_v31  ;;  %v6711_v29 = vld [vmem:[#allocation72_spill] sm:$0xff] }
 0x572   :  { %1679 = vmatmul.mubr.f32.vlgmr.msra.gmra.mxu1 %v5878_v13  ;;  %3804 = vmatmul.mubr.f32.vlgmr.msra.gmra.mxu0 %v5878_v13 }
 0x573   :  { %3807 = vmatpush3.msra.mxu1 %v5177_v39  ;;  %3848 = vmatpush3.msra.mxu0 %v5417_v30  ;;  %v6669_v39 = vld [vmem:[#allocation102_spill] sm:$0xff]  ;;  %v6682_v30 = vld [vmem:[#allocation55_spill] sm:$0xff] }
 0x574   :  { %3808 = vmatprep.subr.mxu1 %v5181_v2  ;;  %3849 = vmatprep.subr.mxu0 %v6527_v62  ;;  %6694 = vst [vmem:[#allocation102_spill] sm:$0xff] %v5960_v63 }
 0x575   :  { %3809 = vmatpush3.msra.mxu1 %v5181_v2  ;;  %3850 = vmatpush3.msra.mxu0 %v5421_v59  ;;  %v6670_v2 = vld [vmem:[#allocation49_spill] sm:$0xff]  ;;  %v6679_v59 = vld [vmem:[#allocation107_spill] sm:$0xff] }
 0x576   :  { %3810 = vmatprep.subr.mxu1 %v5187_v53  ;;  %3851 = vmatprep.subr.mxu0 %v6527_v62 }
 0x577   :  { %3811 = vmatpush3.msra.mxu1 %v5187_v53  ;;  %3852 = vmatpush3.msra.mxu0 %v5425_v45  ;;  %v6671_v53 = vld [vmem:[#allocation103_spill] sm:$0xff]  ;;  %v6680_v45 = vld [vmem:[#allocation54_spill] sm:$0xff] }
 0x578   :  { %3812 = vmatprep.subr.mxu1 %v5193_v38  ;;  %3853 = vmatprep.subr.mxu0 %v6527_v62 }
 0x579   :  { %3813 = vmatpush3.msra.mxu1 %v5193_v38  ;;  %3854 = vmatpush3.msra.mxu0 %v5429_v40  ;;  %v6672_v38 = vld [vmem:[#allocation50_spill] sm:$0xff]  ;;  %v6681_v40 = vld [vmem:[#allocation108_spill] sm:$0xff] }
 0x57a   :  { %3814 = vmatprep.subr.mxu1 %v5197_v55  ;;  %3855 = vmatprep.subr.mxu0 %v6527_v62 }
 0x57b   :  { %3815 = vmatpush3.msra.mxu1 %v5197_v55  ;;  %3856 = vmatpush3.msra.mxu0 %v5433_v16  ;;  %v6673_v55 = vld [vmem:[#allocation104_spill] sm:$0xff]  ;;  %v6677_v16 = vld [vmem:[#allocation106_spill] sm:$0xff] }
 0x57c   :  { %3816 = vmatprep.subr.mxu1 %v5201_v57  ;;  %3857 = vmatprep.subr.mxu0 %v6527_v62 }
 0x57d   :  { %3817 = vmatpush3.msra.mxu1 %v5201_v57  ;;  %3858 = vmatpush3.msra.mxu0 %v5437_v44  ;;  %v6674_v57 = vld [vmem:[#allocation51_spill] sm:$0xff]  ;;  %v6678_v44 = vld [vmem:[#allocation53_spill] sm:$0xff] }
 0x57e   :  { %3818 = vmatprep.subr.mxu1 %v5205_v28  ;;  %3859 = vmatprep.subr.mxu0 %v6527_v62 }
 0x57f   :  { %3819 = vmatpush3.msra.mxu1 %v5205_v28  ;;  %3860 = vmatpush3.msra.mxu0 %v6669_v39  ;;  %v6675_v28 = vld [vmem:[#allocation105_spill] sm:$0xff]  ;;  %v6695_v39 = vld [vmem:[#allocation38_spill] sm:$0xff] }
 0x580   :  { %3820 = vmatprep.subr.mxu1 %v6670_v2  ;;  %3861 = vmatprep.subr.mxu0 %v6527_v62 }
 0x581   :  { %3821 = vmatpush3.msra.mxu1 %v6670_v2  ;;  %3862 = vmatpush3.msra.mxu0 %v6671_v53  ;;  %v1769_v2 = vrot.slane %v6695_v39, %v6691_v31 }
 0x582   :  { %3822 = vmatprep.subr.mxu1 %v6672_v38  ;;  %3863 = vmatprep.subr.mxu0 %v6527_v62 }
 0x583   :  { %3823 = vmatpush3.msra.mxu1 %v6672_v38  ;;  %3864 = vmatpush3.msra.mxu0 %v6673_v55  ;;  %v6696_v55 = vld [vmem:[#allocation61_spill] sm:$0xff] }
 0x584   :  { %3824 = vmatprep.subr.mxu1 %v6674_v57  ;;  %3865 = vmatprep.subr.mxu0 %v6527_v62 }
 0x585   :  { %3825 = vmatpush3.msra.mxu1 %v6674_v57  ;;  %3866 = vmatpush3.msra.mxu0 %v6675_v28  ;;  %v2599_v28 = vrot.slane %v5960_v63, %v5029_v12 }
 0x586   :  { %3826 = vmatprep.subr.mxu1 %v6676_v34  ;;  %3867 = vmatprep.subr.mxu0 %v6527_v62 }
 0x587   :  { %3827 = vmatpush3.msra.mxu1 %v6676_v34  ;;  %3868 = vmatpush3.msra.mxu0 %v6677_v16  ;;  %v5968_v34 = vrot.slane %v1719_v25, %v6689_v33 }
 0x588   :  { %3828 = vmatprep.subr.mxu1 %v6678_v44  ;;  %3869 = vmatprep.subr.mxu0 %v6527_v62 }
 0x589   :  { %3829 = vmatpush3.msra.mxu1 %v6678_v44  ;;  %3870 = vmatpush3.msra.mxu0 %v6679_v59  ;;  %v6697_v59 = vld [vmem:[#allocation62_spill] sm:$0xff] }
 0x58a   :  { %3830 = vmatprep.subr.mxu1 %v6680_v45  ;;  %3871 = vmatprep.subr.mxu0 %v6527_v62 }
 0x58b   :  { %3831 = vmatpush3.msra.mxu1 %v6680_v45  ;;  %3872 = vmatpush3.msra.mxu0 %v6681_v40  ;;  %v1810_v45 = vadd.f32 %v1753_v4, %v6697_v59  ;;  %v6698_v40 = vld [vmem:[#allocation64_spill] sm:$0xff]  ;;  %v6704_v4 = vld [vmem:[#allocation59_spill] sm:$0xff] }
 0x58c   :  { %3832 = vmatprep.subr.mxu1 %v6682_v30  ;;  %3873 = vmatprep.subr.mxu0 %v6527_v62 }
 0x58d   :  { %3833 = vmatpush3.msra.mxu1 %v6682_v30  ;;  %3874 = vmatpush3.msra.mxu0 %v6683_v50  ;;  %v1812_v30 = vadd.f32 %v1761_v24, %v6698_v40  ;;  %v1793_v24 = vrot.slane %v5968_v34, %v6691_v31 }
 0x58e   :  { %3834 = vmatprep.subr.mxu1 %v6684_v15  ;;  %3875 = vmatprep.subr.mxu0 %v6527_v62 }
 0x58f   :  { %3835 = vmatpush3.msra.mxu1 %v6684_v15  ;;  %3876 = vmatpush3.msra.mxu0 %v6685_v17  ;;  %v6699_v15 = vld [vmem:[#allocation33_spill] sm:$0xff] }
 0x590   :  { %3836 = vmatprep.subr.mxu1 %v6686_v19  ;;  %3877 = vmatprep.subr.mxu0 %v6527_v62 }
 0x591   :  { %3837 = vmatpush3.msra.mxu1 %v6686_v19  ;;  %3878 = vmatpush3.msra.mxu0 %v6687_v41  ;;  %v6700_v19 = vld [vmem:[#allocation67_spill] sm:$0xff] }
 0x592   :  { %3879 = vmatprep.mubr.msk.f32.mxu0 %vm4628_vm0, %v6527_v62  ;;  %2110 = vmatprep.subr.mxu1 %v6688_v27  ;;  %v1814_v41 = vadd.f32 %v1769_v2, %v6700_v19  ;;  %v6701_v27 = vld [vmem:[#allocation42_spill] sm:$0xff]  ;;  %v6706_v2 = vld [vmem:[#allocation71_spill] sm:$0xff] }
 0x593   :  { %3882 = vmatprep.subr.mxu0 %v6527_v62  ;;  %v1777_v35 = vrot.slane %v6701_v27, %v6691_v31  ;;  %v6710_v27 = vld [vmem:[#allocation70_spill] sm:$0xff] }
 0x632   :  { %v1680_v53 = vpop.f32.mrf.mxu1  ;;  %v1888_v38 = vpop.f32.mrf.mxu0 }
 0x633   :  { %v1889_v57 = vadd.f32 %v6696_v55, %v1888_v38  ;;  %v5984_v39 = vadd.f32 %v1680_v53, %v6704_v4  ;;  %v1816_v55 = vadd.f32 %v1777_v35, %v6706_v2 }
 0x634   :  { %v1682_v16 = vpop.f32.mrf.mxu1  ;;  %v3805_v44 = vpop.f32.mrf.mxu0 }
 0x635   :  { %v1892_v50 = vmul.f32 0.35355338, %v1889_v57  ;;  %v5973_v17 = vadd.f32 %v1682_v16, %v6699_v15  ;;  %6705 = vst [vmem:[#allocation103_spill] sm:$0xff] %v5984_v39  ;;  %v6707_v57 = vld [vmem:[#allocation74_spill] sm:$0xff]  ;;  %v6708_v44 = vld [vmem:[#allocation68_spill] sm:$0xff] }
 0x636   :  { %v1818_v16 = vadd.f32 %v1785_v23, %v6707_v57  ;;  %v6714_v23 = vld [vmem:[#allocation76_spill] sm:$0xff] }
 0x637   :  { %v5981_v25 = vadd.f32 %v2599_v28, %v5973_v17  ;;  %v1893_v9 = vmul.f32 %v1892_v50, %v1810_v45  ;;  %v1894_v21 = vmul.f32 %v1892_v50, %v1812_v30  ;;  %v1895_v38 = vmul.f32 %v1892_v50, %v1814_v41  ;;  %v6709_v30 = vld [vmem:[#allocation69_spill] sm:$0xff] }
 0x638   :  { %v1820_v28 = vadd.f32 %v1793_v24, %v5984_v39  ;;  %v1896_v45 = vmul.f32 %v1892_v50, %v1816_v55  ;;  %v1897_v53 = vmul.f32 %v1892_v50, %v1818_v16  ;;  %v6712_v41 = vld [vmem:[#allocation73_spill] sm:$0xff]  ;;  %v6716_v24 = vld [vmem:[#allocation78_spill] sm:$0xff]  ;;  %v6718_v55 = vld [vmem:[#allocation80_spill] sm:$0xff] }
 0x639   :  { %6703 = vst [vmem:[#allocation49_spill] sm:$0xff] %v5981_v25  ;;  %3838 = vmatprep.mubr.f32.mxu1 %v1893_v9  ;;  %v6713_v9 = vld [vmem:[#allocation75_spill] sm:$0xff]  ;;  %v6719_v16 = vld [vmem:[#allocation81_spill] sm:$0xff] }
 0x63a   :  { %3839 = vmatmul.mubr.f32.vlgmr.msra.gmra.mxu1 %v1894_v21  ;;  %v1898_v35 = vmul.f32 %v1892_v50, %v1820_v28  ;;  %v6715_v21 = vld [vmem:[#allocation77_spill] sm:$0xff]  ;;  %v6721_v50 = vld [vmem:[#allocation83_spill] sm:$0xff]  ;;  %v6722_v28 = vld [vmem:[#allocation84_spill] sm:$0xff] }
 0x63b   :  { %3841 = vmatprep.mubr.f32.mxu1 %v1895_v38  ;;  %2111 = vmatpush1.msra.mxu1 %v6708_v44  ;;  %v6717_v38 = vld [vmem:[#allocation79_spill] sm:$0xff]  ;;  %v6720_v44 = vld [vmem:[#allocation82_spill] sm:$0xff] }
 0x63c   :  { %2112 = vmatprep.subr.mxu1 %v6709_v30  ;;  %v6724_v30 = vld [vmem:[#allocation86_spill] sm:$0xff] }
 0x63d   :  { %2113 = vmatpush1.msra.mxu1 %v6710_v27  ;;  %v6726_v27 = vld [vmem:[#allocation88_spill] sm:$0xff] }
 0x63e   :  { %3842 = vmatmul.mubr.f32.gmra.mxu1 %v1896_v45  ;;  %2114 = vmatprep.subr.mxu1 %v6711_v29  ;;  %v6723_v45 = vld [vmem:[#allocation85_spill] sm:$0xff] }
 0x63f   :  { %3844 = vmatprep.mubr.f32.mxu1 %v1897_v53  ;;  %2115 = vmatpush1.msra.mxu1 %v6712_v41  ;;  %v6725_v53 = vld [vmem:[#allocation87_spill] sm:$0xff]  ;;  %v6727_v29 = vld [vmem:[#allocation89_spill] sm:$0xff]  ;;  %v6728_v41 = vld [vmem:[#allocation90_spill] sm:$0xff] }
 0x640   :  { %2116 = vmatprep.subr.mxu1 %v6713_v9  ;;  %v6730_v9 = vld [vmem:[#allocation92_spill] sm:$0xff] }
 0x641   :  { %2117 = vmatpush1.msra.mxu1 %v6714_v23  ;;  %v6731_v23 = vld [vmem:[#allocation93_spill] sm:$0xff] }
 0x642   :  { %3845 = vmatmul.mubr.f32.gmra.mxu1 %v1898_v35  ;;  %2118 = vmatprep.subr.mxu1 %v6715_v21  ;;  %v6729_v35 = vld [vmem:[#allocation91_spill] sm:$0xff]  ;;  %v6732_v21 = vld [vmem:[#allocation94_spill] sm:$0xff] }
 0x643   :  { %2119 = vmatpush1.msra.mxu1 %v6716_v24  ;;  %2174 = vmatprep.mubr.f32.mxu1 %v6527_v62  ;;  %v6733_v24 = vld [vmem:[#allocation95_spill] sm:$0xff] }
 0x644   :  { %2120 = vmatprep.subr.mxu1 %v6717_v38  ;;  %v6734_v38 = vld [vmem:[#allocation96_spill] sm:$0xff] }
 0x645   :  { %2121 = vmatpush1.msra.mxu1 %v6718_v55  ;;  %v6735_v55 = vld [vmem:[#allocation97_spill] sm:$0xff] }
 0x646   :  { %2122 = vmatprep.subr.mxu1 %v6719_v16  ;;  %v6736_v16 = vld [vmem:[#allocation98_spill] sm:$0xff] }
 0x647   :  { %2123 = vmatpush1.msra.mxu1 %v6720_v44  ;;  %v6737_v44 = vld [vmem:[#allocation99_spill] sm:$0xff] }
 0x648   :  { %2124 = vmatprep.subr.mxu1 %v6721_v50  ;;  %v6738_v50 = vld [vmem:[#allocation100_spill] sm:$0xff] }
 0x649   :  { %2125 = vmatpush1.msra.mxu1 %v6722_v28  ;;  %v6739_v28 = vld [vmem:[#allocation101_spill] sm:$0xff] }
 0x64a   :  { %2126 = vmatprep.subr.mxu1 %v6723_v45 }
 0x64b   :  { %2127 = vmatpush1.msra.mxu1 %v6724_v30 }
 0x64c   :  { %2128 = vmatprep.subr.mxu1 %v6725_v53 }
 0x64d   :  { %2129 = vmatpush1.msra.mxu1 %v6726_v27 }
 0x64e   :  { %2130 = vmatprep.subr.mxu1 %v6727_v29 }
 0x64f   :  { %2131 = vmatpush1.msra.mxu1 %v6728_v41 }
 0x650   :  { %2132 = vmatprep.subr.mxu1 %v6729_v35 }
 0x651   :  { %2133 = vmatpush1.msra.mxu1 %v6730_v9 }
 0x652   :  { %2134 = vmatprep.subr.mxu1 %v6731_v23 }
 0x653   :  { %2135 = vmatpush1.msra.mxu1 %v6732_v21 }
 0x654   :  { %2136 = vmatprep.subr.mxu1 %v6733_v24 }
 0x655   :  { %2137 = vmatpush1.msra.mxu1 %v6734_v38 }
 0x656   :  { %2138 = vmatprep.subr.mxu1 %v6735_v55 }
 0x657   :  { %2139 = vmatpush1.msra.mxu1 %v6736_v16 }
 0x658   :  { %2140 = vmatprep.subr.mxu1 %v6737_v44 }
 0x659   :  { %2141 = vmatpush1.msra.mxu1 %v6738_v50 }
 0x65a   :  { %2251 = vmatprep.subr.mxu1 %v6739_v28 }
 0x6fa   :  { %v3840_v45 = vpop.f32.mrf.mxu1 }
 0x6fc   :  { %v1965_v30 = vpop.f32.mrf.mxu1 }
 0x6fe   :  { %v3843_v53 = vpop.f32.mrf.mxu1 }
 0x700   :  { %v1975_v27 = vpop.f32.mrf.mxu1 }
 0x701   :  { %v1997_v23 = vmax.f32 %v1975_v27, %v3843_v53 }
 0x702   :  { %v3846_v29 = vpop.f32.mrf.mxu1 }
 0x703   :  { %v1995_v35 = vmax.f32 %v3840_v45, %v3846_v29 }
 0x704   :  { %v1985_v41 = vpop.f32.mrf.mxu1 }
 0x705   :  { %v1994_v9 = vmax.f32 %v1965_v30, %v1985_v41 }
 0x707   :  { %v1996_v21 = vmax.f32 %v1994_v9, %v1995_v35 }
 0x709   :  { %v1998_v24 = vmax.f32 %v1996_v21, %v1997_v23 }
 0x70b   :  { %v1999_v38 = vsub.f32 %v1965_v30, %v1998_v24  ;;  %v2000_v55 = vsub.f32 %v3840_v45, %v1998_v24  ;;  %v2001_v16 = vsub.f32 %v1975_v27, %v1998_v24  ;;  %v2002_v25 = vsub.f32 %v3843_v53, %v1998_v24  ;;  %v6740_v30 = vld [vmem:[#allocation34_spill] sm:$0xff] }
 0x70c   :  { %v2003_v44 = vsub.f32 %v1985_v41, %v1998_v24  ;;  %v2004_v28 = vsub.f32 %v3846_v29, %v1998_v24  ;;  %v6741_v41 = vld [vmem:[#allocation40_spill] sm:$0xff]  ;;  %v6742_v29 = vld [vmem:[#allocation45_spill] sm:$0xff] }
 0x70d   :  { %v2005_v15 = vmul.f32 1.442695, %v1999_v38  ;;  %v2007_v50 = vmul.f32 1.442695, %v2000_v55  ;;  %v2009_v39 = vmul.f32 1.442695, %v2001_v16 }
 0x70e   :  { %v2011_v4 = vmul.f32 1.442695, %v2002_v25  ;;  %v2013_v63 = vmul.f32 1.442695, %v2003_v44  ;;  %v2015_v57 = vmul.f32 1.442695, %v2004_v28  ;;  %v1797_v25 = vrot.slane %v5968_v34, %v5029_v12 }
 0x70f   :  { %4137 = vpow2.f32 %v2005_v15  ;;  %v6744_v28 = vld [vmem:[#allocation66_spill] sm:$0xff] }
 0x710   :  { %4139 = vpow2.f32 %v2007_v50  ;;  %v1821_v44 = vadd.f32 %v1797_v25, %v5973_v17  ;;  %v6764_v17 = vld [vmem:[#allocation132_spill] sm:$0xff]  ;;  %v6769_v25 = vld [vmem:[#allocation137_spill] sm:$0xff] }
 0x711   :  { %4141 = vpow2.f32 %v2009_v39 }
 0x712   :  { %4143 = vpow2.f32 %v2011_v4 }
 0x713   :  { %4145 = vpow2.f32 %v2013_v63  ;;  %v6743_v63 = vld [vmem:[#allocation47_spill] sm:$0xff] }
 0x714   :  { %4147 = vpow2.f32 %v2015_v57 }
 0x71c   :  { %v4138_v35 = vpop.eup %4137 }
 0x71d   :  { %v4140_v9 = vpop.eup %4139  ;;  %v2022_v45 = vmul.f32 %v4138_v35, %v6740_v30 }
 0x71e   :  { %v4142_v27 = vpop.eup %4141  ;;  %v2017_v53 = vadd.f32 %v4140_v9, %v4138_v35  ;;  %v2023_v23 = vmul.f32 %v4140_v9, %v6741_v41 }
 0x71f   :  { %v4144_v21 = vpop.eup %4143  ;;  %v2024_v24 = vmul.f32 %v4142_v27, %v6742_v29  ;;  %v6770_v29 = vld [vmem:[#allocation138_spill] sm:$0xff] }
 0x720   :  { %v2018_v15 = vadd.f32 %v4142_v27, %v2017_v53  ;;  %v2028_v39 = vadd.f32 %v2023_v23, %v2022_v45  ;;  %v4146_v4 = vpop.eup %4145  ;;  %v2025_v57 = vmul.f32 %v4144_v21, %v6743_v63  ;;  %v6766_v45 = vld [vmem:[#allocation134_spill] sm:$0xff]  ;;  %v6767_v23 = vld [vmem:[#allocation135_spill] sm:$0xff] }
 0x721   :  { %v4148_v16 = vpop.eup %4147  ;;  %v2026_v35 = vmul.f32 %v4146_v4, %v6744_v28  ;;  %v6774_v63 = vld [vmem:[#allocation142_spill] sm:$0xff] }
 0x722   :  { %v2019_v38 = vadd.f32 %v4144_v21, %v2018_v15  ;;  %v2029_v55 = vadd.f32 %v2028_v39, %v2024_v24  ;;  %v2027_v41 = vmul.f32 %v4148_v16, %v1821_v44  ;;  %v6768_v21 = vld [vmem:[#allocation136_spill] sm:$0xff]  ;;  %v4309_v24 = vld [vmem:[#allocation12 + $0x70] sm:$0xff]  ;;  %v4311_v44 = vld [vmem:[#allocation12 + $0x40] sm:$0xff] }
 0x723   :  { %v4308_v15 = vld [vmem:[#allocation12 + $0x88] sm:$0xff]  ;;  %v6772_v39 = vld [vmem:[#allocation29_spill] sm:$0xff] }
 0x724   :  { %v2020_v50 = vadd.f32 %v4146_v4, %v2019_v38  ;;  %v2030_v9 = vadd.f32 %v2029_v55, %v2025_v57  ;;  %v2107_v4 = vsub.s32 5, %v6772_v39  ;;  %v6773_v38 = vld [vmem:[#allocation140_spill] sm:$0xff]  ;;  %v4310_v57 = vld [vmem:[#allocation12 + $0x58] sm:$0xff]  ;;  %v6775_v55 = vld [vmem:[#allocation143_spill] sm:$0xff] }
 0x725   :  { %v6807_v39 = vld [vmem:[#allocation174_spill] sm:$0xff] }
 0x726   :  { %v2021_v30 = vadd.f32 %v4148_v16, %v2020_v50  ;;  %v2031_v2 = vadd.f32 %v2030_v9, %v2026_v35  ;;  %v6776_v16 = vld [vmem:[#allocation144_spill] sm:$0xff]  ;;  %v6777_v50 = vld [vmem:[#allocation141_spill] sm:$0xff]  ;;  %v6779_v9 = vld [vmem:[#allocation146_spill] sm:$0xff] }
 0x727   :  { %v2108_v28 = vrot.slane %v6777_v50, %v2107_v4  ;;  %v6778_v35 = vld [vmem:[#allocation145_spill] sm:$0xff]  ;;  %v6808_v4 = vld [vmem:[#allocation175_spill] sm:$0xff]  ;;  %v6815_v50 = vld [vmem:[#allocation182_spill] sm:$0xff] }
 0x728   :  { %4149 = vrcp.f32 %v2021_v30  ;;  %v2032_v34 = vadd.f32 %v2031_v2, %v2027_v41  ;;  %v6765_v2 = vld [vmem:[#allocation133_spill] sm:$0xff]  ;;  %v4312_v30 = vld [vmem:[#allocation12 + $0x28] sm:$0xff]  ;;  %v6780_v41 = vld [vmem:[#allocation147_spill] sm:$0xff] }
 0x735   :  { %v4150_v53 = vpop.eup %4149 }
 0x736   :  { %v2034_v27 = vmul.f32 %v4150_v53, %v2032_v34  ;;  %v6781_v34 = vld [vmem:[#allocation148_spill] sm:$0xff]  ;;  %v6131_v53 = vadd.f32 %v2108_v28, %v5878_v13  ;;  %v6816_v28 = vld [vmem:[#allocation183_spill] sm:$0xff] }
 0x737   :  { %v6785_v13 = vld [vmem:[#allocation152_spill] sm:$0xff] }
 0x738   :  { %3880 = vmatmul.mubr.f32.vlgmr.msra.gmra.mxu0 %v2034_v27  ;;  %v4313_v27 = vld [vmem:[#allocation12 + $0x10] sm:$0xff] }
 0x739   :  { %3883 = vmatpush3.msra.mxu0 %v5488_v43  ;;  %3914 = vmatprep.mubr.msk.f32.mxu0 %vm4628_vm0, %v6527_v62 }
 0x73a   :  { %3884 = vmatprep.subr.mxu0 %v6527_v62 }
 0x73b   :  { %3885 = vmatpush3.msra.mxu0 %v5494_v10 }
 0x73c   :  { %3886 = vmatprep.subr.mxu0 %v6527_v62 }
 0x73d   :  { %3887 = vmatpush3.msra.mxu0 %v5498_v7 }
 0x73e   :  { %3888 = vmatprep.subr.mxu0 %v6527_v62 }
 0x73f   :  { %3889 = vmatpush3.msra.mxu0 %v5502_v26  ;;  %v6745_v26 = vld [vmem:[#allocation113_spill] sm:$0xff] }
 0x740   :  { %3890 = vmatprep.subr.mxu0 %v6527_v62 }
 0x741   :  { %3891 = vmatpush3.msra.mxu0 %v5506_v51  ;;  %v6746_v51 = vld [vmem:[#allocation114_spill] sm:$0xff] }
 0x742   :  { %3892 = vmatprep.subr.mxu0 %v6527_v62 }
 0x743   :  { %3893 = vmatpush3.msra.mxu0 %v5510_v58  ;;  %v6747_v58 = vld [vmem:[#allocation115_spill] sm:$0xff] }
 0x744   :  { %3894 = vmatprep.subr.mxu0 %v6527_v62 }
 0x745   :  { %3895 = vmatpush3.msra.mxu0 %v5514_v11  ;;  %v6748_v11 = vld [vmem:[#allocation116_spill] sm:$0xff] }
 0x746   :  { %3896 = vmatprep.subr.mxu0 %v6527_v62 }
 0x747   :  { %3897 = vmatpush3.msra.mxu0 %v5518_v8  ;;  %v6749_v8 = vld [vmem:[#allocation117_spill] sm:$0xff] }
 0x748   :  { %3898 = vmatprep.subr.mxu0 %v6527_v62 }
 0x749   :  { %3899 = vmatpush3.msra.mxu0 %v5522_v49  ;;  %v6750_v49 = vld [vmem:[#allocation118_spill] sm:$0xff] }
 0x74a   :  { %3900 = vmatprep.subr.mxu0 %v6527_v62 }
 0x74b   :  { %3901 = vmatpush3.msra.mxu0 %v5526_v22  ;;  %v6751_v22 = vld [vmem:[#allocation119_spill] sm:$0xff] }
 0x74c   :  { %3902 = vmatprep.subr.mxu0 %v6527_v62 }
 0x74d   :  { %3903 = vmatpush3.msra.mxu0 %v5530_v61  ;;  %v6752_v61 = vld [vmem:[#allocation120_spill] sm:$0xff] }
 0x74e   :  { %3904 = vmatprep.subr.mxu0 %v6527_v62 }
 0x74f   :  { %3905 = vmatpush3.msra.mxu0 %v5534_v60  ;;  %v6753_v60 = vld [vmem:[#allocation121_spill] sm:$0xff] }
 0x750   :  { %3906 = vmatprep.subr.mxu0 %v6527_v62 }
 0x751   :  { %3907 = vmatpush3.msra.mxu0 %v5538_v42  ;;  %v6754_v42 = vld [vmem:[#allocation122_spill] sm:$0xff] }
 0x752   :  { %3908 = vmatprep.subr.mxu0 %v6527_v62 }
 0x753   :  { %3909 = vmatpush3.msra.mxu0 %v5542_v32  ;;  %v6755_v32 = vld [vmem:[#allocation123_spill] sm:$0xff] }
 0x754   :  { %3910 = vmatprep.subr.mxu0 %v6527_v62 }
 0x755   :  { %3911 = vmatpush3.msra.mxu0 %v5546_v14  ;;  %v6756_v14 = vld [vmem:[#allocation124_spill] sm:$0xff] }
 0x756   :  { %3912 = vmatprep.subr.mxu0 %v6527_v62 }
 0x757   :  { %3913 = vmatpush3.msra.mxu0 %v5550_v48  ;;  %v6757_v48 = vld [vmem:[#allocation125_spill] sm:$0xff] }
 0x758   :  { %3917 = vmatprep.subr.mxu0 %v6527_v62 }
 0x7f8   :  { %v2101_v43 = vpop.f32.mrf.mxu0 }
 0x7f9   :  { %v6067_v10 = vadd.f32 %v5557_v3, %v2101_v43  ;;  %v6758_v3 = vld [vmem:[#allocation126_spill] sm:$0xff]  ;;  %v6782_v43 = vld [vmem:[#allocation149_spill] sm:$0xff] }
 0x7fa   :  { %v3881_v7 = vpop.f32.mrf.mxu0 }
 0x7fb   :  { %2175 = vmatmul.mubr.f32.vlgmr.msra.gmra.mxu1 %v6067_v10  ;;  %3915 = vmatmul.mubr.f32.vlgmr.msra.gmra.mxu0 %v6067_v10  ;;  %v6783_v7 = vld [vmem:[#allocation150_spill] sm:$0xff] }
 0x7fc   :  { %2252 = vmatpush1.msra.mxu1 %v5564_v18  ;;  %3918 = vmatpush3.msra.mxu0 %v5567_v36  ;;  %v6759_v18 = vld [vmem:[#allocation127_spill] sm:$0xff]  ;;  %v6760_v36 = vld [vmem:[#allocation128_spill] sm:$0xff] }
 0x7fd   :  { %2253 = vmatprep.subr.mxu1 %v5570_v56  ;;  %3919 = vmatprep.subr.mxu0 %v6527_v62  ;;  %v6761_v56 = vld [vmem:[#allocation129_spill] sm:$0xff] }
 0x7fe   :  { %2254 = vmatpush1.msra.mxu1 %v5574_v52  ;;  %3920 = vmatpush3.msra.mxu0 %v5577_v5  ;;  %v6762_v52 = vld [vmem:[#allocation130_spill] sm:$0xff]  ;;  %v6763_v5 = vld [vmem:[#allocation131_spill] sm:$0xff] }
 0x7ff   :  { %2255 = vmatprep.subr.mxu1 %v6745_v26  ;;  %3921 = vmatprep.subr.mxu0 %v6527_v62  ;;  %v4314_v26 = vld [vmem:[#allocation14 + $0x78] sm:$0xff] }
 0x800   :  { %2256 = vmatpush1.msra.mxu1 %v6746_v51  ;;  %3922 = vmatpush3.msra.mxu0 %v6747_v58  ;;  %v6784_v51 = vld [vmem:[#allocation151_spill] sm:$0xff]  ;;  %v4315_v58 = vld [vmem:[#allocation14 + $0x70] sm:$0xff] }
 0x801   :  { %2257 = vmatprep.subr.mxu1 %v6748_v11  ;;  %3923 = vmatprep.subr.mxu0 %v6527_v62  ;;  %v6786_v11 = vld [vmem:[#allocation153_spill] sm:$0xff] }
 0x802   :  { %2258 = vmatpush1.msra.mxu1 %v6749_v8  ;;  %3924 = vmatpush3.msra.mxu0 %v6750_v49  ;;  %v6787_v8 = vld [vmem:[#allocation154_spill] sm:$0xff]  ;;  %v4316_v49 = vld [vmem:[#allocation14 + $0x68] sm:$0xff] }
 0x803   :  { %2259 = vmatprep.subr.mxu1 %v6751_v22  ;;  %3925 = vmatprep.subr.mxu0 %v6527_v62  ;;  %v6788_v22 = vld [vmem:[#allocation155_spill] sm:$0xff] }
 0x804   :  { %2260 = vmatpush1.msra.mxu1 %v6752_v61  ;;  %3926 = vmatpush3.msra.mxu0 %v6753_v60  ;;  %v6789_v61 = vld [vmem:[#allocation156_spill] sm:$0xff]  ;;  %v4317_v60 = vld [vmem:[#allocation14 + $0x60] sm:$0xff] }
 0x805   :  { %2261 = vmatprep.subr.mxu1 %v6754_v42  ;;  %3927 = vmatprep.subr.mxu0 %v6527_v62  ;;  %v6790_v42 = vld [vmem:[#allocation157_spill] sm:$0xff] }
 0x806   :  { %2262 = vmatpush1.msra.mxu1 %v6755_v32  ;;  %3928 = vmatpush3.msra.mxu0 %v6756_v14  ;;  %v6791_v32 = vld [vmem:[#allocation158_spill] sm:$0xff] }
 0x807   :  { %2263 = vmatprep.subr.mxu1 %v6757_v48  ;;  %3929 = vmatprep.subr.mxu0 %v6527_v62  ;;  %v4318_v14 = vld [vmem:[#allocation14 + $0x58] sm:$0xff]  ;;  %v6792_v48 = vld [vmem:[#allocation159_spill] sm:$0xff] }
 0x808   :  { %2264 = vmatpush1.msra.mxu1 %v6758_v3  ;;  %3930 = vmatpush3.msra.mxu0 %v6759_v18  ;;  %v6793_v3 = vld [vmem:[#allocation160_spill] sm:$0xff]  ;;  %v4319_v18 = vld [vmem:[#allocation14 + $0x50] sm:$0xff] }
 0x809   :  { %2265 = vmatprep.subr.mxu1 %v6760_v36  ;;  %3931 = vmatprep.subr.mxu0 %v6527_v62  ;;  %v6794_v36 = vld [vmem:[#allocation161_spill] sm:$0xff] }
 0x80a   :  { %2266 = vmatpush1.msra.mxu1 %v6761_v56  ;;  %3932 = vmatpush3.msra.mxu0 %v6762_v52  ;;  %v6795_v56 = vld [vmem:[#allocation162_spill] sm:$0xff]  ;;  %v4320_v52 = vld [vmem:[#allocation14 + $0x48] sm:$0xff] }
 0x80b   :  { %2267 = vmatprep.subr.mxu1 %v6763_v5  ;;  %3933 = vmatprep.subr.mxu0 %v6527_v62  ;;  %v6796_v5 = vld [vmem:[#allocation163_spill] sm:$0xff] }
 0x80c   :  { %2268 = vmatpush1.msra.mxu1 %v5644_v6  ;;  %3934 = vmatpush3.msra.mxu0 %v6764_v17  ;;  %v6771_v6 = vld [vmem:[#allocation139_spill] sm:$0xff]  ;;  %v6797_v17 = vld [vmem:[#allocation164_spill] sm:$0xff] }
 0x80d   :  { %2269 = vmatprep.subr.mxu1 %v6765_v2  ;;  %3935 = vmatprep.subr.mxu0 %v6527_v62  ;;  %v6798_v2 = vld [vmem:[#allocation165_spill] sm:$0xff] }
 0x80e   :  { %2270 = vmatpush1.msra.mxu1 %v6766_v45  ;;  %3936 = vmatpush3.msra.mxu0 %v6767_v23  ;;  %v6799_v45 = vld [vmem:[#allocation166_spill] sm:$0xff]  ;;  %v6800_v23 = vld [vmem:[#allocation167_spill] sm:$0xff] }
 0x80f   :  { %2271 = vmatprep.subr.mxu1 %v6768_v21  ;;  %3937 = vmatprep.subr.mxu0 %v6527_v62  ;;  %v6801_v21 = vld [vmem:[#allocation168_spill] sm:$0xff] }
 0x810   :  { %2272 = vmatpush1.msra.mxu1 %v6769_v25  ;;  %3938 = vmatpush3.msra.mxu0 %v4308_v15  ;;  %v6802_v25 = vld [vmem:[#allocation169_spill] sm:$0xff]  ;;  %v6803_v15 = vld [vmem:[#allocation170_spill] sm:$0xff] }
 0x811   :  { %2273 = vmatprep.subr.mxu1 %v6770_v29  ;;  %3939 = vmatprep.subr.mxu0 %v6527_v62  ;;  %v6804_v29 = vld [vmem:[#allocation171_spill] sm:$0xff] }
 0x812   :  { %2274 = vmatpush1.msra.mxu1 %v6771_v6  ;;  %3940 = vmatpush3.msra.mxu0 %v4309_v24  ;;  %v6805_v6 = vld [vmem:[#allocation172_spill] sm:$0xff]  ;;  %v6806_v24 = vld [vmem:[#allocation173_spill] sm:$0xff] }
 0x813   :  { %2275 = vmatprep.subr.mxu1 %v6773_v38  ;;  %3941 = vmatprep.subr.mxu0 %v6527_v62  ;;  %v6809_v38 = vld [vmem:[#allocation176_spill] sm:$0xff] }
 0x814   :  { %2276 = vmatpush1.msra.mxu1 %v6774_v63  ;;  %3942 = vmatpush3.msra.mxu0 %v4310_v57  ;;  %v6810_v63 = vld [vmem:[#allocation177_spill] sm:$0xff]  ;;  %v6811_v57 = vld [vmem:[#allocation178_spill] sm:$0xff] }
 0x815   :  { %2277 = vmatprep.subr.mxu1 %v6775_v55  ;;  %3943 = vmatprep.subr.mxu0 %v6527_v62  ;;  %v6812_v55 = vld [vmem:[#allocation179_spill] sm:$0xff] }
 0x816   :  { %2278 = vmatpush1.msra.mxu1 %v6776_v16  ;;  %3944 = vmatpush3.msra.mxu0 %v4311_v44  ;;  %v6813_v16 = vld [vmem:[#allocation180_spill] sm:$0xff]  ;;  %v6814_v44 = vld [vmem:[#allocation181_spill] sm:$0xff] }
 0x817   :  { %2279 = vmatprep.subr.mxu1 %v6778_v35  ;;  %3945 = vmatprep.subr.mxu0 %v6527_v62  ;;  %v6817_v35 = vld [vmem:[#allocation184_spill] sm:$0xff] }
 0x818   :  { %2280 = vmatpush1.msra.mxu1 %v6779_v9  ;;  %3946 = vmatpush3.msra.mxu0 %v4312_v30  ;;  %v6818_v9 = vld [vmem:[#allocation185_spill] sm:$0xff]  ;;  %v6819_v30 = vld [vmem:[#allocation186_spill] sm:$0xff] }
 0x819   :  { %2281 = vmatprep.subr.mxu1 %v6780_v41  ;;  %3947 = vmatprep.subr.mxu0 %v6527_v62  ;;  %v6820_v41 = vld [vmem:[#allocation187_spill] sm:$0xff] }
 0x81a   :  { %2282 = vmatpush1.msra.mxu1 %v6781_v34  ;;  %2315 = vmatprep.mubr.f32.mxu1 %v6527_v62  ;;  %v6821_v34 = vld [vmem:[#allocation188_spill] sm:$0xff] }
 0x81b   :  { %3948 = vmatpush3.msra.mxu0 %v4313_v27  ;;  %3949 = vmatprep.mubr.msk.f32.mxu0 %vm4628_vm0, %v6527_v62  ;;  %v6822_v27 = vld [vmem:[#allocation189_spill] sm:$0xff] }
 0x81c   :  { %2316 = vmatmul.mubr.f32.vlgmr.msra.gmra.mxu1 %v6131_v53  ;;  %3950 = vmatmul.mubr.f32.vlgmr.msra.gmra.mxu0 %v6131_v53 }
 0x81d   :  { %2413 = vmatprep.subr.mxu1 %v6782_v43  ;;  %3952 = vmatprep.subr.mxu0 %v6527_v62 }
 0x81e   :  { %2414 = vmatpush1.msra.mxu1 %v6783_v7  ;;  %3953 = vmatpush3.msra.mxu0 %v4314_v26 }
 0x81f   :  { %2415 = vmatprep.subr.mxu1 %v6784_v51  ;;  %3954 = vmatprep.subr.mxu0 %v6527_v62 }
 0x820   :  { %2416 = vmatpush1.msra.mxu1 %v6785_v13  ;;  %3955 = vmatpush3.msra.mxu0 %v4315_v58 }
 0x821   :  { %2417 = vmatprep.subr.mxu1 %v6786_v11  ;;  %3956 = vmatprep.subr.mxu0 %v6527_v62 }
 0x822   :  { %2418 = vmatpush1.msra.mxu1 %v6787_v8  ;;  %3957 = vmatpush3.msra.mxu0 %v4316_v49 }
 0x823   :  { %2419 = vmatprep.subr.mxu1 %v6788_v22  ;;  %3958 = vmatprep.subr.mxu0 %v6527_v62 }
 0x824   :  { %2420 = vmatpush1.msra.mxu1 %v6789_v61  ;;  %3959 = vmatpush3.msra.mxu0 %v4317_v60 }
 0x825   :  { %2421 = vmatprep.subr.mxu1 %v6790_v42  ;;  %3960 = vmatprep.subr.mxu0 %v6527_v62 }
 0x826   :  { %2422 = vmatpush1.msra.mxu1 %v6791_v32  ;;  %3961 = vmatpush3.msra.mxu0 %v4318_v14 }
 0x827   :  { %2423 = vmatprep.subr.mxu1 %v6792_v48  ;;  %3962 = vmatprep.subr.mxu0 %v6527_v62 }
 0x828   :  { %2424 = vmatpush1.msra.mxu1 %v6793_v3  ;;  %3963 = vmatpush3.msra.mxu0 %v4319_v18 }
 0x829   :  { %2425 = vmatprep.subr.mxu1 %v6794_v36  ;;  %3964 = vmatprep.subr.mxu0 %v6527_v62 }
 0x82a   :  { %2426 = vmatpush1.msra.mxu1 %v6795_v56  ;;  %3965 = vmatpush3.msra.mxu0 %v4320_v52 }
 0x82b   :  { %2427 = vmatprep.subr.mxu1 %v6796_v5  ;;  %3966 = vmatprep.subr.mxu0 %v6527_v62 }
 0x82c   :  { %2428 = vmatpush1.msra.mxu1 %v6797_v17  ;;  %3967 = vmatpush3.msra.mxu0 %v6798_v2 }
 0x82d   :  { %2429 = vmatprep.subr.mxu1 %v6799_v45  ;;  %3968 = vmatprep.subr.mxu0 %v6527_v62 }
 0x82e   :  { %2430 = vmatpush1.msra.mxu1 %v6800_v23  ;;  %3969 = vmatpush3.msra.mxu0 %v6801_v21 }
 0x82f   :  { %2431 = vmatprep.subr.mxu1 %v6802_v25  ;;  %3970 = vmatprep.subr.mxu0 %v6527_v62  ;;  %v4321_v25 = vld [vmem:[#allocation18 + $0x78] sm:$0xff] }
 0x830   :  { %2432 = vmatpush1.msra.mxu1 %v6803_v15  ;;  %3971 = vmatpush3.msra.mxu0 %v6804_v29  ;;  %v4324_v15 = vld [vmem:[#allocation17 + $0x70] sm:$0xff]  ;;  %v4326_v29 = vld [vmem:[#allocation17 + $0x68] sm:$0xff] }
 0x831   :  { %2433 = vmatprep.subr.mxu1 %v6805_v6  ;;  %3972 = vmatprep.subr.mxu0 %v6527_v62  ;;  %v4327_v6 = vld [vmem:[#allocation18 + $0x60] sm:$0xff] }
 0x832   :  { %2434 = vmatpush1.msra.mxu1 %v6806_v24  ;;  %3973 = vmatpush3.msra.mxu0 %v6807_v39  ;;  %v4328_v24 = vld [vmem:[#allocation17 + $0x60] sm:$0xff]  ;;  %v4329_v39 = vld [vmem:[#allocation18 + $0x58] sm:$0xff] }
 0x833   :  { %2435 = vmatprep.subr.mxu1 %v6808_v4  ;;  %3974 = vmatprep.subr.mxu0 %v6527_v62  ;;  %v4330_v4 = vld [vmem:[#allocation17 + $0x58] sm:$0xff] }
 0x834   :  { %2436 = vmatpush1.msra.mxu1 %v6809_v38  ;;  %3975 = vmatpush3.msra.mxu0 %v6810_v63  ;;  %v4331_v38 = vld [vmem:[#allocation18 + $0x50] sm:$0xff] }
 0x835   :  { %2437 = vmatprep.subr.mxu1 %v6811_v57  ;;  %3976 = vmatprep.subr.mxu0 %v6527_v62  ;;  %v4332_v63 = vld [vmem:[#allocation17 + $0x50] sm:$0xff]  ;;  %v4333_v57 = vld [vmem:[#allocation18 + $0x48] sm:$0xff] }
 0x836   :  { %2438 = vmatpush1.msra.mxu1 %v6812_v55  ;;  %3977 = vmatpush3.msra.mxu0 %v6813_v16  ;;  %v4334_v55 = vld [vmem:[#allocation17 + $0x48] sm:$0xff]  ;;  %v4335_v16 = vld [vmem:[#allocation18 + $0x40] sm:$0xff] }
 0x837   :  { %2439 = vmatprep.subr.mxu1 %v6814_v44  ;;  %3978 = vmatprep.subr.mxu0 %v6527_v62  ;;  %v4336_v44 = vld [vmem:[#allocation17 + $0x40] sm:$0xff] }
 0x838   :  { %2440 = vmatpush1.msra.mxu1 %v6815_v50  ;;  %3979 = vmatpush3.msra.mxu0 %v6816_v28  ;;  %v4337_v50 = vld [vmem:[#allocation18 + $0x38] sm:$0xff] }
 0x839   :  { %2441 = vmatprep.subr.mxu1 %v6817_v35  ;;  %3980 = vmatprep.subr.mxu0 %v6527_v62  ;;  %v4338_v28 = vld [vmem:[#allocation17 + $0x38] sm:$0xff]  ;;  %v4339_v35 = vld [vmem:[#allocation18 + $0x30] sm:$0xff] }
 0x83a   :  { %2442 = vmatpush1.msra.mxu1 %v6818_v9  ;;  %3981 = vmatpush3.msra.mxu0 %v6819_v30  ;;  %v4340_v9 = vld [vmem:[#allocation17 + $0x30] sm:$0xff]  ;;  %v4341_v30 = vld [vmem:[#allocation18 + $0x28] sm:$0xff] }
 0x83b   :  { %2443 = vmatprep.subr.mxu1 %v6820_v41  ;;  %3982 = vmatprep.subr.mxu0 %v6527_v62  ;;  %v4342_v41 = vld [vmem:[#allocation17 + $0x28] sm:$0xff] }
 0x83c   :  { %2444 = vmatpush1.msra.mxu1 %v6821_v34  ;;  %2477 = vmatprep.mubr.f32.mxu1 %v6527_v62  ;;  %v4343_v34 = vld [vmem:[#allocation18 + $0x20] sm:$0xff] }
 0x83d   :  { %3983 = vmatpush3.msra.mxu0 %v6822_v27  ;;  %3984 = vmatprep.mubr.msk.f32.mxu0 %vm4628_vm0, %v6527_v62  ;;  %v4344_v27 = vld [vmem:[#allocation17 + $0x20] sm:$0xff] }
 0x83e   :  { %3987 = vmatprep.subr.mxu1 %v6527_v62  ;;  %4040 = vmatprep.subr.mxu0 %v6527_v62 }
 0x8bb   :  { %v2247_v43 = vpop.f32.mrf.mxu0  ;;  %v2176_v26 = vpop.f32.mrf.mxu1 }
 0x8bc   :  { %v2177_v11 = vadd.f32 %v2176_v26, %v5145_v46  ;;  %v2248_v52 = vadd.f32 %v2247_v43, %v5170_v20  ;;  %v4322_v20 = vld [vmem:[#allocation17 + $0x78] sm:$0xff]  ;;  %v4347_v26 = vld [vmem:[#allocation18 + $0x10] sm:$0xff] }
 0x8bd   :  { %v3916_v7 = vpop.f32.mrf.mxu0  ;;  %v2178_v51 = vpop.f32.mrf.mxu1  ;;  %v4345_v43 = vld [vmem:[#allocation18 + $0x18] sm:$0xff] }
 0x8be   :  { %v2179_v32 = vadd.f32 %v2178_v51, %v5163_v47  ;;  %v4346_v7 = vld [vmem:[#allocation17 + $0x18] sm:$0xff]  ;;  %v4348_v51 = vld [vmem:[#allocation17 + $0x10] sm:$0xff] }
 0x8dc   :  { %v2317_v13 = vpop.f32.mrf.mxu1  ;;  %v2388_v58 = vpop.f32.mrf.mxu0 }
 0x8dd   :  { %v2318_v8 = vadd.f32 %v2317_v13, %v5148_v1  ;;  %v2389_v46 = vadd.f32 %v2388_v58, %v5168_v54  ;;  %v4323_v54 = vld [vmem:[#allocation18 + $0x70] sm:$0xff]  ;;  %v4349_v13 = vld [vmem:[#allocation18 + $0x8] sm:$0xff] }
 0x8de   :  { %v2319_v49 = vpop.f32.mrf.mxu1  ;;  %v3951_v22 = vpop.f32.mrf.mxu0  ;;  %v4350_v58 = vld [vmem:[#allocation17 + $0x8] sm:$0xff] }
 0x8df   :  { %v2392_v61 = vadd.f32 %v2318_v8, %v2177_v11  ;;  %v2320_v42 = vadd.f32 %v2319_v49, %v5160_v0  ;;  %v4351_v11 = vld [vmem:[#allocation18] sm:$0xff]  ;;  %v6823_v49 = vld [vmem:[#allocation32_spill] sm:$0xff] }
 0x8e0   :  { %v4352_v8 = vld [vmem:[#allocation17] sm:$0xff]  ;;  %v2555_v22 = vrot.slane %v6823_v49, %v6691_v31  ;;  %v2943_v49 = vld [vmem:[#allocation20 + $0x58] sm:$0xff] }
 0x8e1   :  { %v3242_v60 = vmul.f32 -1.442695, %v2392_v61  ;;  %v2399_v14 = vadd.f32 %v2320_v42, %v2179_v32 }
 0x8e3   :  { %4151 = vpow2.f32 %v3242_v60  ;;  %v3243_v48 = vmul.f32 -1.442695, %v2399_v14  ;;  %v4353_v60 = vld [vmem:[%s6320_s9] ss:$0 sm:$0xff]  ;;  %v2622_v14 = vadd.f32 %v2555_v22, %v6697_v59  ;;  %v2942_v22 = vld [vmem:[#allocation20 + $0x50] sm:$0xff] }
 0x8e5   :  { %4153 = vpow2.f32 %v3243_v48  ;;  %v6824_v48 = vld [vmem:[#allocation37_spill] sm:$0xff] }
 0x8f0   :  { %v4152_v3 = vpop.eup %4151 }
 0x8f1   :  { %v2396_v18 = vadd.f32 1.0, %v4152_v3  ;;  %v2563_v3 = vrot.slane %v6824_v48, %v6691_v31  ;;  %v2936_v48 = vld [vmem:[#allocation20 + $0x20] sm:$0xff] }
 0x8f2   :  { %v4154_v36 = vpop.eup %4153 }
 0x8f3   :  { %4155 = vrcp.f32 %v2396_v18  ;;  %v2403_v56 = vadd.f32 1.0, %v4154_v36 }
 0x8f5   :  { %4157 = vrcp.f32 %v2403_v56  ;;  %v2624_v56 = vadd.f32 %v2563_v3, %v6698_v40  ;;  %v2935_v3 = vld [vmem:[#allocation20 + $0x18] sm:$0xff] }
 0x900   :  { %v4156_v1 = vpop.eup %4155 }
 0x901   :  { %v2406_v5 = vmul.f32 %v4156_v1, %v2389_v46  ;;  %v6825_v46 = vld [vmem:[#allocation39_spill] sm:$0xff] }
 0x902   :  { %v4158_v0 = vpop.eup %4157  ;;  %v2571_v1 = vrot.slane %v6825_v46, %v6691_v31  ;;  %v2995_v46 = vld [vmem:[#allocation20 + $0x1f8] sm:$0xff] }
 0x903   :  { %v2407_v17 = vadd.f32 %v2406_v5, %v2248_v52  ;;  %v2409_v47 = vsub.f32 1.0, %v4158_v0  ;;  %v2411_v23 = vmul.f32 %v4158_v0, %v6131_v53  ;;  %v4325_v53 = vld [vmem:[#allocation18 + $0x68] sm:$0xff]  ;;  %v6258_v0 = vrot.slane %v5949_v37, %v6689_v33 }
 0x904   :  { %v2626_v5 = vadd.f32 %v2571_v1, %v6700_v19  ;;  %v2994_v1 = vld [vmem:[#allocation20 + $0x1f0] sm:$0xff] }
 0x905   :  { %4159 = vtanh.f32 %v2407_v17  ;;  %v6826_v17 = vld [vmem:[#allocation43_spill] sm:$0xff]  ;;  %v6269_v19 = vcombine.high %v6258_v0, %v6258_v0 }
 0x906   :  { %v2579_v59 = vrot.slane %v6826_v17, %v6691_v31  ;;  %v2991_v17 = vld [vmem:[#allocation20 + $0x1d8] sm:$0xff] }
 0x912   :  { %v4160_v2 = vpop.eup %4159 }
 0x913   :  { %v2410_v45 = vmul.f32 %v4160_v2, %v2409_v47  ;;  %v6827_v47 = vld [vmem:[#allocation71_spill] sm:$0xff] }
 0x914   :  { %v2628_v2 = vadd.f32 %v2579_v59, %v6827_v47  ;;  %v2990_v59 = vld [vmem:[#allocation20 + $0x1d0] sm:$0xff]  ;;  %v2988_v47 = vld [vmem:[#allocation20 + $0x1c0] sm:$0xff] }
 0x915   :  { %v2412_v21 = vadd.f32 %v2411_v23, %v2410_v45  ;;  %v2587_v45 = vrot.slane %v6258_v0, %v6691_v31  ;;  %v6828_v23 = vld [vmem:[#allocation74_spill] sm:$0xff] }
 0x917   :  { %2478 = vmatmul.mubr.f32.vlgmr.msra.gmra.mxu1 %v2412_v21  ;;  %3985 = vmatmul.mubr.f32.vlgmr.msra.gmra.mxu0 %v2412_v21  ;;  %v2630_v21 = vadd.f32 %v2587_v45, %v6828_v23  ;;  %v2986_v45 = vld [vmem:[#allocation20 + $0x1b0] sm:$0xff]  ;;  %v2983_v23 = vld [vmem:[#allocation20 + $0x198] sm:$0xff] }
 0x918   :  { %3988 = vmatpush3.msra.mxu1 %v4321_v25  ;;  %4019 = vmatprep.mubr.msk.f32.mxu1 %vm4628_vm0, %v6527_v62  ;;  %v6829_v25 = vld [vmem:[#allocation102_spill] sm:$0xff] }
 0x919   :  { %3989 = vmatprep.subr.mxu1 %v6527_v62  ;;  %4041 = vmatpush3.msra.mxu0 %v4322_v20  ;;  %v2595_v20 = vrot.slane %v6829_v25, %v6691_v31  ;;  %v2981_v25 = vld [vmem:[#allocation20 + $0x188] sm:$0xff] }
 0x91a   :  { %3990 = vmatpush3.msra.mxu1 %v4323_v54  ;;  %4042 = vmatprep.subr.mxu0 %v6527_v62  ;;  %v6830_v54 = vld [vmem:[#allocation59_spill] sm:$0xff] }
 0x91b   :  { %3991 = vmatprep.subr.mxu1 %v6527_v62  ;;  %4043 = vmatpush3.msra.mxu0 %v4324_v15 }
 0x91c   :  { %3992 = vmatpush3.msra.mxu1 %v4325_v53  ;;  %4044 = vmatprep.subr.mxu0 %v6527_v62  ;;  %v2603_v53 = vrot.slane %v6269_v19, %v6691_v31 }
 0x91d   :  { %3993 = vmatprep.subr.mxu1 %v6527_v62  ;;  %4045 = vmatpush3.msra.mxu0 %v4326_v29 }
 0x91e   :  { %3994 = vmatpush3.msra.mxu1 %v4327_v6  ;;  %4046 = vmatprep.subr.mxu0 %v6527_v62  ;;  %v6831_v6 = vld [vmem:[#allocation103_spill] sm:$0xff] }
 0x91f   :  { %3995 = vmatprep.subr.mxu1 %v6527_v62  ;;  %4047 = vmatpush3.msra.mxu0 %v4328_v24  ;;  %v2632_v24 = vadd.f32 %v2595_v20, %v6831_v6  ;;  %v2980_v20 = vld [vmem:[#allocation20 + $0x180] sm:$0xff] }
 0x920   :  { %3996 = vmatpush3.msra.mxu1 %v4329_v39  ;;  %4048 = vmatprep.subr.mxu0 %v6527_v62  ;;  %v2976_v6 = vld [vmem:[#allocation20 + $0x160] sm:$0xff] }
 0x921   :  { %3997 = vmatprep.subr.mxu1 %v6527_v62  ;;  %4049 = vmatpush3.msra.mxu0 %v4330_v4 }
 0x922   :  { %3998 = vmatpush3.msra.mxu1 %v4331_v38  ;;  %4050 = vmatprep.subr.mxu0 %v6527_v62 }
 0x923   :  { %3999 = vmatprep.subr.mxu1 %v6527_v62  ;;  %4051 = vmatpush3.msra.mxu0 %v4332_v63  ;;  %v6832_v63 = vld [vmem:[#allocation112_spill] sm:$0xff] }
 0x924   :  { %4000 = vmatpush3.msra.mxu1 %v4333_v57  ;;  %4052 = vmatprep.subr.mxu0 %v6527_v62  ;;  %v2963_v57 = vld [vmem:[#allocation20 + $0xf8] sm:$0xff] }
 0x925   :  { %4001 = vmatprep.subr.mxu1 %v6527_v62  ;;  %4053 = vmatpush3.msra.mxu0 %v4334_v55  ;;  %v2962_v55 = vld [vmem:[#allocation20 + $0xf0] sm:$0xff] }
 0x926   :  { %4002 = vmatpush3.msra.mxu1 %v4335_v16  ;;  %4054 = vmatprep.subr.mxu0 %v6527_v62  ;;  %v2961_v16 = vld [vmem:[#allocation20 + $0xe8] sm:$0xff] }
 0x927   :  { %4003 = vmatprep.subr.mxu1 %v6527_v62  ;;  %4055 = vmatpush3.msra.mxu0 %v4336_v44  ;;  %v2960_v44 = vld [vmem:[#allocation20 + $0xe0] sm:$0xff] }
 0x928   :  { %4004 = vmatpush3.msra.mxu1 %v4337_v50  ;;  %4056 = vmatprep.subr.mxu0 %v6527_v62  ;;  %v3027_v50 = vld [vmem:[#allocation20 + $0x2f8] sm:$0xff] }
 0x929   :  { %4005 = vmatprep.subr.mxu1 %v6527_v62  ;;  %4057 = vmatpush3.msra.mxu0 %v4338_v28  ;;  %v2959_v28 = vld [vmem:[#allocation20 + $0xd8] sm:$0xff] }
 0x92a   :  { %4006 = vmatpush3.msra.mxu1 %v4339_v35  ;;  %4058 = vmatprep.subr.mxu0 %v6527_v62  ;;  %v2958_v35 = vld [vmem:[#allocation20 + $0xd0] sm:$0xff] }
 0x92b   :  { %4007 = vmatprep.subr.mxu1 %v6527_v62  ;;  %4059 = vmatpush3.msra.mxu0 %v4340_v9  ;;  %v2957_v9 = vld [vmem:[#allocation20 + $0xc8] sm:$0xff] }
 0x92c   :  { %4008 = vmatpush3.msra.mxu1 %v4341_v30  ;;  %4060 = vmatprep.subr.mxu0 %v6527_v62  ;;  %v2956_v30 = vld [vmem:[#allocation20 + $0xc0] sm:$0xff] }
 0x92d   :  { %4009 = vmatprep.subr.mxu1 %v6527_v62  ;;  %4061 = vmatpush3.msra.mxu0 %v4342_v41  ;;  %v2954_v41 = vld [vmem:[#allocation20 + $0xb0] sm:$0xff] }
 0x92e   :  { %4010 = vmatpush3.msra.mxu1 %v4343_v34  ;;  %4062 = vmatprep.subr.mxu0 %v6527_v62  ;;  %v2953_v34 = vld [vmem:[#allocation20 + $0xa8] sm:$0xff] }
 0x92f   :  { %4011 = vmatprep.subr.mxu1 %v6527_v62  ;;  %4063 = vmatpush3.msra.mxu0 %v4344_v27  ;;  %v2952_v27 = vld [vmem:[#allocation20 + $0xa0] sm:$0xff] }
 0x930   :  { %4012 = vmatpush3.msra.mxu1 %v4345_v43  ;;  %4064 = vmatprep.subr.mxu0 %v6527_v62  ;;  %v2951_v43 = vld [vmem:[#allocation20 + $0x98] sm:$0xff] }
 0x931   :  { %4013 = vmatprep.subr.mxu1 %v6527_v62  ;;  %4065 = vmatpush3.msra.mxu0 %v4346_v7  ;;  %v2950_v7 = vld [vmem:[#allocation20 + $0x90] sm:$0xff] }
 0x932   :  { %4014 = vmatpush3.msra.mxu1 %v4347_v26  ;;  %4066 = vmatprep.subr.mxu0 %v6527_v62  ;;  %v2949_v26 = vld [vmem:[#allocation20 + $0x88] sm:$0xff] }
 0x933   :  { %4015 = vmatprep.subr.mxu1 %v6527_v62  ;;  %4067 = vmatpush3.msra.mxu0 %v4348_v51  ;;  %v2948_v51 = vld [vmem:[#allocation20 + $0x80] sm:$0xff] }
 0x934   :  { %4016 = vmatpush3.msra.mxu1 %v4349_v13  ;;  %4068 = vmatprep.subr.mxu0 %v6527_v62  ;;  %v2947_v13 = vld [vmem:[#allocation20 + $0x78] sm:$0xff] }
 0x935   :  { %4017 = vmatprep.subr.mxu1 %v6527_v62  ;;  %4069 = vmatpush3.msra.mxu0 %v4350_v58  ;;  %v2946_v58 = vld [vmem:[#allocation20 + $0x70] sm:$0xff] }
 0x936   :  { %4018 = vmatpush3.msra.mxu1 %v4351_v11  ;;  %4070 = vmatprep.subr.mxu0 %v6527_v62  ;;  %v2945_v11 = vld [vmem:[#allocation20 + $0x68] sm:$0xff] }
 0x937   :  { %4071 = vmatpush3.msra.mxu0 %v4352_v8  ;;  %4072 = vmatprep.mubr.msk.f32.mxu0 %vm4628_vm0, %v6527_v62  ;;  %v2944_v8 = vld [vmem:[#allocation20 + $0x60] sm:$0xff] }
 0x938   :  { %3072 = vmatprep.subr.mxu1 %v2963_v57  ;;  %3143 = vmatprep.subr.mxu0 %v3027_v50  ;;  %v2972_v57 = vld [vmem:[#allocation20 + $0x140] sm:$0xff] }
 0x9d7   :  { %v2702_v61 = vpop.f32.mrf.mxu0  ;;  %v2479_v37 = vpop.f32.mrf.mxu1 }
 0x9d8   :  { %v2703_v42 = vadd.f32 %v4353_v60, %v2702_v61  ;;  %v2480_v15 = vadd.f32 %v2479_v37, %v6830_v54  ;;  %v2941_v61 = vld [vmem:[#allocation20 + $0x48] sm:$0xff]  ;;  %v2940_v60 = vld [vmem:[#allocation20 + $0x40] sm:$0xff]  ;;  %v2979_v54 = vld [vmem:[#allocation20 + $0x178] sm:$0xff] }
 0x9d9   :  { %v3986_v32 = vpop.f32.mrf.mxu0  ;;  %v2984_v37 = vld [vmem:[#allocation20 + $0x1a0] sm:$0xff] }
 0x9da   :  { %v2706_v18 = vmul.f32 0.35355338, %v2703_v42  ;;  %v2634_v39 = vadd.f32 %v2603_v53, %v2480_v15  ;;  %v2939_v42 = vld [vmem:[#allocation20 + $0x38] sm:$0xff]  ;;  %v2938_v32 = vld [vmem:[#allocation20 + $0x30] sm:$0xff]  ;;  %v6285_v53 = vpop.f32.mrf.mxu1 }
 0x9db   :  { %v2978_v15 = vld [vmem:[#allocation20 + $0x170] sm:$0xff] }
 0x9dc   :  { %v2707_v36 = vmul.f32 %v2706_v18, %v2622_v14  ;;  %v2708_v52 = vmul.f32 %v2706_v18, %v2624_v56  ;;  %v2709_v40 = vmul.f32 %v2706_v18, %v2626_v5  ;;  %v2710_v33 = vmul.f32 %v2706_v18, %v2628_v2  ;;  %v2937_v14 = vld [vmem:[#allocation20 + $0x28] sm:$0xff]  ;;  %v2932_v56 = vld [vmem:[#allocation20] sm:$0xff]  ;;  %v2987_v2 = vld [vmem:[#allocation20 + $0x1b8] sm:$0xff] }
 0x9dd   :  { %v2711_v29 = vmul.f32 %v2706_v18, %v2630_v21  ;;  %v2712_v4 = vmul.f32 %v2706_v18, %v2632_v24  ;;  %v2713_v38 = vmul.f32 %v2706_v18, %v2634_v39  ;;  %v2934_v18 = vld [vmem:[#allocation20 + $0x10] sm:$0xff]  ;;  %v2992_v5 = vld [vmem:[#allocation20 + $0x1e0] sm:$0xff]  ;;  %v2975_v39 = vld [vmem:[#allocation20 + $0x158] sm:$0xff] }
 0x9de   :  { %4020 = vmatmul.mubr.f32.vlgmr.msra.gmra.mxu1 %v2707_v36  ;;  %v2933_v36 = vld [vmem:[#allocation20 + $0x8] sm:$0xff]  ;;  %v2982_v21 = vld [vmem:[#allocation20 + $0x190] sm:$0xff] }
 0x9df   :  { %4022 = vmatprep.mubr.msk.f32.mxu1 %vm4628_vm0, %v6527_v62  ;;  %3073 = vmatpush1.msra.mxu1 %v2962_v55 }
 0x9e0   :  { %3074 = vmatprep.subr.mxu1 %v2961_v16  ;;  %v2971_v16 = vld [vmem:[#allocation20 + $0x138] sm:$0xff] }
 0x9e1   :  { %3075 = vmatpush1.msra.mxu1 %v2960_v44  ;;  %v2970_v44 = vld [vmem:[#allocation20 + $0x130] sm:$0xff] }
 0x9e2   :  { %4023 = vmatmul.mubr.f32.gmra.mxu1 %v2708_v52  ;;  %3076 = vmatprep.subr.mxu1 %v2959_v28  ;;  %v2993_v52 = vld [vmem:[#allocation20 + $0x1e8] sm:$0xff] }
 0x9e3   :  { %4025 = vmatprep.mubr.msk.f32.mxu1 %vm4628_vm0, %v6527_v62  ;;  %3077 = vmatpush1.msra.mxu1 %v2958_v35  ;;  %v2969_v28 = vld [vmem:[#allocation20 + $0x128] sm:$0xff]  ;;  %v2968_v35 = vld [vmem:[#allocation20 + $0x120] sm:$0xff] }
 0x9e4   :  { %3078 = vmatprep.subr.mxu1 %v2957_v9 }
 0x9e5   :  { %3079 = vmatpush1.msra.mxu1 %v2956_v30  ;;  %v2967_v30 = vld [vmem:[#allocation20 + $0x118] sm:$0xff] }
 0x9e6   :  { %4026 = vmatmul.mubr.f32.gmra.mxu1 %v2709_v40  ;;  %v2989_v40 = vld [vmem:[#allocation20 + $0x1c8] sm:$0xff] }
 0x9e7   :  { %4028 = vmatprep.mubr.msk.f32.mxu1 %vm4628_vm0, %v6527_v62 }
 0x9ea   :  { %4029 = vmatmul.mubr.f32.gmra.mxu1 %v2710_v33  ;;  %v2985_v33 = vld [vmem:[#allocation20 + $0x1a8] sm:$0xff] }
 0x9eb   :  { %4031 = vmatprep.mubr.msk.f32.mxu1 %vm4628_vm0, %v6527_v62 }
 0x9ee   :  { %4032 = vmatmul.mubr.f32.gmra.mxu1 %v2711_v29  ;;  %v2977_v29 = vld [vmem:[#allocation20 + $0x168] sm:$0xff] }
 0x9ef   :  { %4034 = vmatprep.mubr.msk.f32.mxu1 %vm4628_vm0, %v6527_v62 }
 0x9f2   :  { %4035 = vmatmul.mubr.f32.gmra.mxu1 %v2712_v4  ;;  %v2974_v4 = vld [vmem:[#allocation20 + $0x150] sm:$0xff] }
 0x9f3   :  { %4037 = vmatprep.mubr.msk.f32.mxu1 %vm4628_vm0, %v6527_v62  ;;  %v2955_v62 = vld [vmem:[#allocation20 + $0xb8] sm:$0xff] }
 0x9f4   :  { %3080 = vmatprep.subr.mxu1 %v2955_v62  ;;  %v2966_v62 = vld [vmem:[#allocation20 + $0x110] sm:$0xff] }
 0x9f5   :  { %3081 = vmatpush1.msra.mxu1 %v2954_v41 }
 0x9f6   :  { %4038 = vmatmul.mubr.f32.gmra.mxu1 %v2713_v38  ;;  %3082 = vmatprep.subr.mxu1 %v2953_v34  ;;  %v2965_v34 = vld [vmem:[#allocation20 + $0x108] sm:$0xff] }
 0x9f7   :  { %3136 = vmatprep.mubr.f32.mxu1 %v6832_v63  ;;  %3083 = vmatpush1.msra.mxu1 %v2952_v27  ;;  %v2973_v63 = vld [vmem:[#allocation20 + $0x148] sm:$0xff]  ;;  %v2964_v27 = vld [vmem:[#allocation20 + $0x100] sm:$0xff] }
 0x9f8   :  { %3084 = vmatprep.subr.mxu1 %v2951_v43 }
 0x9f9   :  { %3085 = vmatpush1.msra.mxu1 %v2950_v7 }
 0x9fa   :  { %3086 = vmatprep.subr.mxu1 %v2949_v26  ;;  %v4354_v26 = vld [vmem:[#allocation6] sm:$0xff] }
 0x9fb   :  { %3087 = vmatpush1.msra.mxu1 %v2948_v51 }
 0x9fc   :  { %3088 = vmatprep.subr.mxu1 %v2947_v13 }
 0x9fd   :  { %3089 = vmatpush1.msra.mxu1 %v2946_v58 }
 0x9fe   :  { %3090 = vmatprep.subr.mxu1 %v2945_v11 }
 0x9ff   :  { %3091 = vmatpush1.msra.mxu1 %v2944_v8 }
 0xa00   :  { %3092 = vmatprep.subr.mxu1 %v2943_v49 }
 0xa01   :  { %3093 = vmatpush1.msra.mxu1 %v2942_v22 }
 0xa02   :  { %3094 = vmatprep.subr.mxu1 %v2941_v61 }
 0xa03   :  { %3095 = vmatpush1.msra.mxu1 %v2940_v60 }
 0xa04   :  { %3096 = vmatprep.subr.mxu1 %v2939_v42 }
 0xa05   :  { %3097 = vmatpush1.msra.mxu1 %v2938_v32 }
 0xa06   :  { %3098 = vmatprep.subr.mxu1 %v2937_v14 }
 0xa07   :  { %3099 = vmatpush1.msra.mxu1 %v2936_v48 }
 0xa08   :  { %3100 = vmatprep.subr.mxu1 %v2935_v3 }
 0xa09   :  { %3101 = vmatpush1.msra.mxu1 %v2934_v18 }
 0xa0a   :  { %3102 = vmatprep.subr.mxu1 %v2933_v36 }
 0xa0b   :  { %3103 = vmatpush1.msra.mxu1 %v2932_v56 }
 0xa0c   :  { %3104 = vmatprep.subr.mxu1 %v2995_v46 }
 0xa0d   :  { %3105 = vmatpush2.msra.mxu1 %v2994_v1 }
 0xa0e   :  { %3106 = vmatprep.subr.mxu1 %v2993_v52 }
 0xa0f   :  { %3107 = vmatpush2.msra.mxu1 %v2992_v5 }
 0xa10   :  { %3108 = vmatprep.subr.mxu1 %v2991_v17 }
 0xa11   :  { %3109 = vmatpush2.msra.mxu1 %v2990_v59 }
 0xa12   :  { %3110 = vmatprep.subr.mxu1 %v2989_v40 }
 0xa13   :  { %3111 = vmatpush2.msra.mxu1 %v2988_v47 }
 0xa14   :  { %3112 = vmatprep.subr.mxu1 %v2987_v2 }
 0xa15   :  { %3113 = vmatpush2.msra.mxu1 %v2986_v45 }
 0xa16   :  { %3114 = vmatprep.subr.mxu1 %v2985_v33 }
 0xa17   :  { %3115 = vmatpush2.msra.mxu1 %v2984_v37  ;;  %v2591_v37 = vrot.slane %v6258_v0, %v5029_v12 }
 0xa18   :  { %3116 = vmatprep.subr.mxu1 %v2983_v23  ;;  %v6833_v23 = vld [vmem:[#allocation35_spill] sm:$0xff] }
 0xa19   :  { %3117 = vmatpush2.msra.mxu1 %v2982_v21 }
 0xa1a   :  { %3118 = vmatprep.subr.mxu1 %v2981_v25 }
 0xa1b   :  { %3119 = vmatpush2.msra.mxu1 %v2980_v20 }
 0xa1c   :  { %3120 = vmatprep.subr.mxu1 %v2979_v54  ;;  %v6834_v54 = vld [vmem:[#allocation41_spill] sm:$0xff] }
 0xa1d   :  { %3121 = vmatpush2.msra.mxu1 %v2978_v15 }
 0xa1e   :  { %3122 = vmatprep.subr.mxu1 %v2977_v29 }
 0xa1f   :  { %3123 = vmatpush2.msra.mxu1 %v2976_v6 }
 0xa20   :  { %3124 = vmatprep.subr.mxu1 %v2975_v39 }
 0xa21   :  { %3125 = vmatpush2.msra.mxu1 %v2974_v4 }
 0xa22   :  { %3126 = vmatprep.subr.mxu1 %v2973_v63  ;;  %v6836_v63 = vld [vmem:[#allocation65_spill] sm:$0xff] }
 0xa23   :  { %3127 = vmatpush2.msra.mxu1 %v2972_v57  ;;  %v2631_v57 = vadd.f32 %v2591_v37, %v6836_v63  ;;  %v3003_v37 = vld [vmem:[#allocation20 + $0x238] sm:$0xff]  ;;  %v3054_v63 = vld [vmem:[#allocation20 + $0x3d0] sm:$0xff] }
 0xa24   :  { %3128 = vmatprep.subr.mxu1 %v2971_v16  ;;  %v6837_v16 = vld [vmem:[#allocation33_spill] sm:$0xff] }
 0xa25   :  { %3129 = vmatpush2.msra.mxu1 %v2970_v44  ;;  %v2482_v0 = vadd.f32 %v6285_v53, %v6837_v16  ;;  %v3051_v16 = vld [vmem:[#allocation20 + $0x3b8] sm:$0xff] }
 0xa26   :  { %3130 = vmatprep.subr.mxu1 %v2969_v28 }
 0xa27   :  { %3131 = vmatpush2.msra.mxu1 %v2968_v35 }
 0xa28   :  { %3132 = vmatprep.subr.mxu1 %v2967_v30 }
 0xa29   :  { %3133 = vmatpush2.msra.mxu1 %v2966_v62 }
 0xa2a   :  { %3134 = vmatprep.subr.mxu1 %v2965_v34 }
 0xa2b   :  { %3135 = vmatpush2.msra.mxu1 %v2964_v27 }
 0xa2c   :  { %3137 = vmatmul.mubr.f32.vlgmr.msra.gmra.mxu1 %v4354_v26 }
 0xa9e   :  { %v2780_v24 = vpop.f32.mrf.mxu1 }
 0xaa0   :  { %v4021_v38 = vpop.f32.mrf.mxu1 }
 0xaa2   :  { %v2785_v55 = vpop.f32.mrf.mxu1 }
 0xaa4   :  { %v4024_v50 = vpop.f32.mrf.mxu1 }
 0xaa5   :  { %v6838_v50 = vld [vmem:[#allocation48_spill] sm:$0xff] }
 0xaa6   :  { %v2790_v9 = vpop.f32.mrf.mxu1 }
 0xaa8   :  { %v4027_v41 = vpop.f32.mrf.mxu1 }
 0xaaa   :  { %v2795_v43 = vpop.f32.mrf.mxu1 }
 0xaac   :  { %v4030_v7 = vpop.f32.mrf.mxu1 }
 0xaad   :  { %v6839_v7 = vld [vmem:[#allocation49_spill] sm:$0xff] }
 0xaae   :  { %v2800_v51 = vpop.f32.mrf.mxu1 }
 0xaaf   :  { %v2814_v22 = vmax.f32 %v2780_v24, %v2800_v51 }
 0xab0   :  { %v4033_v13 = vpop.f32.mrf.mxu1 }
 0xab2   :  { %v2805_v58 = vpop.f32.mrf.mxu1 }
 0xab3   :  { %v2815_v8 = vmax.f32 %v2785_v55, %v2805_v58 }
 0xab4   :  { %v4036_v11 = vpop.f32.mrf.mxu1 }
 0xab5   :  { %v2817_v42 = vmax.f32 %v2814_v22, %v2815_v8  ;;  %v3025_v22 = vld [vmem:[#allocation20 + $0x2e8] sm:$0xff] }
 0xab6   :  { %v2810_v49 = vpop.f32.mrf.mxu1 }
 0xab7   :  { %v2816_v61 = vmax.f32 %v2790_v9, %v2810_v49 }
 0xab8   :  { %v4039_v60 = vpop.f32.mrf.mxu1 }
 0xab9   :  { %v2818_v32 = vmax.f32 %v2816_v61, %v2795_v43  ;;  %v3024_v61 = vld [vmem:[#allocation20 + $0x2e0] sm:$0xff]  ;;  %v3023_v60 = vld [vmem:[#allocation20 + $0x2d8] sm:$0xff] }
 0xabb   :  { %v2819_v14 = vmax.f32 %v2817_v42, %v2818_v32  ;;  %v3022_v42 = vld [vmem:[#allocation20 + $0x2d0] sm:$0xff]  ;;  %v3021_v32 = vld [vmem:[#allocation20 + $0x2c8] sm:$0xff] }
 0xabd   :  { %v2820_v48 = vsub.f32 %v2780_v24, %v2819_v14  ;;  %v2821_v3 = vsub.f32 %v2785_v55, %v2819_v14  ;;  %v2822_v18 = vsub.f32 %v2790_v9, %v2819_v14  ;;  %v2823_v36 = vsub.f32 %v2795_v43, %v2819_v14  ;;  %v6835_v24 = vld [vmem:[#allocation46_spill] sm:$0xff] }
 0xabe   :  { %v2824_v56 = vsub.f32 %v2800_v51, %v2819_v14  ;;  %v2825_v5 = vsub.f32 %v2805_v58, %v2819_v14  ;;  %v2826_v59 = vsub.f32 %v2810_v49, %v2819_v14  ;;  %v2607_v55 = vrot.slane %v6269_v19, %v5029_v12  ;;  %v3026_v49 = vld [vmem:[#allocation20 + $0x2f0] sm:$0xff]  ;;  %v3020_v14 = vld [vmem:[#allocation20 + $0x2c0] sm:$0xff] }
 0xabf   :  { %v2827_v46 = vmul.f32 1.442695, %v2820_v48  ;;  %v2829_v1 = vmul.f32 1.442695, %v2821_v3  ;;  %v2831_v52 = vmul.f32 1.442695, %v2822_v18 }
 0xac0   :  { %v2833_v17 = vmul.f32 1.442695, %v2823_v36  ;;  %v2835_v40 = vmul.f32 1.442695, %v2824_v56  ;;  %v2837_v47 = vmul.f32 1.442695, %v2825_v5  ;;  %v2635_v27 = vadd.f32 %v2607_v55, %v2482_v0 }
 0xac1   :  { %4161 = vpow2.f32 %v2827_v46  ;;  %v2839_v2 = vmul.f32 1.442695, %v2826_v59  ;;  %v3019_v48 = vld [vmem:[#allocation20 + $0x2b8] sm:$0xff]  ;;  %v3018_v3 = vld [vmem:[#allocation20 + $0x2b0] sm:$0xff]  ;;  %v3017_v18 = vld [vmem:[#allocation20 + $0x2a8] sm:$0xff] }
 0xac2   :  { %4163 = vpow2.f32 %v2829_v1  ;;  %v3016_v36 = vld [vmem:[#allocation20 + $0x2a0] sm:$0xff]  ;;  %v3015_v56 = vld [vmem:[#allocation20 + $0x298] sm:$0xff]  ;;  %v3014_v46 = vld [vmem:[#allocation20 + $0x290] sm:$0xff] }
 0xac3   :  { %4165 = vpow2.f32 %v2831_v52  ;;  %v3013_v1 = vld [vmem:[#allocation20 + $0x288] sm:$0xff]  ;;  %v3012_v52 = vld [vmem:[#allocation20 + $0x280] sm:$0xff]  ;;  %v3011_v5 = vld [vmem:[#allocation20 + $0x278] sm:$0xff] }
 0xac4   :  { %4167 = vpow2.f32 %v2833_v17  ;;  %v3010_v17 = vld [vmem:[#allocation20 + $0x270] sm:$0xff]  ;;  %v3009_v59 = vld [vmem:[#allocation20 + $0x268] sm:$0xff]  ;;  %v3052_v55 = vld [vmem:[#allocation20 + $0x3c0] sm:$0xff] }
 0xac5   :  { %4169 = vpow2.f32 %v2835_v40  ;;  %v3008_v40 = vld [vmem:[#allocation20 + $0x260] sm:$0xff]  ;;  %v3050_v0 = vld [vmem:[#allocation20 + $0x3b0] sm:$0xff] }
 0xac6   :  { %4171 = vpow2.f32 %v2837_v47  ;;  %v3007_v47 = vld [vmem:[#allocation20 + $0x258] sm:$0xff] }
 0xac7   :  { %4173 = vpow2.f32 %v2839_v2  ;;  %v3006_v2 = vld [vmem:[#allocation20 + $0x250] sm:$0xff] }
 0xace   :  { %v4162_v45 = vpop.eup %4161 }
 0xacf   :  { %v4164_v33 = vpop.eup %4163  ;;  %v2847_v21 = vmul.f32 %v4162_v45, %v6833_v23  ;;  %v3002_v23 = vld [vmem:[#allocation20 + $0x230] sm:$0xff] }
 0xad0   :  { %v4166_v25 = vpop.eup %4165  ;;  %v2841_v20 = vadd.f32 %v4164_v33, %v4162_v45  ;;  %v2848_v15 = vmul.f32 %v4164_v33, %v6834_v54  ;;  %v3005_v45 = vld [vmem:[#allocation20 + $0x248] sm:$0xff]  ;;  %v3004_v33 = vld [vmem:[#allocation20 + $0x240] sm:$0xff]  ;;  %v2998_v54 = vld [vmem:[#allocation20 + $0x210] sm:$0xff] }
 0xad1   :  { %v4168_v29 = vpop.eup %4167  ;;  %v2849_v39 = vmul.f32 %v4166_v25, %v6835_v24  ;;  %v3058_v24 = vld [vmem:[#allocation20 + $0x3f0] sm:$0xff] }
 0xad2   :  { %v2842_v6 = vadd.f32 %v4166_v25, %v2841_v20  ;;  %v2854_v4 = vadd.f32 %v2848_v15, %v2847_v21  ;;  %v4170_v38 = vpop.eup %4169  ;;  %v2850_v28 = vmul.f32 %v4168_v29, %v6838_v50  ;;  %v3001_v21 = vld [vmem:[#allocation20 + $0x228] sm:$0xff]  ;;  %v3000_v25 = vld [vmem:[#allocation20 + $0x220] sm:$0xff]  ;;  %v2999_v20 = vld [vmem:[#allocation20 + $0x218] sm:$0xff] }
 0xad3   :  { %v4172_v9 = vpop.eup %4171  ;;  %v2851_v62 = vmul.f32 %v4170_v38, %v2631_v57  ;;  %v2997_v15 = vld [vmem:[#allocation20 + $0x208] sm:$0xff]  ;;  %v3048_v50 = vld [vmem:[#allocation20 + $0x3a0] sm:$0xff] }
 0xad4   :  { %v2843_v44 = vadd.f32 %v4168_v29, %v2842_v6  ;;  %v2855_v35 = vadd.f32 %v2854_v4, %v2849_v39  ;;  %v4174_v34 = vpop.eup %4173  ;;  %v2852_v26 = vmul.f32 %v4172_v9, %v6839_v7  ;;  %v2996_v29 = vld [vmem:[#allocation20 + $0x200] sm:$0xff]  ;;  %v3059_v6 = vld [vmem:[#allocation20 + $0x3f8] sm:$0xff]  ;;  %v3057_v39 = vld [vmem:[#allocation20 + $0x3e8] sm:$0xff] }
 0xad5   :  { %v2853_v58 = vmul.f32 %v4174_v34, %v2635_v27  ;;  %v3056_v4 = vld [vmem:[#allocation20 + $0x3e0] sm:$0xff]  ;;  %v3053_v57 = vld [vmem:[#allocation20 + $0x3c8] sm:$0xff]  ;;  %v3038_v7 = vld [vmem:[#allocation20 + $0x350] sm:$0xff] }
 0xad6   :  { %v2844_v30 = vadd.f32 %v4170_v38, %v2843_v44  ;;  %v2856_v41 = vadd.f32 %v2855_v35, %v2850_v28  ;;  %v3055_v38 = vld [vmem:[#allocation20 + $0x3d8] sm:$0xff]  ;;  %v3049_v44 = vld [vmem:[#allocation20 + $0x3a8] sm:$0xff]  ;;  %v3046_v35 = vld [vmem:[#allocation20 + $0x390] sm:$0xff] }
 0xad7   :  { %v3047_v28 = vld [vmem:[#allocation20 + $0x398] sm:$0xff]  ;;  %v3040_v27 = vld [vmem:[#allocation20 + $0x360] sm:$0xff] }
 0xad8   :  { %v2845_v43 = vadd.f32 %v4172_v9, %v2844_v30  ;;  %v2857_v51 = vadd.f32 %v2856_v41, %v2851_v62  ;;  %v3045_v9 = vld [vmem:[#allocation20 + $0x388] sm:$0xff]  ;;  %v3044_v30 = vld [vmem:[#allocation20 + $0x380] sm:$0xff]  ;;  %v3043_v62 = vld [vmem:[#allocation20 + $0x378] sm:$0xff] }
 0xad9   :  { %v3042_v41 = vld [vmem:[#allocation20 + $0x370] sm:$0xff] }
 0xada   :  { %v2846_v13 = vadd.f32 %v4174_v34, %v2845_v43  ;;  %v2858_v19 = vadd.f32 %v2857_v51, %v2852_v26  ;;  %v3041_v34 = vld [vmem:[#allocation20 + $0x368] sm:$0xff]  ;;  %v3039_v43 = vld [vmem:[#allocation20 + $0x358] sm:$0xff]  ;;  %v3036_v51 = vld [vmem:[#allocation20 + $0x340] sm:$0xff] }
 0xadb   :  { %v3037_v26 = vld [vmem:[#allocation20 + $0x348] sm:$0xff] }
 0xadc   :  { %4175 = vrcp.f32 %v2846_v13  ;;  %v2859_v11 = vadd.f32 %v2858_v19, %v2853_v58  ;;  %v3035_v13 = vld [vmem:[#allocation20 + $0x338] sm:$0xff]  ;;  %v3034_v58 = vld [vmem:[#allocation20 + $0x330] sm:$0xff]  ;;  %v3033_v19 = vld [vmem:[#allocation20 + $0x328] sm:$0xff] }
 0xae9   :  { %v4176_v53 = vpop.eup %4175 }
 0xaea   :  { %v2861_v8 = vmul.f32 %v4176_v53, %v2859_v11  ;;  %v3032_v11 = vld [vmem:[#allocation20 + $0x320] sm:$0xff]  ;;  %v3031_v53 = vld [vmem:[#allocation20 + $0x318] sm:$0xff] }
 0xaec   :  { %4073 = vmatmul.mubr.f32.vlgmr.msra.gmra.mxu0 %v2861_v8  ;;  %v3030_v8 = vld [vmem:[#allocation20 + $0x310] sm:$0xff] }
 0xaed   :  { %3144 = vmatpush1.msra.mxu0 %v3026_v49  ;;  %v3029_v49 = vld [vmem:[#allocation20 + $0x308] sm:$0xff] }
 0xaee   :  { %3145 = vmatprep.subr.mxu0 %v3025_v22  ;;  %v3028_v22 = vld [vmem:[#allocation20 + $0x300] sm:$0xff] }
 0xaef   :  { %3146 = vmatpush1.msra.mxu0 %v3024_v61 }
 0xaf0   :  { %3147 = vmatprep.subr.mxu0 %v3023_v60  ;;  %v4355_v60 = vld [vmem:[%s6324_s13] ss:$0 sm:$0xff]  ;;  %s4576_s13 = scalar_lea.vmem %s3223_s2, 256 }
 0xaf1   :  { %3148 = vmatpush1.msra.mxu0 %v3022_v42  ;;  %p4577_p13 = scmp.ne.s32.totalorder %s3223_s2, %s4576_s13  ;;  %p4582_p1 = scmp.lt.s32.totalorder %s4576_s13, %s4576_s13 }
 0xaf2   :  { %3149 = vmatprep.subr.mxu0 %v3021_v32 }
 0xaf3   :  { %3150 = vmatpush1.msra.mxu0 %v3020_v14  ;;  %v3060_v14 = vld [vmem:[%s6327_s16] sm:$0x3]  ;;  %p4583_p2 = por %p4582_p1, %p4581_p0 }
 0xaf4   :  { %3151 = vmatprep.subr.mxu0 %v3019_v48  ;;  %v3065_v48 = vrot.slane %v3060_v14, %v6691_v31 }
 0xaf5   :  { %3152 = vmatpush1.msra.mxu0 %v3018_v3  ;;  %v3138_v3 = vpop.f32.mrf.mxu1  ;;  %p4584_p3 = pnand %p4583_p2, %p4577_p13 }
 0xaf6   :  { %3153 = vmatprep.subr.mxu0 %v3017_v18  ;;  %v3139_v18 = vadd.f32 %v3138_v3, %v3065_v48 }
 0xaf7   :  { %3154 = vmatpush1.msra.mxu0 %v3016_v36  ;;  %v3069_v36 = vrot.slane %v3060_v14, %v5029_v12 }
 0xaf8   :  { %3155 = vmatprep.subr.mxu0 %v3015_v56  ;;  %v3140_v56 = vpop.f32.mrf.mxu1 }
 0xaf9   :  { %3156 = vmatpush1.msra.mxu0 %v3014_v46 }
 0xafa   :  { %3157 = vmatprep.subr.mxu0 %v3013_v1  ;;  %v3141_v1 = vadd.f32 %v3140_v56, %v3069_v36 }
 0xafb   :  { %3158 = vmatpush1.msra.mxu0 %v3012_v52 }
 0xafc   :  { %3159 = vmatprep.subr.mxu0 %v3011_v5 }
 0xafd   :  { %3160 = vmatpush1.msra.mxu0 %v3010_v17 }
 0xafe   :  { %3161 = vmatprep.subr.mxu0 %v3009_v59 }
 0xaff   :  { %3162 = vmatpush1.msra.mxu0 %v3008_v40 }
 0xb00   :  { %3163 = vmatprep.subr.mxu0 %v3007_v47 }
 0xb01   :  { %3164 = vmatpush1.msra.mxu0 %v3006_v2 }
 0xb02   :  { %3165 = vmatprep.subr.mxu0 %v3005_v45 }
 0xb03   :  { %3166 = vmatpush1.msra.mxu0 %v3004_v33 }
 0xb04   :  { %3167 = vmatprep.subr.mxu0 %v3003_v37 }
 0xb05   :  { %3168 = vmatpush1.msra.mxu0 %v3002_v23 }
 0xb06   :  { %3169 = vmatprep.subr.mxu0 %v3001_v21 }
 0xb07   :  { %3170 = vmatpush1.msra.mxu0 %v3000_v25 }
 0xb08   :  { %3171 = vmatprep.subr.mxu0 %v2999_v20 }
 0xb09   :  { %3172 = vmatpush1.msra.mxu0 %v2998_v54 }
 0xb0a   :  { %3173 = vmatprep.subr.mxu0 %v2997_v15 }
 0xb0b   :  { %3174 = vmatpush1.msra.mxu0 %v2996_v29 }
 0xb0c   :  { %3175 = vmatprep.subr.mxu0 %v3059_v6 }
 0xb0d   :  { %3176 = vmatpush2.msra.mxu0 %v3058_v24 }
 0xb0e   :  { %3177 = vmatprep.subr.mxu0 %v3057_v39 }
 0xb0f   :  { %3178 = vmatpush2.msra.mxu0 %v3056_v4 }
 0xb10   :  { %3179 = vmatprep.subr.mxu0 %v3055_v38 }
 0xb11   :  { %3180 = vmatpush2.msra.mxu0 %v3054_v63 }
 0xb12   :  { %3181 = vmatprep.subr.mxu0 %v3053_v57 }
 0xb13   :  { %3182 = vmatpush2.msra.mxu0 %v3052_v55 }
 0xb14   :  { %3183 = vmatprep.subr.mxu0 %v3051_v16 }
 0xb15   :  { %3184 = vmatpush2.msra.mxu0 %v3050_v0 }
 0xb16   :  { %3185 = vmatprep.subr.mxu0 %v3049_v44 }
 0xb17   :  { %3186 = vmatpush2.msra.mxu0 %v3048_v50 }
 0xb18   :  { %3187 = vmatprep.subr.mxu0 %v3047_v28 }
 0xb19   :  { %3188 = vmatpush2.msra.mxu0 %v3046_v35 }
 0xb1a   :  { %3189 = vmatprep.subr.mxu0 %v3045_v9 }
 0xb1b   :  { %3190 = vmatpush2.msra.mxu0 %v3044_v30 }
 0xb1c   :  { %3191 = vmatprep.subr.mxu0 %v3043_v62 }
 0xb1d   :  { %3192 = vmatpush2.msra.mxu0 %v3042_v41 }
 0xb1e   :  { %3193 = vmatprep.subr.mxu0 %v3041_v34 }
 0xb1f   :  { %3194 = vmatpush2.msra.mxu0 %v3040_v27 }
 0xb20   :  { %3195 = vmatprep.subr.mxu0 %v3039_v43 }
 0xb21   :  { %3196 = vmatpush2.msra.mxu0 %v3038_v7 }
 0xb22   :  { %3197 = vmatprep.subr.mxu0 %v3037_v26 }
 0xb23   :  { %3198 = vmatpush2.msra.mxu0 %v3036_v51 }
 0xb24   :  { %3199 = vmatprep.subr.mxu0 %v3035_v13 }
 0xb25   :  { %3200 = vmatpush2.msra.mxu0 %v3034_v58 }
 0xb26   :  { %3201 = vmatprep.subr.mxu0 %v3033_v19 }
 0xb27   :  { %3202 = vmatpush2.msra.mxu0 %v3032_v11 }
 0xb28   :  { %3203 = vmatprep.subr.mxu0 %v3031_v53 }
 0xb29   :  { %3204 = vmatpush2.msra.mxu0 %v3030_v8 }
 0xb2a   :  { %3205 = vmatprep.subr.mxu0 %v3029_v49 }
 0xb2b   :  { %3206 = vmatpush2.msra.mxu0 %v3028_v22 }
 0xbac   :  { %v2928_v61 = vpop.f32.mrf.mxu0 }
 0xbad   :  { %v2929_v42 = vadd.f32 %v4355_v60, %v2928_v61 }
 0xbae   :  { %v4074_v32 = vpop.f32.mrf.mxu0 }
 0xbaf   :  { %3207 = vmatprep.mubr.f32.mxu0 %v2929_v42 }
 0xbb0   :  { %3208 = vmatmul.mubr.f32.vlgmr.msra.gmra.mxu0 %v6067_v10 }
 0xc70   :  { %v3209_v46 = vpop.f32.mrf.mxu0 }
 0xc71   :  { %v3210_v52 = vadd.f32 %v3209_v46, %v3139_v18 }
 0xc72   :  { %v3211_v5 = vpop.f32.mrf.mxu0 }
 0xc73   :  { %3214 = vst [vmem:[#allocation21] sm:$0xff] %v3210_v52  ;;  %v3212_v17 = vadd.f32 %v3211_v5, %v3141_v1 }
 0xc75   :  { %3215 = vst [vmem:[#allocation21 + $0x8] sm:$0xff] %v3212_v17 }
 0xc76   :  { %4587 = shalt.err (!%p4584_p3)
}
 0xc77   :  { %3225 = dma.vmem_to_hbm [thread:$0]  %s3223_s2, 256, %s6328_s17, [#allocation5]  }
 0xc78   :  { %4608 = dma.done.wait [#allocation5], 256  }
 0xc79   :  { %4609 = vsyncadd [#allocation5], 4294967040 }
 0xc7a   :  { %3229 = vsyncpa [#allocation4], 1 }
 0xc7b   :  { %3230 = vsyncpa [#allocation7], 1 }
 0xc7c   :  { %3231 = vsyncpa [#allocation10], 1 }
 0xc7d   :  { %3232 = vsyncpa [#allocation13], 1 }
 0xc7e   :  { %3233 = vsyncpa [#allocation16], 1 }
 0xc7f   :  { %3234 = vsyncpa [#allocation19], 1 }
 0xc80   :  { %3235 = vsyncpa [#allocation5], 1 }

</bundles_post_ra>
